<compile_context>
chip_gen: v6e
topology: v6e:2x2x1
jax: 0.10.0
libtpu: 0.0.40
codegen_flags: <defaults>
</compile_context>

<pallas_src>
import math

import jax
import jax.numpy as jnp
from jax import lax
from jax.experimental import pallas as pl
from jax.experimental.pallas import tpu as pltpu

# ----------------------- small synthetic config -----------------------
B = 2
IMG = 16
PATCH = 8
IN_CHANS = 3
T_TEXT = 8                       # config['max_text_len']
VOCAB = 64                       # config['vocab_size']
DIM = 32                         # hidden_size == dim
HEADS = 4
MLP_RATIO = 4
DEPTH = 2                        # number of ViT blocks
FFN = DIM * MLP_RATIO
N_PATCH = (IMG // PATCH) ** 2    # 4
N_IMG_TOK = N_PATCH + 1          # +cls token = 5
SEQ = T_TEXT + N_IMG_TOK         # 13
PATCH_DIM = IN_CHANS * PATCH * PATCH   # 192
LN_EPS_VIT = 1e-6                # layernorm_epsilon for ViT blocks / final norm
LN_EPS_BERT = 1e-12              # BertEmbeddings / MLM-head LayerNorm eps
INIT_STD = 0.02


# ----------------------- in-kernel math helpers -----------------------
def _gelu(x):
    # tanh-approximate GELU (runs on the EUP).
    # TODO(synk): torch F.gelu uses exact erf; tanh approximation differs by ~1e-3.
    c = math.sqrt(2.0 / math.pi)
    return 0.5 * x * (1.0 + jnp.tanh(c * (x + 0.044715 * x * x * x)))


def _ln(x, g, b, eps):
    mu = jnp.mean(x, axis=-1, keepdims=True)
    var = jnp.mean((x - mu) ** 2, axis=-1, keepdims=True)
    return (x - mu) * lax.rsqrt(var + eps) * g + b


# --------------------- fused-kernel weight ordering ---------------------
WEIGHT_KEYS = (
    'word_emb',
    'patch_w', 'patch_bias', 'img_cls_row',
    'text_bias', 'text_ln_g', 'text_ln_b',
    'blk_ln1_g', 'blk_ln1_b',
    'blk_wq', 'blk_bq', 'blk_wk', 'blk_bk', 'blk_wv', 'blk_bv',
    'blk_wproj', 'blk_bproj',
    'blk_ln2_g', 'blk_ln2_b', 'blk_w1', 'blk_b1', 'blk_w2', 'blk_b2',
    'final_ln_g', 'final_ln_b', 'pool_w', 'pool_b',
    'mlm_wt', 'mlm_bt', 'mlm_ln_g', 'mlm_ln_b', 'mlm_wd', 'mlm_bd',
)


# ----------------------------- fused kernel -----------------------------
def _vilt_fused_kernel(patches_ref, ids_ref, labels_ref, *refs):
    nw = len(WEIGHT_KEYS)
    wr = dict(zip(WEIGHT_KEYS, refs[:nw]))
    x_out_ref, cls_out_ref, logits_out_ref, ce_out_ref = refs[nw:]

    f32 = jnp.float32
    hd = DIM // HEADS
    scale = 1.0 / math.sqrt(hd)

    # Hoisted iotas / masks (JAX does not CSE broadcast_in_dim across loops).
    vocab_col = lax.broadcasted_iota(jnp.int32, (T_TEXT, VOCAB), 1)   # (T, V)
    lane = lax.broadcasted_iota(jnp.int32, (1, DIM), 1)               # (1, D)
    head_masks = [((lane >= h * hd) & (lane < (h + 1) * hd)).astype(f32)
                  for h in range(HEADS)]

    # --- ViTEmbedding: patch "conv" (stride=kernel=ps) as matmul + bias+pos ---
    patch_tok = (jnp.dot(patches_ref[0], wr['patch_w'][...],
                         preferred_element_type=f32) + wr['patch_bias'][...])

    # --- BertEmbeddings: word gather (one-hot matmul on the MXU) + pos +
    #     token_type sum, then LayerNorm ---
    ids = ids_ref[0]                                                  # (T, 1) int32
    id_onehot = (vocab_col == ids).astype(f32)                        # (T, V)
    we = jnp.dot(id_onehot, wr['word_emb'][...], preferred_element_type=f32)
    text_pre = we + wr['text_bias'][...]
    text_emb = _ln(text_pre, wr['text_ln_g'][...], wr['text_ln_b'][...], LN_EPS_BERT)

    # --- co-embeds: [text tokens ; cls token ; patch tokens] -> (SEQ, DIM) ---
    x = jnp.concatenate([text_emb, wr['img_cls_row'][...], patch_tok], axis=0)

    # --- pre-norm ViT blocks (unrolled over DEPTH, statically indexed stacks) ---
    # Per-head lane masks are VPU-cheap; masking non-head columns to zero makes
    # (q*m_h) @ k^T and p @ (v*m_h) exactly equal to the per-head sliced math,
    # but keeps every matmul full-width with no lane slicing / concat.
    for l in range(DEPTH):
        # multi-head self-attention (no text-padding mask, same as reference)
        h = _ln(x, wr['blk_ln1_g'][l], wr['blk_ln1_b'][l], LN_EPS_VIT)
        q = jnp.dot(h, wr['blk_wq'][l], preferred_element_type=f32) + wr['blk_bq'][l]
        k = jnp.dot(h, wr['blk_wk'][l], preferred_element_type=f32) + wr['blk_bk'][l]
        v = jnp.dot(h, wr['blk_wv'][l], preferred_element_type=f32) + wr['blk_bv'][l]

        attn = jnp.zeros((SEQ, DIM), f32)
        for hh in range(HEADS):
            m_h = head_masks[hh]                                       # (1, D)
            s = lax.dot_general(q * m_h, k, (((1,), (1,)), ((), ())),
                                preferred_element_type=f32) * scale    # (S, S)
            s = s - jnp.max(s, axis=-1, keepdims=True)
            p = jnp.exp(s)
            p = p * pl.reciprocal(jnp.sum(p, axis=-1, keepdims=True), approx=True)
            # only head-hh columns of the result are non-zero -> sum == concat
            attn = attn + jnp.dot(p, v * m_h, preferred_element_type=f32)
        attn = (jnp.dot(attn, wr['blk_wproj'][l], preferred_element_type=f32)
                + wr['blk_bproj'][l])
        x = x + attn

        # MLP
        h2 = _ln(x, wr['blk_ln2_g'][l], wr['blk_ln2_b'][l], LN_EPS_VIT)
        y = _gelu(jnp.dot(h2, wr['blk_w1'][l], preferred_element_type=f32)
                  + wr['blk_b1'][l])
        y = jnp.dot(y, wr['blk_w2'][l], preferred_element_type=f32) + wr['blk_b2'][l]
        x = x + y

    # --- final encoder LayerNorm ---
    x = _ln(x, wr['final_ln_g'][...], wr['final_ln_b'][...], LN_EPS_VIT)
    x_out_ref[0] = x

    # --- pooler: tanh(dense(x[:, 0])) ---
    cls_out_ref[0] = jnp.tanh(
        jnp.dot(x[0:1], wr['pool_w'][...], preferred_element_type=f32)
        + wr['pool_b'][...])

    # --- MLM head on text tokens (dense + gelu + LN + decoder) ---
    tf = x[:T_TEXT]
    hm = jnp.dot(tf, wr['mlm_wt'][...], preferred_element_type=f32) + wr['mlm_bt'][...]
    hm = _gelu(hm)
    hm = _ln(hm, wr['mlm_ln_g'][...], wr['mlm_ln_b'][...], LN_EPS_BERT)
    logits = (jnp.dot(hm, wr['mlm_wd'][...], preferred_element_type=f32)
              + wr['mlm_bd'][...])
    logits_out_ref[0] = logits

    # --- masked cross-entropy partials: per-batch (sum_loss, valid_count) ---
    labels = labels_ref[0]                                        # (T, 1) int32
    m = jnp.max(logits, axis=-1, keepdims=True)
    lse = jnp.log(jnp.sum(jnp.exp(logits - m), axis=-1, keepdims=True)) + m
    onehot = (vocab_col == labels).astype(f32)   # all-zero rows for ignore_index=-100
    picked = jnp.sum(logits * onehot, axis=-1, keepdims=True)
    valid = (labels != -100).astype(f32)
    tot = jnp.sum((lse - picked) * valid, axis=0, keepdims=True)  # (1, 1)
    cnt = jnp.sum(valid, axis=0, keepdims=True)                   # (1, 1)
    ce_out_ref[0] = jnp.concatenate([tot, cnt], axis=1)           # (1, 2)


# ------------------------------ wrapper ---------------------------------
def pallas_vilt_fused(patches, text_ids_v, labels_v, fused_w):
    bb = patches.shape[0]
    weight_list = [fused_w[k] for k in WEIGHT_KEYS]

    in_specs = [
        pl.BlockSpec((1, N_PATCH, PATCH_DIM), lambda b: (b, 0, 0)),
        pl.BlockSpec((1, T_TEXT, 1), lambda b: (b, 0, 0)),
        pl.BlockSpec((1, T_TEXT, 1), lambda b: (b, 0, 0)),
    ] + [pl.BlockSpec(a.shape, lambda b, n=a.ndim: (0,) * n) for a in weight_list]

    out_specs = (
        pl.BlockSpec((1, SEQ, DIM), lambda b: (b, 0, 0)),
        pl.BlockSpec((1, 1, DIM), lambda b: (b, 0, 0)),
        pl.BlockSpec((1, T_TEXT, VOCAB), lambda b: (b, 0, 0)),
        pl.BlockSpec((1, 1, 2), lambda b: (b, 0, 0)),
    )
    out_shape = (
        jax.ShapeDtypeStruct((bb, SEQ, DIM), jnp.float32),
        jax.ShapeDtypeStruct((bb, 1, DIM), jnp.float32),
        jax.ShapeDtypeStruct((bb, T_TEXT, VOCAB), jnp.float32),
        jax.ShapeDtypeStruct((bb, 1, 2), jnp.float32),
    )
    return pl.pallas_call(
        _vilt_fused_kernel,
        grid=(bb,),
        in_specs=in_specs,
        out_specs=out_specs,
        out_shape=out_shape,
        compiler_params=pltpu.CompilerParams(
            dimension_semantics=("parallel",)),   # batch sharded across v7x TCs
    )(patches, text_ids_v, labels_v, *weight_list)


# --------------------------- parameters ---------------------------------
def init_params(key):
    keys = jax.random.split(key, 32)
    ki = iter(keys)

    def nrm(shape):
        return INIT_STD * jax.random.normal(next(ki), shape, dtype=jnp.float32)

    ones = lambda s: jnp.ones(s, jnp.float32)
    zeros = lambda s: jnp.zeros(s, jnp.float32)

    params = {
        # BertEmbeddings
        'word_emb': nrm((VOCAB, DIM)),
        'pos_emb': nrm((T_TEXT, DIM)),
        'tok_type_emb': nrm((2, DIM)),
        'text_ln_g': ones((1, DIM)), 'text_ln_b': zeros((1, DIM)),
        # ViTEmbedding (patch conv as matmul + cls token + pos embed)
        'patch_w': nrm((PATCH_DIM, DIM)),
        'patch_b': zeros((1, DIM)),
        'cls_token': zeros((1, 1, DIM)),
        'vit_pos_emb': nrm((1, N_IMG_TOK, DIM)),
        # final encoder LayerNorm
        'final_ln_g': ones((1, DIM)), 'final_ln_b': zeros((1, DIM)),
        # Pooler
        'pool_w': nrm((DIM, DIM)), 'pool_b': zeros((1, DIM)),
        # MLMHead (transform dense + LN + decoder)
        'mlm_wt': nrm((DIM, DIM)), 'mlm_bt': zeros((1, DIM)),
        'mlm_ln_g': ones((1, DIM)), 'mlm_ln_b': zeros((1, DIM)),
        'mlm_wd': nrm((DIM, VOCAB)), 'mlm_bd': zeros((1, VOCAB)),
        'blocks': [],
    }
    for _ in range(DEPTH):
        params['blocks'].append({
            'ln1_g': ones((1, DIM)), 'ln1_b': zeros((1, DIM)),
            'wqkv': nrm((DIM, 3 * DIM)), 'bqkv': zeros((1, 3 * DIM)),
            'wproj': nrm((DIM, DIM)), 'bproj': zeros((1, DIM)),
            'ln2_g': ones((1, DIM)), 'ln2_b': zeros((1, DIM)),
            'w1': nrm((DIM, FFN)), 'b1': zeros((1, FFN)),
            'w2': nrm((FFN, DIM)), 'b2': zeros((1, DIM)),
        })
    return params


def build_fused_weights(params):
    """Param-only re-packing (constant folding in glue): precombine biases,
    split the QKV projection, stack per-layer weights along a DEPTH axis."""
    blocks = params['blocks']
    stack = lambda k: jnp.stack([blk[k] for blk in blocks], axis=0)
    wqkv = stack('wqkv')          # (DEPTH, D, 3D)
    bqkv = stack('bqkv')          # (DEPTH, 1, 3D)
    return {
        'word_emb': params['word_emb'],
        'patch_w': params['patch_w'],
        'patch_bias': params['patch_b'] + params['vit_pos_emb'][0, 1:],        # (N_PATCH, D)
        'img_cls_row': params['cls_token'][0] + params['vit_pos_emb'][0, 0:1],  # (1, D)
        'text_bias': params['pos_emb'] + params['tok_type_emb'][0:1],          # (T, D)
        'text_ln_g': params['text_ln_g'], 'text_ln_b': params['text_ln_b'],
        'blk_ln1_g': stack('ln1_g'), 'blk_ln1_b': stack('ln1_b'),
        'blk_wq': wqkv[:, :, 0 * DIM:1 * DIM], 'blk_bq': bqkv[:, :, 0 * DIM:1 * DIM],
        'blk_wk': wqkv[:, :, 1 * DIM:2 * DIM], 'blk_bk': bqkv[:, :, 1 * DIM:2 * DIM],
        'blk_wv': wqkv[:, :, 2 * DIM:3 * DIM], 'blk_bv': bqkv[:, :, 2 * DIM:3 * DIM],
        'blk_wproj': stack('wproj'), 'blk_bproj': stack('bproj'),
        'blk_ln2_g': stack('ln2_g'), 'blk_ln2_b': stack('ln2_b'),
        'blk_w1': stack('w1'), 'blk_b1': stack('b1'),
        'blk_w2': stack('w2'), 'blk_b2': stack('b2'),
        'final_ln_g': params['final_ln_g'], 'final_ln_b': params['final_ln_b'],
        'pool_w': params['pool_w'], 'pool_b': params['pool_b'],
        'mlm_wt': params['mlm_wt'], 'mlm_bt': params['mlm_bt'],
        'mlm_ln_g': params['mlm_ln_g'], 'mlm_ln_b': params['mlm_ln_b'],
        'mlm_wd': params['mlm_wd'], 'mlm_bd': params['mlm_bd'],
    }


# ----------------------------- forward ----------------------------------
def vilt_forward(params, img, text_ids, text_labels):
    bb, c, h, w = img.shape
    ps = PATCH
    nh, nw = h // ps, w // ps

    # patch unfold (pure layout; matches Conv2d(kernel=stride=ps) weight flattening)
    patches = img.reshape(bb, c, nh, ps, nw, ps).transpose(0, 2, 4, 1, 3, 5)
    patches = patches.reshape(bb, nh * nw, c * ps * ps)

    text_ids_v = text_ids.reshape(bb, T_TEXT, 1).astype(jnp.int32)
    labels_v = text_labels.reshape(bb, T_TEXT, 1).astype(jnp.int32)

    fused_w = build_fused_weights(params)
    x, cls_pack, mlm_logits, ce_parts = pallas_vilt_fused(
        patches, text_ids_v, labels_v, fused_w)

    # masked mean CE: sum of per-batch (sum, count) partials; NaN if every label
    # is -100, matching torch mean-reduction behaviour with all-ignored labels.
    mlm_loss = jnp.sum(ce_parts[:, 0, 0]) / jnp.sum(ce_parts[:, 0, 1])

    text_feats = x[:, :T_TEXT]
    image_feats = x[:, T_TEXT:]
    cls_feats = cls_pack[:, 0]

    return {
        'mlm_loss': mlm_loss,
        'mlm_logits': mlm_logits,
        'mlm_labels': text_labels,
        'mlm_ids': text_ids,
        'text_feats': text_feats,
        'image_feats': image_feats,
        'cls_feats': cls_feats,
        'raw_cls_feats': x[:, 0],
    }


# ------------------------------- main ------------------------------------
if __name__ == "__main__":
    key = jax.random.PRNGKey(0)
    kp, k_img, k_ids, k_lab, k_msk = jax.random.split(key, 5)

    params = init_params(kp)
    img = jax.random.normal(k_img, (B, IN_CHANS, IMG, IMG), dtype=jnp.float32)
    text_ids = jax.random.randint(k_ids, (B, T_TEXT), 0, VOCAB, dtype=jnp.int32)
    raw_labels = jax.random.randint(k_lab, (B, T_TEXT), 0, VOCAB, dtype=jnp.int32)
    mask = jax.random.bernoulli(k_msk, 0.5, (B, T_TEXT))
    mask = mask.at[0, 0].set(True)   # ensure at least one non-ignored label
    text_labels = jnp.where(mask, raw_labels, jnp.full_like(raw_labels, -100))

    out = jax.jit(vilt_forward)(params, img, text_ids, text_labels)
    jax.block_until_ready(out)

    assert out['mlm_logits'].shape == (B, T_TEXT, VOCAB)
    assert out['text_feats'].shape == (B, T_TEXT, DIM)
    assert out['image_feats'].shape == (B, N_IMG_TOK, DIM)
    assert out['cls_feats'].shape == (B, DIM)
    assert out['raw_cls_feats'].shape == (B, DIM)
    assert bool(jnp.isfinite(out['mlm_loss']))
    print("KERNEL_OK")
</pallas_src>

<mosaic_0001>
module attributes {stable_mosaic.version = 11 : i64} {
  func.func @_vilt_fused_kernel(%arg0: i32, %arg1: memref<1x4x192xf32, #tpu.memory_space<vmem>>, %arg2: memref<1x8x1xi32, #tpu.memory_space<vmem>>, %arg3: memref<1x8x1xi32, #tpu.memory_space<vmem>>, %arg4: memref<64x32xf32, #tpu.memory_space<vmem>>, %arg5: memref<192x32xf32, #tpu.memory_space<vmem>>, %arg6: memref<4x32xf32, #tpu.memory_space<vmem>>, %arg7: memref<1x32xf32, #tpu.memory_space<vmem>>, %arg8: memref<8x32xf32, #tpu.memory_space<vmem>>, %arg9: memref<1x32xf32, #tpu.memory_space<vmem>>, %arg10: memref<1x32xf32, #tpu.memory_space<vmem>>, %arg11: memref<2x1x32xf32, #tpu.memory_space<vmem>>, %arg12: memref<2x1x32xf32, #tpu.memory_space<vmem>>, %arg13: memref<2x32x32xf32, #tpu.memory_space<vmem>>, %arg14: memref<2x1x32xf32, #tpu.memory_space<vmem>>, %arg15: memref<2x32x32xf32, #tpu.memory_space<vmem>>, %arg16: memref<2x1x32xf32, #tpu.memory_space<vmem>>, %arg17: memref<2x32x32xf32, #tpu.memory_space<vmem>>, %arg18: memref<2x1x32xf32, #tpu.memory_space<vmem>>, %arg19: memref<2x32x32xf32, #tpu.memory_space<vmem>>, %arg20: memref<2x1x32xf32, #tpu.memory_space<vmem>>, %arg21: memref<2x1x32xf32, #tpu.memory_space<vmem>>, %arg22: memref<2x1x32xf32, #tpu.memory_space<vmem>>, %arg23: memref<2x32x128xf32, #tpu.memory_space<vmem>>, %arg24: memref<2x1x128xf32, #tpu.memory_space<vmem>>, %arg25: memref<2x128x32xf32, #tpu.memory_space<vmem>>, %arg26: memref<2x1x32xf32, #tpu.memory_space<vmem>>, %arg27: memref<1x32xf32, #tpu.memory_space<vmem>>, %arg28: memref<1x32xf32, #tpu.memory_space<vmem>>, %arg29: memref<32x32xf32, #tpu.memory_space<vmem>>, %arg30: memref<1x32xf32, #tpu.memory_space<vmem>>, %arg31: memref<32x32xf32, #tpu.memory_space<vmem>>, %arg32: memref<1x32xf32, #tpu.memory_space<vmem>>, %arg33: memref<1x32xf32, #tpu.memory_space<vmem>>, %arg34: memref<1x32xf32, #tpu.memory_space<vmem>>, %arg35: memref<32x64xf32, #tpu.memory_space<vmem>>, %arg36: memref<1x64xf32, #tpu.memory_space<vmem>>, %arg37: memref<1x13x32xf32, #tpu.memory_space<vmem>>, %arg38: memref<1x1x32xf32, #tpu.memory_space<vmem>>, %arg39: memref<1x8x64xf32, #tpu.memory_space<vmem>>, %arg40: memref<1x1x2xf32, #tpu.memory_space<vmem>>) attributes {dimension_semantics = [#tpu.dimension_semantics<parallel>], iteration_bounds = array<i64: 2>, scalar_prefetch = 0 : i64, scratch_operands = 0 : i64, tpu.core_type = #tpu.core_type<tc>, window_params = [{transform_indices = @transform_0, window_bounds = array<i64: 1, 4, 192>}, {transform_indices = @transform_1, window_bounds = array<i64: 1, 8, 1>}, {transform_indices = @transform_2, window_bounds = array<i64: 1, 8, 1>}, {pipeline_mode = #tpu.pipeline_mode<synchronous>, transform_indices = @transform_3, window_bounds = array<i64: 64, 32>}, {pipeline_mode = #tpu.pipeline_mode<synchronous>, transform_indices = @transform_4, window_bounds = array<i64: 192, 32>}, {pipeline_mode = #tpu.pipeline_mode<synchronous>, transform_indices = @transform_5, window_bounds = array<i64: 4, 32>}, {pipeline_mode = #tpu.pipeline_mode<synchronous>, transform_indices = @transform_6, window_bounds = array<i64: 1, 32>}, {pipeline_mode = #tpu.pipeline_mode<synchronous>, transform_indices = @transform_7, window_bounds = array<i64: 8, 32>}, {pipeline_mode = #tpu.pipeline_mode<synchronous>, transform_indices = @transform_8, window_bounds = array<i64: 1, 32>}, {pipeline_mode = #tpu.pipeline_mode<synchronous>, transform_indices = @transform_9, window_bounds = array<i64: 1, 32>}, {pipeline_mode = #tpu.pipeline_mode<synchronous>, transform_indices = @transform_10, window_bounds = array<i64: 2, 1, 32>}, {pipeline_mode = #tpu.pipeline_mode<synchronous>, transform_indices = @transform_11, window_bounds = array<i64: 2, 1, 32>}, {pipeline_mode = #tpu.pipeline_mode<synchronous>, transform_indices = @transform_12, window_bounds = array<i64: 2, 32, 32>}, {pipeline_mode = #tpu.pipeline_mode<synchronous>, transform_indices = @transform_13, window_bounds = array<i64: 2, 1, 32>}, {pipeline_mode = #tpu.pipeline_mode<synchronous>, transform_indices = @transform_14, window_bounds = array<i64: 2, 32, 32>}, {pipeline_mode = #tpu.pipeline_mode<synchronous>, transform_indices = @transform_15, window_bounds = array<i64: 2, 1, 32>}, {pipeline_mode = #tpu.pipeline_mode<synchronous>, transform_indices = @transform_16, window_bounds = array<i64: 2, 32, 32>}, {pipeline_mode = #tpu.pipeline_mode<synchronous>, transform_indices = @transform_17, window_bounds = array<i64: 2, 1, 32>}, {pipeline_mode = #tpu.pipeline_mode<synchronous>, transform_indices = @transform_18, window_bounds = array<i64: 2, 32, 32>}, {pipeline_mode = #tpu.pipeline_mode<synchronous>, transform_indices = @transform_19, window_bounds = array<i64: 2, 1, 32>}, {pipeline_mode = #tpu.pipeline_mode<synchronous>, transform_indices = @transform_20, window_bounds = array<i64: 2, 1, 32>}, {pipeline_mode = #tpu.pipeline_mode<synchronous>, transform_indices = @transform_21, window_bounds = array<i64: 2, 1, 32>}, {pipeline_mode = #tpu.pipeline_mode<synchronous>, transform_indices = @transform_22, window_bounds = array<i64: 2, 32, 128>}, {pipeline_mode = #tpu.pipeline_mode<synchronous>, transform_indices = @transform_23, window_bounds = array<i64: 2, 1, 128>}, {pipeline_mode = #tpu.pipeline_mode<synchronous>, transform_indices = @transform_24, window_bounds = array<i64: 2, 128, 32>}, {pipeline_mode = #tpu.pipeline_mode<synchronous>, transform_indices = @transform_25, window_bounds = array<i64: 2, 1, 32>}, {pipeline_mode = #tpu.pipeline_mode<synchronous>, transform_indices = @transform_26, window_bounds = array<i64: 1, 32>}, {pipeline_mode = #tpu.pipeline_mode<synchronous>, transform_indices = @transform_27, window_bounds = array<i64: 1, 32>}, {pipeline_mode = #tpu.pipeline_mode<synchronous>, transform_indices = @transform_28, window_bounds = array<i64: 32, 32>}, {pipeline_mode = #tpu.pipeline_mode<synchronous>, transform_indices = @transform_29, window_bounds = array<i64: 1, 32>}, {pipeline_mode = #tpu.pipeline_mode<synchronous>, transform_indices = @transform_30, window_bounds = array<i64: 32, 32>}, {pipeline_mode = #tpu.pipeline_mode<synchronous>, transform_indices = @transform_31, window_bounds = array<i64: 1, 32>}, {pipeline_mode = #tpu.pipeline_mode<synchronous>, transform_indices = @transform_32, window_bounds = array<i64: 1, 32>}, {pipeline_mode = #tpu.pipeline_mode<synchronous>, transform_indices = @transform_33, window_bounds = array<i64: 1, 32>}, {pipeline_mode = #tpu.pipeline_mode<synchronous>, transform_indices = @transform_34, window_bounds = array<i64: 32, 64>}, {pipeline_mode = #tpu.pipeline_mode<synchronous>, transform_indices = @transform_35, window_bounds = array<i64: 1, 64>}, {transform_indices = @transform_36, window_bounds = array<i64: 1, 13, 32>}, {transform_indices = @transform_37, window_bounds = array<i64: 1, 1, 32>}, {transform_indices = @transform_38, window_bounds = array<i64: 1, 8, 64>}, {transform_indices = @transform_39, window_bounds = array<i64: 1, 1, 2>}]} {
    %0 = tpu.iota {dimensions = array<i32: 1>} : vector<8x64xi32>
    %1 = tpu.iota {dimensions = array<i32: 1>} : vector<1x32xi32>
    %c0_i32 = arith.constant 0 : i32
    %2 = vector.broadcast %c0_i32 : i32 to vector<1x32xi32>
    %3 = arith.cmpi sge, %1, %2 : vector<1x32xi32>
    %c8_i32 = arith.constant 8 : i32
    %4 = vector.broadcast %c8_i32 : i32 to vector<1x32xi32>
    %5 = arith.cmpi slt, %1, %4 : vector<1x32xi32>
    %6 = arith.andi %3, %5 : vector<1x32xi1>
    %7 = arith.extui %6 : vector<1x32xi1> to vector<1x32xi32>
    %8 = arith.sitofp %7 : vector<1x32xi32> to vector<1x32xf32>
    %c8_i32_0 = arith.constant 8 : i32
    %9 = vector.broadcast %c8_i32_0 : i32 to vector<1x32xi32>
    %10 = arith.cmpi sge, %1, %9 : vector<1x32xi32>
    %c16_i32 = arith.constant 16 : i32
    %11 = vector.broadcast %c16_i32 : i32 to vector<1x32xi32>
    %12 = arith.cmpi slt, %1, %11 : vector<1x32xi32>
    %13 = arith.andi %10, %12 : vector<1x32xi1>
    %14 = arith.extui %13 : vector<1x32xi1> to vector<1x32xi32>
    %15 = arith.sitofp %14 : vector<1x32xi32> to vector<1x32xf32>
    %c16_i32_1 = arith.constant 16 : i32
    %16 = vector.broadcast %c16_i32_1 : i32 to vector<1x32xi32>
    %17 = arith.cmpi sge, %1, %16 : vector<1x32xi32>
    %c24_i32 = arith.constant 24 : i32
    %18 = vector.broadcast %c24_i32 : i32 to vector<1x32xi32>
    %19 = arith.cmpi slt, %1, %18 : vector<1x32xi32>
    %20 = arith.andi %17, %19 : vector<1x32xi1>
    %21 = arith.extui %20 : vector<1x32xi1> to vector<1x32xi32>
    %22 = arith.sitofp %21 : vector<1x32xi32> to vector<1x32xf32>
    %c24_i32_2 = arith.constant 24 : i32
    %23 = vector.broadcast %c24_i32_2 : i32 to vector<1x32xi32>
    %24 = arith.cmpi sge, %1, %23 : vector<1x32xi32>
    %c32_i32 = arith.constant 32 : i32
    %25 = vector.broadcast %c32_i32 : i32 to vector<1x32xi32>
    %26 = arith.cmpi slt, %1, %25 : vector<1x32xi32>
    %27 = arith.andi %24, %26 : vector<1x32xi1>
    %28 = arith.extui %27 : vector<1x32xi1> to vector<1x32xi32>
    %29 = arith.sitofp %28 : vector<1x32xi32> to vector<1x32xf32>
    %c0 = arith.constant 0 : index
    %c0_3 = arith.constant 0 : index
    %c0_4 = arith.constant 0 : index
    %30 = vector.load %arg1[%c0, %c0_3, %c0_4] : memref<1x4x192xf32, #tpu.memory_space<vmem>>, vector<1x4x192xf32>
    %31 = vector.shape_cast %30 : vector<1x4x192xf32> to vector<4x192xf32>
    %c0_5 = arith.constant 0 : index
    %c0_6 = arith.constant 0 : index
    %32 = vector.load %arg5[%c0_5, %c0_6] : memref<192x32xf32, #tpu.memory_space<vmem>>, vector<192x32xf32>
    %cst = arith.constant dense<0.000000e+00> : vector<4x32xf32>
    %33 = tpu.matmul %31, %32, %cst {dimension_numbers = #tpu.dot_dimension_numbers<[1], [0], [0], [1], [0, 0, 1, 1], [], []>} : vector<4x192xf32>, vector<192x32xf32>, vector<4x32xf32> -> vector<4x32xf32>
    %c0_7 = arith.constant 0 : index
    %c0_8 = arith.constant 0 : index
    %34 = vector.load %arg6[%c0_7, %c0_8] : memref<4x32xf32, #tpu.memory_space<vmem>>, vector<4x32xf32>
    %35 = arith.addf %33, %34 : vector<4x32xf32>
    %c0_9 = arith.constant 0 : index
    %c0_10 = arith.constant 0 : index
    %c0_11 = arith.constant 0 : index
    %36 = vector.load %arg2[%c0_9, %c0_10, %c0_11] : memref<1x8x1xi32, #tpu.memory_space<vmem>>, vector<1x8x1xi32>
    %37 = vector.shape_cast %36 : vector<1x8x1xi32> to vector<8x1xi32>
    %38 = vector.broadcast %37 : vector<8x1xi32> to vector<8x64xi32>
    %39 = arith.cmpi eq, %0, %38 : vector<8x64xi32>
    %40 = arith.extui %39 : vector<8x64xi1> to vector<8x64xi32>
    %41 = arith.sitofp %40 : vector<8x64xi32> to vector<8x64xf32>
    %c0_12 = arith.constant 0 : index
    %c0_13 = arith.constant 0 : index
    %42 = vector.load %arg4[%c0_12, %c0_13] : memref<64x32xf32, #tpu.memory_space<vmem>>, vector<64x32xf32>
    %cst_14 = arith.constant dense<0.000000e+00> : vector<8x32xf32>
    %43 = tpu.matmul %41, %42, %cst_14 {dimension_numbers = #tpu.dot_dimension_numbers<[1], [0], [0], [1], [0, 0, 1, 1], [], []>} : vector<8x64xf32>, vector<64x32xf32>, vector<8x32xf32> -> vector<8x32xf32>
    %c0_15 = arith.constant 0 : index
    %c0_16 = arith.constant 0 : index
    %44 = vector.load %arg8[%c0_15, %c0_16] : memref<8x32xf32, #tpu.memory_space<vmem>>, vector<8x32xf32>
    %45 = arith.addf %43, %44 : vector<8x32xf32>
    %c0_17 = arith.constant 0 : index
    %c0_18 = arith.constant 0 : index
    %46 = vector.load %arg9[%c0_17, %c0_18] : memref<1x32xf32, #tpu.memory_space<vmem>>, vector<1x32xf32>
    %c0_19 = arith.constant 0 : index
    %c0_20 = arith.constant 0 : index
    %47 = vector.load %arg10[%c0_19, %c0_20] : memref<1x32xf32, #tpu.memory_space<vmem>>, vector<1x32xf32>
    %cst_21 = arith.constant dense<0.000000e+00> : vector<8xf32>
    %48 = vector.multi_reduction <add>, %45, %cst_21 [1] : vector<8x32xf32> to vector<8xf32>
    %49 = vector.shape_cast %48 : vector<8xf32> to vector<8x1xf32>
    %cst_22 = arith.constant 3.200000e+01 : f32
    %50 = vector.broadcast %cst_22 : f32 to vector<8x1xf32>
    %51 = arith.divf %49, %50 : vector<8x1xf32>
    %52 = vector.broadcast %51 : vector<8x1xf32> to vector<8x32xf32>
    %53 = arith.subf %45, %52 : vector<8x32xf32>
    %54 = arith.mulf %53, %53 : vector<8x32xf32>
    %cst_23 = arith.constant dense<0.000000e+00> : vector<8xf32>
    %55 = vector.multi_reduction <add>, %54, %cst_23 [1] : vector<8x32xf32> to vector<8xf32>
    %56 = vector.shape_cast %55 : vector<8xf32> to vector<8x1xf32>
    %cst_24 = arith.constant 3.200000e+01 : f32
    %57 = vector.broadcast %cst_24 : f32 to vector<8x1xf32>
    %58 = arith.divf %56, %57 : vector<8x1xf32>
    %59 = vector.broadcast %51 : vector<8x1xf32> to vector<8x32xf32>
    %60 = arith.subf %45, %59 : vector<8x32xf32>
    %cst_25 = arith.constant 9.99999996E-13 : f32
    %61 = vector.broadcast %cst_25 : f32 to vector<8x1xf32>
    %62 = arith.addf %58, %61 : vector<8x1xf32>
    %63 = math.rsqrt %62 : vector<8x1xf32>
    %64 = vector.broadcast %63 : vector<8x1xf32> to vector<8x32xf32>
    %65 = arith.mulf %60, %64 : vector<8x32xf32>
    %66 = vector.broadcast %46 : vector<1x32xf32> to vector<8x32xf32>
    %67 = arith.mulf %65, %66 : vector<8x32xf32>
    %68 = vector.broadcast %47 : vector<1x32xf32> to vector<8x32xf32>
    %69 = arith.addf %67, %68 : vector<8x32xf32>
    %c0_26 = arith.constant 0 : index
    %c0_27 = arith.constant 0 : index
    %70 = vector.load %arg7[%c0_26, %c0_27] : memref<1x32xf32, #tpu.memory_space<vmem>>, vector<1x32xf32>
    %71 = tpu.concatenate %69, %70, %35 in 0 : vector<8x32xf32>, vector<1x32xf32>, vector<4x32xf32> -> vector<13x32xf32>
    %c0_28 = arith.constant 0 : index
    %c0_29 = arith.constant 0 : index
    %c0_30 = arith.constant 0 : index
    %72 = vector.load %arg11[%c0_28, %c0_29, %c0_30] : memref<2x1x32xf32, #tpu.memory_space<vmem>>, vector<1x1x32xf32>
    %73 = vector.shape_cast %72 : vector<1x1x32xf32> to vector<1x32xf32>
    %c0_31 = arith.constant 0 : index
    %c0_32 = arith.constant 0 : index
    %c0_33 = arith.constant 0 : index
    %74 = vector.load %arg12[%c0_31, %c0_32, %c0_33] : memref<2x1x32xf32, #tpu.memory_space<vmem>>, vector<1x1x32xf32>
    %75 = vector.shape_cast %74 : vector<1x1x32xf32> to vector<1x32xf32>
    %cst_34 = arith.constant dense<0.000000e+00> : vector<13xf32>
    %76 = vector.multi_reduction <add>, %71, %cst_34 [1] : vector<13x32xf32> to vector<13xf32>
    %77 = vector.shape_cast %76 : vector<13xf32> to vector<13x1xf32>
    %cst_35 = arith.constant 3.200000e+01 : f32
    %78 = vector.broadcast %cst_35 : f32 to vector<13x1xf32>
    %79 = arith.divf %77, %78 : vector<13x1xf32>
    %80 = vector.broadcast %79 : vector<13x1xf32> to vector<13x32xf32>
    %81 = arith.subf %71, %80 : vector<13x32xf32>
    %82 = arith.mulf %81, %81 : vector<13x32xf32>
    %cst_36 = arith.constant dense<0.000000e+00> : vector<13xf32>
    %83 = vector.multi_reduction <add>, %82, %cst_36 [1] : vector<13x32xf32> to vector<13xf32>
    %84 = vector.shape_cast %83 : vector<13xf32> to vector<13x1xf32>
    %cst_37 = arith.constant 3.200000e+01 : f32
    %85 = vector.broadcast %cst_37 : f32 to vector<13x1xf32>
    %86 = arith.divf %84, %85 : vector<13x1xf32>
    %87 = vector.broadcast %79 : vector<13x1xf32> to vector<13x32xf32>
    %88 = arith.subf %71, %87 : vector<13x32xf32>
    %cst_38 = arith.constant 9.99999997E-7 : f32
    %89 = vector.broadcast %cst_38 : f32 to vector<13x1xf32>
    %90 = arith.addf %86, %89 : vector<13x1xf32>
    %91 = math.rsqrt %90 : vector<13x1xf32>
    %92 = vector.broadcast %91 : vector<13x1xf32> to vector<13x32xf32>
    %93 = arith.mulf %88, %92 : vector<13x32xf32>
    %94 = vector.broadcast %73 : vector<1x32xf32> to vector<13x32xf32>
    %95 = arith.mulf %93, %94 : vector<13x32xf32>
    %96 = vector.broadcast %75 : vector<1x32xf32> to vector<13x32xf32>
    %97 = arith.addf %95, %96 : vector<13x32xf32>
    %c0_39 = arith.constant 0 : index
    %c0_40 = arith.constant 0 : index
    %c0_41 = arith.constant 0 : index
    %98 = vector.load %arg13[%c0_39, %c0_40, %c0_41] : memref<2x32x32xf32, #tpu.memory_space<vmem>>, vector<1x32x32xf32>
    %99 = vector.shape_cast %98 : vector<1x32x32xf32> to vector<32x32xf32>
    %cst_42 = arith.constant dense<0.000000e+00> : vector<13x32xf32>
    %100 = tpu.matmul %97, %99, %cst_42 {dimension_numbers = #tpu.dot_dimension_numbers<[1], [0], [0], [1], [0, 0, 1, 1], [], []>} : vector<13x32xf32>, vector<32x32xf32>, vector<13x32xf32> -> vector<13x32xf32>
    %c0_43 = arith.constant 0 : index
    %c0_44 = arith.constant 0 : index
    %c0_45 = arith.constant 0 : index
    %101 = vector.load %arg14[%c0_43, %c0_44, %c0_45] : memref<2x1x32xf32, #tpu.memory_space<vmem>>, vector<1x1x32xf32>
    %102 = vector.shape_cast %101 : vector<1x1x32xf32> to vector<1x32xf32>
    %103 = vector.broadcast %102 : vector<1x32xf32> to vector<13x32xf32>
    %104 = arith.addf %100, %103 : vector<13x32xf32>
    %c0_46 = arith.constant 0 : index
    %c0_47 = arith.constant 0 : index
    %c0_48 = arith.constant 0 : index
    %105 = vector.load %arg15[%c0_46, %c0_47, %c0_48] : memref<2x32x32xf32, #tpu.memory_space<vmem>>, vector<1x32x32xf32>
    %106 = vector.shape_cast %105 : vector<1x32x32xf32> to vector<32x32xf32>
    %cst_49 = arith.constant dense<0.000000e+00> : vector<13x32xf32>
    %107 = tpu.matmul %97, %106, %cst_49 {dimension_numbers = #tpu.dot_dimension_numbers<[1], [0], [0], [1], [0, 0, 1, 1], [], []>} : vector<13x32xf32>, vector<32x32xf32>, vector<13x32xf32> -> vector<13x32xf32>
    %c0_50 = arith.constant 0 : index
    %c0_51 = arith.constant 0 : index
    %c0_52 = arith.constant 0 : index
    %108 = vector.load %arg16[%c0_50, %c0_51, %c0_52] : memref<2x1x32xf32, #tpu.memory_space<vmem>>, vector<1x1x32xf32>
    %109 = vector.shape_cast %108 : vector<1x1x32xf32> to vector<1x32xf32>
    %110 = vector.broadcast %109 : vector<1x32xf32> to vector<13x32xf32>
    %111 = arith.addf %107, %110 : vector<13x32xf32>
    %c0_53 = arith.constant 0 : index
    %c0_54 = arith.constant 0 : index
    %c0_55 = arith.constant 0 : index
    %112 = vector.load %arg17[%c0_53, %c0_54, %c0_55] : memref<2x32x32xf32, #tpu.memory_space<vmem>>, vector<1x32x32xf32>
    %113 = vector.shape_cast %112 : vector<1x32x32xf32> to vector<32x32xf32>
    %cst_56 = arith.constant dense<0.000000e+00> : vector<13x32xf32>
    %114 = tpu.matmul %97, %113, %cst_56 {dimension_numbers = #tpu.dot_dimension_numbers<[1], [0], [0], [1], [0, 0, 1, 1], [], []>} : vector<13x32xf32>, vector<32x32xf32>, vector<13x32xf32> -> vector<13x32xf32>
    %c0_57 = arith.constant 0 : index
    %c0_58 = arith.constant 0 : index
    %c0_59 = arith.constant 0 : index
    %115 = vector.load %arg18[%c0_57, %c0_58, %c0_59] : memref<2x1x32xf32, #tpu.memory_space<vmem>>, vector<1x1x32xf32>
    %116 = vector.shape_cast %115 : vector<1x1x32xf32> to vector<1x32xf32>
    %117 = vector.broadcast %116 : vector<1x32xf32> to vector<13x32xf32>
    %118 = arith.addf %114, %117 : vector<13x32xf32>
    %cst_60 = arith.constant 0.000000e+00 : f32
    %119 = vector.broadcast %cst_60 : f32 to vector<13x32xf32>
    %120 = vector.broadcast %8 : vector<1x32xf32> to vector<13x32xf32>
    %121 = arith.mulf %104, %120 : vector<13x32xf32>
    %cst_61 = arith.constant dense<0.000000e+00> : vector<13x13xf32>
    %122 = tpu.matmul %121, %111, %cst_61 {dimension_numbers = #tpu.dot_dimension_numbers<[1], [1], [0], [0], [0, 0, 1, 0], [], []>} : vector<13x32xf32>, vector<13x32xf32>, vector<13x13xf32> -> vector<13x13xf32>
    %cst_62 = arith.constant 0.353553385 : f32
    %123 = vector.broadcast %cst_62 : f32 to vector<13x13xf32>
    %124 = arith.mulf %122, %123 : vector<13x13xf32>
    %cst_63 = arith.constant dense<0xFF800000> : vector<13xf32>
    %125 = vector.multi_reduction <maximumf>, %124, %cst_63 [1] : vector<13x13xf32> to vector<13xf32>
    %126 = vector.shape_cast %125 : vector<13xf32> to vector<13x1xf32>
    %127 = vector.broadcast %126 : vector<13x1xf32> to vector<13x13xf32>
    %128 = arith.subf %124, %127 : vector<13x13xf32>
    %129 = math.exp %128 : vector<13x13xf32>
    %cst_64 = arith.constant dense<0.000000e+00> : vector<13xf32>
    %130 = vector.multi_reduction <add>, %129, %cst_64 [1] : vector<13x13xf32> to vector<13xf32>
    %131 = vector.shape_cast %130 : vector<13xf32> to vector<13x1xf32>
    %132 = tpu.reciprocal %131 {approx = true} : vector<13x1xf32> -> vector<13x1xf32>
    %133 = vector.broadcast %132 : vector<13x1xf32> to vector<13x13xf32>
    %134 = arith.mulf %129, %133 : vector<13x13xf32>
    %135 = vector.broadcast %8 : vector<1x32xf32> to vector<13x32xf32>
    %136 = arith.mulf %118, %135 : vector<13x32xf32>
    %cst_65 = arith.constant dense<0.000000e+00> : vector<13x32xf32>
    %137 = tpu.matmul %134, %136, %cst_65 {dimension_numbers = #tpu.dot_dimension_numbers<[1], [0], [0], [1], [0, 0, 1, 1], [], []>} : vector<13x13xf32>, vector<13x32xf32>, vector<13x32xf32> -> vector<13x32xf32>
    %138 = arith.addf %119, %137 : vector<13x32xf32>
    %139 = vector.broadcast %15 : vector<1x32xf32> to vector<13x32xf32>
    %140 = arith.mulf %104, %139 : vector<13x32xf32>
    %cst_66 = arith.constant dense<0.000000e+00> : vector<13x13xf32>
    %141 = tpu.matmul %140, %111, %cst_66 {dimension_numbers = #tpu.dot_dimension_numbers<[1], [1], [0], [0], [0, 0, 1, 0], [], []>} : vector<13x32xf32>, vector<13x32xf32>, vector<13x13xf32> -> vector<13x13xf32>
    %cst_67 = arith.constant 0.353553385 : f32
    %142 = vector.broadcast %cst_67 : f32 to vector<13x13xf32>
    %143 = arith.mulf %141, %142 : vector<13x13xf32>
    %cst_68 = arith.constant dense<0xFF800000> : vector<13xf32>
    %144 = vector.multi_reduction <maximumf>, %143, %cst_68 [1] : vector<13x13xf32> to vector<13xf32>
    %145 = vector.shape_cast %144 : vector<13xf32> to vector<13x1xf32>
    %146 = vector.broadcast %145 : vector<13x1xf32> to vector<13x13xf32>
    %147 = arith.subf %143, %146 : vector<13x13xf32>
    %148 = math.exp %147 : vector<13x13xf32>
    %cst_69 = arith.constant dense<0.000000e+00> : vector<13xf32>
    %149 = vector.multi_reduction <add>, %148, %cst_69 [1] : vector<13x13xf32> to vector<13xf32>
    %150 = vector.shape_cast %149 : vector<13xf32> to vector<13x1xf32>
    %151 = tpu.reciprocal %150 {approx = true} : vector<13x1xf32> -> vector<13x1xf32>
    %152 = vector.broadcast %151 : vector<13x1xf32> to vector<13x13xf32>
    %153 = arith.mulf %148, %152 : vector<13x13xf32>
    %154 = vector.broadcast %15 : vector<1x32xf32> to vector<13x32xf32>
    %155 = arith.mulf %118, %154 : vector<13x32xf32>
    %cst_70 = arith.constant dense<0.000000e+00> : vector<13x32xf32>
    %156 = tpu.matmul %153, %155, %cst_70 {dimension_numbers = #tpu.dot_dimension_numbers<[1], [0], [0], [1], [0, 0, 1, 1], [], []>} : vector<13x13xf32>, vector<13x32xf32>, vector<13x32xf32> -> vector<13x32xf32>
    %157 = arith.addf %138, %156 : vector<13x32xf32>
    %158 = vector.broadcast %22 : vector<1x32xf32> to vector<13x32xf32>
    %159 = arith.mulf %104, %158 : vector<13x32xf32>
    %cst_71 = arith.constant dense<0.000000e+00> : vector<13x13xf32>
    %160 = tpu.matmul %159, %111, %cst_71 {dimension_numbers = #tpu.dot_dimension_numbers<[1], [1], [0], [0], [0, 0, 1, 0], [], []>} : vector<13x32xf32>, vector<13x32xf32>, vector<13x13xf32> -> vector<13x13xf32>
    %cst_72 = arith.constant 0.353553385 : f32
    %161 = vector.broadcast %cst_72 : f32 to vector<13x13xf32>
    %162 = arith.mulf %160, %161 : vector<13x13xf32>
    %cst_73 = arith.constant dense<0xFF800000> : vector<13xf32>
    %163 = vector.multi_reduction <maximumf>, %162, %cst_73 [1] : vector<13x13xf32> to vector<13xf32>
    %164 = vector.shape_cast %163 : vector<13xf32> to vector<13x1xf32>
    %165 = vector.broadcast %164 : vector<13x1xf32> to vector<13x13xf32>
    %166 = arith.subf %162, %165 : vector<13x13xf32>
    %167 = math.exp %166 : vector<13x13xf32>
    %cst_74 = arith.constant dense<0.000000e+00> : vector<13xf32>
    %168 = vector.multi_reduction <add>, %167, %cst_74 [1] : vector<13x13xf32> to vector<13xf32>
    %169 = vector.shape_cast %168 : vector<13xf32> to vector<13x1xf32>
    %170 = tpu.reciprocal %169 {approx = true} : vector<13x1xf32> -> vector<13x1xf32>
    %171 = vector.broadcast %170 : vector<13x1xf32> to vector<13x13xf32>
    %172 = arith.mulf %167, %171 : vector<13x13xf32>
    %173 = vector.broadcast %22 : vector<1x32xf32> to vector<13x32xf32>
    %174 = arith.mulf %118, %173 : vector<13x32xf32>
    %cst_75 = arith.constant dense<0.000000e+00> : vector<13x32xf32>
    %175 = tpu.matmul %172, %174, %cst_75 {dimension_numbers = #tpu.dot_dimension_numbers<[1], [0], [0], [1], [0, 0, 1, 1], [], []>} : vector<13x13xf32>, vector<13x32xf32>, vector<13x32xf32> -> vector<13x32xf32>
    %176 = arith.addf %157, %175 : vector<13x32xf32>
    %177 = vector.broadcast %29 : vector<1x32xf32> to vector<13x32xf32>
    %178 = arith.mulf %104, %177 : vector<13x32xf32>
    %cst_76 = arith.constant dense<0.000000e+00> : vector<13x13xf32>
    %179 = tpu.matmul %178, %111, %cst_76 {dimension_numbers = #tpu.dot_dimension_numbers<[1], [1], [0], [0], [0, 0, 1, 0], [], []>} : vector<13x32xf32>, vector<13x32xf32>, vector<13x13xf32> -> vector<13x13xf32>
    %cst_77 = arith.constant 0.353553385 : f32
    %180 = vector.broadcast %cst_77 : f32 to vector<13x13xf32>
    %181 = arith.mulf %179, %180 : vector<13x13xf32>
    %cst_78 = arith.constant dense<0xFF800000> : vector<13xf32>
    %182 = vector.multi_reduction <maximumf>, %181, %cst_78 [1] : vector<13x13xf32> to vector<13xf32>
    %183 = vector.shape_cast %182 : vector<13xf32> to vector<13x1xf32>
    %184 = vector.broadcast %183 : vector<13x1xf32> to vector<13x13xf32>
    %185 = arith.subf %181, %184 : vector<13x13xf32>
    %186 = math.exp %185 : vector<13x13xf32>
    %cst_79 = arith.constant dense<0.000000e+00> : vector<13xf32>
    %187 = vector.multi_reduction <add>, %186, %cst_79 [1] : vector<13x13xf32> to vector<13xf32>
    %188 = vector.shape_cast %187 : vector<13xf32> to vector<13x1xf32>
    %189 = tpu.reciprocal %188 {approx = true} : vector<13x1xf32> -> vector<13x1xf32>
    %190 = vector.broadcast %189 : vector<13x1xf32> to vector<13x13xf32>
    %191 = arith.mulf %186, %190 : vector<13x13xf32>
    %192 = vector.broadcast %29 : vector<1x32xf32> to vector<13x32xf32>
    %193 = arith.mulf %118, %192 : vector<13x32xf32>
    %cst_80 = arith.constant dense<0.000000e+00> : vector<13x32xf32>
    %194 = tpu.matmul %191, %193, %cst_80 {dimension_numbers = #tpu.dot_dimension_numbers<[1], [0], [0], [1], [0, 0, 1, 1], [], []>} : vector<13x13xf32>, vector<13x32xf32>, vector<13x32xf32> -> vector<13x32xf32>
    %195 = arith.addf %176, %194 : vector<13x32xf32>
    %c0_81 = arith.constant 0 : index
    %c0_82 = arith.constant 0 : index
    %c0_83 = arith.constant 0 : index
    %196 = vector.load %arg19[%c0_81, %c0_82, %c0_83] : memref<2x32x32xf32, #tpu.memory_space<vmem>>, vector<1x32x32xf32>
    %197 = vector.shape_cast %196 : vector<1x32x32xf32> to vector<32x32xf32>
    %cst_84 = arith.constant dense<0.000000e+00> : vector<13x32xf32>
    %198 = tpu.matmul %195, %197, %cst_84 {dimension_numbers = #tpu.dot_dimension_numbers<[1], [0], [0], [1], [0, 0, 1, 1], [], []>} : vector<13x32xf32>, vector<32x32xf32>, vector<13x32xf32> -> vector<13x32xf32>
    %c0_85 = arith.constant 0 : index
    %c0_86 = arith.constant 0 : index
    %c0_87 = arith.constant 0 : index
    %199 = vector.load %arg20[%c0_85, %c0_86, %c0_87] : memref<2x1x32xf32, #tpu.memory_space<vmem>>, vector<1x1x32xf32>
    %200 = vector.shape_cast %199 : vector<1x1x32xf32> to vector<1x32xf32>
    %201 = vector.broadcast %200 : vector<1x32xf32> to vector<13x32xf32>
    %202 = arith.addf %198, %201 : vector<13x32xf32>
    %203 = arith.addf %71, %202 : vector<13x32xf32>
    %c0_88 = arith.constant 0 : index
    %c0_89 = arith.constant 0 : index
    %c0_90 = arith.constant 0 : index
    %204 = vector.load %arg21[%c0_88, %c0_89, %c0_90] : memref<2x1x32xf32, #tpu.memory_space<vmem>>, vector<1x1x32xf32>
    %205 = vector.shape_cast %204 : vector<1x1x32xf32> to vector<1x32xf32>
    %c0_91 = arith.constant 0 : index
    %c0_92 = arith.constant 0 : index
    %c0_93 = arith.constant 0 : index
    %206 = vector.load %arg22[%c0_91, %c0_92, %c0_93] : memref<2x1x32xf32, #tpu.memory_space<vmem>>, vector<1x1x32xf32>
    %207 = vector.shape_cast %206 : vector<1x1x32xf32> to vector<1x32xf32>
    %cst_94 = arith.constant dense<0.000000e+00> : vector<13xf32>
    %208 = vector.multi_reduction <add>, %203, %cst_94 [1] : vector<13x32xf32> to vector<13xf32>
    %209 = vector.shape_cast %208 : vector<13xf32> to vector<13x1xf32>
    %cst_95 = arith.constant 3.200000e+01 : f32
    %210 = vector.broadcast %cst_95 : f32 to vector<13x1xf32>
    %211 = arith.divf %209, %210 : vector<13x1xf32>
    %212 = vector.broadcast %211 : vector<13x1xf32> to vector<13x32xf32>
    %213 = arith.subf %203, %212 : vector<13x32xf32>
    %214 = arith.mulf %213, %213 : vector<13x32xf32>
    %cst_96 = arith.constant dense<0.000000e+00> : vector<13xf32>
    %215 = vector.multi_reduction <add>, %214, %cst_96 [1] : vector<13x32xf32> to vector<13xf32>
    %216 = vector.shape_cast %215 : vector<13xf32> to vector<13x1xf32>
    %cst_97 = arith.constant 3.200000e+01 : f32
    %217 = vector.broadcast %cst_97 : f32 to vector<13x1xf32>
    %218 = arith.divf %216, %217 : vector<13x1xf32>
    %219 = vector.broadcast %211 : vector<13x1xf32> to vector<13x32xf32>
    %220 = arith.subf %203, %219 : vector<13x32xf32>
    %cst_98 = arith.constant 9.99999997E-7 : f32
    %221 = vector.broadcast %cst_98 : f32 to vector<13x1xf32>
    %222 = arith.addf %218, %221 : vector<13x1xf32>
    %223 = math.rsqrt %222 : vector<13x1xf32>
    %224 = vector.broadcast %223 : vector<13x1xf32> to vector<13x32xf32>
    %225 = arith.mulf %220, %224 : vector<13x32xf32>
    %226 = vector.broadcast %205 : vector<1x32xf32> to vector<13x32xf32>
    %227 = arith.mulf %225, %226 : vector<13x32xf32>
    %228 = vector.broadcast %207 : vector<1x32xf32> to vector<13x32xf32>
    %229 = arith.addf %227, %228 : vector<13x32xf32>
    %c0_99 = arith.constant 0 : index
    %c0_100 = arith.constant 0 : index
    %c0_101 = arith.constant 0 : index
    %230 = vector.load %arg23[%c0_99, %c0_100, %c0_101] : memref<2x32x128xf32, #tpu.memory_space<vmem>>, vector<1x32x128xf32>
    %231 = vector.shape_cast %230 : vector<1x32x128xf32> to vector<32x128xf32>
    %cst_102 = arith.constant dense<0.000000e+00> : vector<13x128xf32>
    %232 = tpu.matmul %229, %231, %cst_102 {dimension_numbers = #tpu.dot_dimension_numbers<[1], [0], [0], [1], [0, 0, 1, 1], [], []>} : vector<13x32xf32>, vector<32x128xf32>, vector<13x128xf32> -> vector<13x128xf32>
    %c0_103 = arith.constant 0 : index
    %c0_104 = arith.constant 0 : index
    %c0_105 = arith.constant 0 : index
    %233 = vector.load %arg24[%c0_103, %c0_104, %c0_105] : memref<2x1x128xf32, #tpu.memory_space<vmem>>, vector<1x1x128xf32>
    %234 = vector.shape_cast %233 : vector<1x1x128xf32> to vector<1x128xf32>
    %235 = vector.broadcast %234 : vector<1x128xf32> to vector<13x128xf32>
    %236 = arith.addf %232, %235 : vector<13x128xf32>
    %cst_106 = arith.constant 5.000000e-01 : f32
    %237 = vector.broadcast %cst_106 : f32 to vector<13x128xf32>
    %238 = arith.mulf %237, %236 : vector<13x128xf32>
    %cst_107 = arith.constant 4.471500e-02 : f32
    %239 = vector.broadcast %cst_107 : f32 to vector<13x128xf32>
    %240 = arith.mulf %239, %236 : vector<13x128xf32>
    %241 = arith.mulf %240, %236 : vector<13x128xf32>
    %242 = arith.mulf %241, %236 : vector<13x128xf32>
    %243 = arith.addf %236, %242 : vector<13x128xf32>
    %cst_108 = arith.constant 0.797884583 : f32
    %244 = vector.broadcast %cst_108 : f32 to vector<13x128xf32>
    %245 = arith.mulf %244, %243 : vector<13x128xf32>
    %246 = math.tanh %245 : vector<13x128xf32>
    %cst_109 = arith.constant 1.000000e+00 : f32
    %247 = vector.broadcast %cst_109 : f32 to vector<13x128xf32>
    %248 = arith.addf %247, %246 : vector<13x128xf32>
    %249 = arith.mulf %238, %248 : vector<13x128xf32>
    %c0_110 = arith.constant 0 : index
    %c0_111 = arith.constant 0 : index
    %c0_112 = arith.constant 0 : index
    %250 = vector.load %arg25[%c0_110, %c0_111, %c0_112] : memref<2x128x32xf32, #tpu.memory_space<vmem>>, vector<1x128x32xf32>
    %251 = vector.shape_cast %250 : vector<1x128x32xf32> to vector<128x32xf32>
    %cst_113 = arith.constant dense<0.000000e+00> : vector<13x32xf32>
    %252 = tpu.matmul %249, %251, %cst_113 {dimension_numbers = #tpu.dot_dimension_numbers<[1], [0], [0], [1], [0, 0, 1, 1], [], []>} : vector<13x128xf32>, vector<128x32xf32>, vector<13x32xf32> -> vector<13x32xf32>
    %c0_114 = arith.constant 0 : index
    %c0_115 = arith.constant 0 : index
    %c0_116 = arith.constant 0 : index
    %253 = vector.load %arg26[%c0_114, %c0_115, %c0_116] : memref<2x1x32xf32, #tpu.memory_space<vmem>>, vector<1x1x32xf32>
    %254 = vector.shape_cast %253 : vector<1x1x32xf32> to vector<1x32xf32>
    %255 = vector.broadcast %254 : vector<1x32xf32> to vector<13x32xf32>
    %256 = arith.addf %252, %255 : vector<13x32xf32>
    %257 = arith.addf %203, %256 : vector<13x32xf32>
    %c1 = arith.constant 1 : index
    %c0_117 = arith.constant 0 : index
    %c0_118 = arith.constant 0 : index
    %258 = vector.load %arg11[%c1, %c0_117, %c0_118] : memref<2x1x32xf32, #tpu.memory_space<vmem>>, vector<1x1x32xf32>
    %259 = vector.shape_cast %258 : vector<1x1x32xf32> to vector<1x32xf32>
    %c1_119 = arith.constant 1 : index
    %c0_120 = arith.constant 0 : index
    %c0_121 = arith.constant 0 : index
    %260 = vector.load %arg12[%c1_119, %c0_120, %c0_121] : memref<2x1x32xf32, #tpu.memory_space<vmem>>, vector<1x1x32xf32>
    %261 = vector.shape_cast %260 : vector<1x1x32xf32> to vector<1x32xf32>
    %cst_122 = arith.constant dense<0.000000e+00> : vector<13xf32>
    %262 = vector.multi_reduction <add>, %257, %cst_122 [1] : vector<13x32xf32> to vector<13xf32>
    %263 = vector.shape_cast %262 : vector<13xf32> to vector<13x1xf32>
    %cst_123 = arith.constant 3.200000e+01 : f32
    %264 = vector.broadcast %cst_123 : f32 to vector<13x1xf32>
    %265 = arith.divf %263, %264 : vector<13x1xf32>
    %266 = vector.broadcast %265 : vector<13x1xf32> to vector<13x32xf32>
    %267 = arith.subf %257, %266 : vector<13x32xf32>
    %268 = arith.mulf %267, %267 : vector<13x32xf32>
    %cst_124 = arith.constant dense<0.000000e+00> : vector<13xf32>
    %269 = vector.multi_reduction <add>, %268, %cst_124 [1] : vector<13x32xf32> to vector<13xf32>
    %270 = vector.shape_cast %269 : vector<13xf32> to vector<13x1xf32>
    %cst_125 = arith.constant 3.200000e+01 : f32
    %271 = vector.broadcast %cst_125 : f32 to vector<13x1xf32>
    %272 = arith.divf %270, %271 : vector<13x1xf32>
    %273 = vector.broadcast %265 : vector<13x1xf32> to vector<13x32xf32>
    %274 = arith.subf %257, %273 : vector<13x32xf32>
    %cst_126 = arith.constant 9.99999997E-7 : f32
    %275 = vector.broadcast %cst_126 : f32 to vector<13x1xf32>
    %276 = arith.addf %272, %275 : vector<13x1xf32>
    %277 = math.rsqrt %276 : vector<13x1xf32>
    %278 = vector.broadcast %277 : vector<13x1xf32> to vector<13x32xf32>
    %279 = arith.mulf %274, %278 : vector<13x32xf32>
    %280 = vector.broadcast %259 : vector<1x32xf32> to vector<13x32xf32>
    %281 = arith.mulf %279, %280 : vector<13x32xf32>
    %282 = vector.broadcast %261 : vector<1x32xf32> to vector<13x32xf32>
    %283 = arith.addf %281, %282 : vector<13x32xf32>
    %c1_127 = arith.constant 1 : index
    %c0_128 = arith.constant 0 : index
    %c0_129 = arith.constant 0 : index
    %284 = vector.load %arg13[%c1_127, %c0_128, %c0_129] : memref<2x32x32xf32, #tpu.memory_space<vmem>>, vector<1x32x32xf32>
    %285 = vector.shape_cast %284 : vector<1x32x32xf32> to vector<32x32xf32>
    %cst_130 = arith.constant dense<0.000000e+00> : vector<13x32xf32>
    %286 = tpu.matmul %283, %285, %cst_130 {dimension_numbers = #tpu.dot_dimension_numbers<[1], [0], [0], [1], [0, 0, 1, 1], [], []>} : vector<13x32xf32>, vector<32x32xf32>, vector<13x32xf32> -> vector<13x32xf32>
    %c1_131 = arith.constant 1 : index
    %c0_132 = arith.constant 0 : index
    %c0_133 = arith.constant 0 : index
    %287 = vector.load %arg14[%c1_131, %c0_132, %c0_133] : memref<2x1x32xf32, #tpu.memory_space<vmem>>, vector<1x1x32xf32>
    %288 = vector.shape_cast %287 : vector<1x1x32xf32> to vector<1x32xf32>
    %289 = vector.broadcast %288 : vector<1x32xf32> to vector<13x32xf32>
    %290 = arith.addf %286, %289 : vector<13x32xf32>
    %c1_134 = arith.constant 1 : index
    %c0_135 = arith.constant 0 : index
    %c0_136 = arith.constant 0 : index
    %291 = vector.load %arg15[%c1_134, %c0_135, %c0_136] : memref<2x32x32xf32, #tpu.memory_space<vmem>>, vector<1x32x32xf32>
    %292 = vector.shape_cast %291 : vector<1x32x32xf32> to vector<32x32xf32>
    %cst_137 = arith.constant dense<0.000000e+00> : vector<13x32xf32>
    %293 = tpu.matmul %283, %292, %cst_137 {dimension_numbers = #tpu.dot_dimension_numbers<[1], [0], [0], [1], [0, 0, 1, 1], [], []>} : vector<13x32xf32>, vector<32x32xf32>, vector<13x32xf32> -> vector<13x32xf32>
    %c1_138 = arith.constant 1 : index
    %c0_139 = arith.constant 0 : index
    %c0_140 = arith.constant 0 : index
    %294 = vector.load %arg16[%c1_138, %c0_139, %c0_140] : memref<2x1x32xf32, #tpu.memory_space<vmem>>, vector<1x1x32xf32>
    %295 = vector.shape_cast %294 : vector<1x1x32xf32> to vector<1x32xf32>
    %296 = vector.broadcast %295 : vector<1x32xf32> to vector<13x32xf32>
    %297 = arith.addf %293, %296 : vector<13x32xf32>
    %c1_141 = arith.constant 1 : index
    %c0_142 = arith.constant 0 : index
    %c0_143 = arith.constant 0 : index
    %298 = vector.load %arg17[%c1_141, %c0_142, %c0_143] : memref<2x32x32xf32, #tpu.memory_space<vmem>>, vector<1x32x32xf32>
    %299 = vector.shape_cast %298 : vector<1x32x32xf32> to vector<32x32xf32>
    %cst_144 = arith.constant dense<0.000000e+00> : vector<13x32xf32>
    %300 = tpu.matmul %283, %299, %cst_144 {dimension_numbers = #tpu.dot_dimension_numbers<[1], [0], [0], [1], [0, 0, 1, 1], [], []>} : vector<13x32xf32>, vector<32x32xf32>, vector<13x32xf32> -> vector<13x32xf32>
    %c1_145 = arith.constant 1 : index
    %c0_146 = arith.constant 0 : index
    %c0_147 = arith.constant 0 : index
    %301 = vector.load %arg18[%c1_145, %c0_146, %c0_147] : memref<2x1x32xf32, #tpu.memory_space<vmem>>, vector<1x1x32xf32>
    %302 = vector.shape_cast %301 : vector<1x1x32xf32> to vector<1x32xf32>
    %303 = vector.broadcast %302 : vector<1x32xf32> to vector<13x32xf32>
    %304 = arith.addf %300, %303 : vector<13x32xf32>
    %cst_148 = arith.constant 0.000000e+00 : f32
    %305 = vector.broadcast %cst_148 : f32 to vector<13x32xf32>
    %306 = vector.broadcast %8 : vector<1x32xf32> to vector<13x32xf32>
    %307 = arith.mulf %290, %306 : vector<13x32xf32>
    %cst_149 = arith.constant dense<0.000000e+00> : vector<13x13xf32>
    %308 = tpu.matmul %307, %297, %cst_149 {dimension_numbers = #tpu.dot_dimension_numbers<[1], [1], [0], [0], [0, 0, 1, 0], [], []>} : vector<13x32xf32>, vector<13x32xf32>, vector<13x13xf32> -> vector<13x13xf32>
    %cst_150 = arith.constant 0.353553385 : f32
    %309 = vector.broadcast %cst_150 : f32 to vector<13x13xf32>
    %310 = arith.mulf %308, %309 : vector<13x13xf32>
    %cst_151 = arith.constant dense<0xFF800000> : vector<13xf32>
    %311 = vector.multi_reduction <maximumf>, %310, %cst_151 [1] : vector<13x13xf32> to vector<13xf32>
    %312 = vector.shape_cast %311 : vector<13xf32> to vector<13x1xf32>
    %313 = vector.broadcast %312 : vector<13x1xf32> to vector<13x13xf32>
    %314 = arith.subf %310, %313 : vector<13x13xf32>
    %315 = math.exp %314 : vector<13x13xf32>
    %cst_152 = arith.constant dense<0.000000e+00> : vector<13xf32>
    %316 = vector.multi_reduction <add>, %315, %cst_152 [1] : vector<13x13xf32> to vector<13xf32>
    %317 = vector.shape_cast %316 : vector<13xf32> to vector<13x1xf32>
    %318 = tpu.reciprocal %317 {approx = true} : vector<13x1xf32> -> vector<13x1xf32>
    %319 = vector.broadcast %318 : vector<13x1xf32> to vector<13x13xf32>
    %320 = arith.mulf %315, %319 : vector<13x13xf32>
    %321 = vector.broadcast %8 : vector<1x32xf32> to vector<13x32xf32>
    %322 = arith.mulf %304, %321 : vector<13x32xf32>
    %cst_153 = arith.constant dense<0.000000e+00> : vector<13x32xf32>
    %323 = tpu.matmul %320, %322, %cst_153 {dimension_numbers = #tpu.dot_dimension_numbers<[1], [0], [0], [1], [0, 0, 1, 1], [], []>} : vector<13x13xf32>, vector<13x32xf32>, vector<13x32xf32> -> vector<13x32xf32>
    %324 = arith.addf %305, %323 : vector<13x32xf32>
    %325 = vector.broadcast %15 : vector<1x32xf32> to vector<13x32xf32>
    %326 = arith.mulf %290, %325 : vector<13x32xf32>
    %cst_154 = arith.constant dense<0.000000e+00> : vector<13x13xf32>
    %327 = tpu.matmul %326, %297, %cst_154 {dimension_numbers = #tpu.dot_dimension_numbers<[1], [1], [0], [0], [0, 0, 1, 0], [], []>} : vector<13x32xf32>, vector<13x32xf32>, vector<13x13xf32> -> vector<13x13xf32>
    %cst_155 = arith.constant 0.353553385 : f32
    %328 = vector.broadcast %cst_155 : f32 to vector<13x13xf32>
    %329 = arith.mulf %327, %328 : vector<13x13xf32>
    %cst_156 = arith.constant dense<0xFF800000> : vector<13xf32>
    %330 = vector.multi_reduction <maximumf>, %329, %cst_156 [1] : vector<13x13xf32> to vector<13xf32>
    %331 = vector.shape_cast %330 : vector<13xf32> to vector<13x1xf32>
    %332 = vector.broadcast %331 : vector<13x1xf32> to vector<13x13xf32>
    %333 = arith.subf %329, %332 : vector<13x13xf32>
    %334 = math.exp %333 : vector<13x13xf32>
    %cst_157 = arith.constant dense<0.000000e+00> : vector<13xf32>
    %335 = vector.multi_reduction <add>, %334, %cst_157 [1] : vector<13x13xf32> to vector<13xf32>
    %336 = vector.shape_cast %335 : vector<13xf32> to vector<13x1xf32>
    %337 = tpu.reciprocal %336 {approx = true} : vector<13x1xf32> -> vector<13x1xf32>
    %338 = vector.broadcast %337 : vector<13x1xf32> to vector<13x13xf32>
    %339 = arith.mulf %334, %338 : vector<13x13xf32>
    %340 = vector.broadcast %15 : vector<1x32xf32> to vector<13x32xf32>
    %341 = arith.mulf %304, %340 : vector<13x32xf32>
    %cst_158 = arith.constant dense<0.000000e+00> : vector<13x32xf32>
    %342 = tpu.matmul %339, %341, %cst_158 {dimension_numbers = #tpu.dot_dimension_numbers<[1], [0], [0], [1], [0, 0, 1, 1], [], []>} : vector<13x13xf32>, vector<13x32xf32>, vector<13x32xf32> -> vector<13x32xf32>
    %343 = arith.addf %324, %342 : vector<13x32xf32>
    %344 = vector.broadcast %22 : vector<1x32xf32> to vector<13x32xf32>
    %345 = arith.mulf %290, %344 : vector<13x32xf32>
    %cst_159 = arith.constant dense<0.000000e+00> : vector<13x13xf32>
    %346 = tpu.matmul %345, %297, %cst_159 {dimension_numbers = #tpu.dot_dimension_numbers<[1], [1], [0], [0], [0, 0, 1, 0], [], []>} : vector<13x32xf32>, vector<13x32xf32>, vector<13x13xf32> -> vector<13x13xf32>
    %cst_160 = arith.constant 0.353553385 : f32
    %347 = vector.broadcast %cst_160 : f32 to vector<13x13xf32>
    %348 = arith.mulf %346, %347 : vector<13x13xf32>
    %cst_161 = arith.constant dense<0xFF800000> : vector<13xf32>
    %349 = vector.multi_reduction <maximumf>, %348, %cst_161 [1] : vector<13x13xf32> to vector<13xf32>
    %350 = vector.shape_cast %349 : vector<13xf32> to vector<13x1xf32>
    %351 = vector.broadcast %350 : vector<13x1xf32> to vector<13x13xf32>
    %352 = arith.subf %348, %351 : vector<13x13xf32>
    %353 = math.exp %352 : vector<13x13xf32>
    %cst_162 = arith.constant dense<0.000000e+00> : vector<13xf32>
    %354 = vector.multi_reduction <add>, %353, %cst_162 [1] : vector<13x13xf32> to vector<13xf32>
    %355 = vector.shape_cast %354 : vector<13xf32> to vector<13x1xf32>
    %356 = tpu.reciprocal %355 {approx = true} : vector<13x1xf32> -> vector<13x1xf32>
    %357 = vector.broadcast %356 : vector<13x1xf32> to vector<13x13xf32>
    %358 = arith.mulf %353, %357 : vector<13x13xf32>
    %359 = vector.broadcast %22 : vector<1x32xf32> to vector<13x32xf32>
    %360 = arith.mulf %304, %359 : vector<13x32xf32>
    %cst_163 = arith.constant dense<0.000000e+00> : vector<13x32xf32>
    %361 = tpu.matmul %358, %360, %cst_163 {dimension_numbers = #tpu.dot_dimension_numbers<[1], [0], [0], [1], [0, 0, 1, 1], [], []>} : vector<13x13xf32>, vector<13x32xf32>, vector<13x32xf32> -> vector<13x32xf32>
    %362 = arith.addf %343, %361 : vector<13x32xf32>
    %363 = vector.broadcast %29 : vector<1x32xf32> to vector<13x32xf32>
    %364 = arith.mulf %290, %363 : vector<13x32xf32>
    %cst_164 = arith.constant dense<0.000000e+00> : vector<13x13xf32>
    %365 = tpu.matmul %364, %297, %cst_164 {dimension_numbers = #tpu.dot_dimension_numbers<[1], [1], [0], [0], [0, 0, 1, 0], [], []>} : vector<13x32xf32>, vector<13x32xf32>, vector<13x13xf32> -> vector<13x13xf32>
    %cst_165 = arith.constant 0.353553385 : f32
    %366 = vector.broadcast %cst_165 : f32 to vector<13x13xf32>
    %367 = arith.mulf %365, %366 : vector<13x13xf32>
    %cst_166 = arith.constant dense<0xFF800000> : vector<13xf32>
    %368 = vector.multi_reduction <maximumf>, %367, %cst_166 [1] : vector<13x13xf32> to vector<13xf32>
    %369 = vector.shape_cast %368 : vector<13xf32> to vector<13x1xf32>
    %370 = vector.broadcast %369 : vector<13x1xf32> to vector<13x13xf32>
    %371 = arith.subf %367, %370 : vector<13x13xf32>
    %372 = math.exp %371 : vector<13x13xf32>
    %cst_167 = arith.constant dense<0.000000e+00> : vector<13xf32>
    %373 = vector.multi_reduction <add>, %372, %cst_167 [1] : vector<13x13xf32> to vector<13xf32>
    %374 = vector.shape_cast %373 : vector<13xf32> to vector<13x1xf32>
    %375 = tpu.reciprocal %374 {approx = true} : vector<13x1xf32> -> vector<13x1xf32>
    %376 = vector.broadcast %375 : vector<13x1xf32> to vector<13x13xf32>
    %377 = arith.mulf %372, %376 : vector<13x13xf32>
    %378 = vector.broadcast %29 : vector<1x32xf32> to vector<13x32xf32>
    %379 = arith.mulf %304, %378 : vector<13x32xf32>
    %cst_168 = arith.constant dense<0.000000e+00> : vector<13x32xf32>
    %380 = tpu.matmul %377, %379, %cst_168 {dimension_numbers = #tpu.dot_dimension_numbers<[1], [0], [0], [1], [0, 0, 1, 1], [], []>} : vector<13x13xf32>, vector<13x32xf32>, vector<13x32xf32> -> vector<13x32xf32>
    %381 = arith.addf %362, %380 : vector<13x32xf32>
    %c1_169 = arith.constant 1 : index
    %c0_170 = arith.constant 0 : index
    %c0_171 = arith.constant 0 : index
    %382 = vector.load %arg19[%c1_169, %c0_170, %c0_171] : memref<2x32x32xf32, #tpu.memory_space<vmem>>, vector<1x32x32xf32>
    %383 = vector.shape_cast %382 : vector<1x32x32xf32> to vector<32x32xf32>
    %cst_172 = arith.constant dense<0.000000e+00> : vector<13x32xf32>
    %384 = tpu.matmul %381, %383, %cst_172 {dimension_numbers = #tpu.dot_dimension_numbers<[1], [0], [0], [1], [0, 0, 1, 1], [], []>} : vector<13x32xf32>, vector<32x32xf32>, vector<13x32xf32> -> vector<13x32xf32>
    %c1_173 = arith.constant 1 : index
    %c0_174 = arith.constant 0 : index
    %c0_175 = arith.constant 0 : index
    %385 = vector.load %arg20[%c1_173, %c0_174, %c0_175] : memref<2x1x32xf32, #tpu.memory_space<vmem>>, vector<1x1x32xf32>
    %386 = vector.shape_cast %385 : vector<1x1x32xf32> to vector<1x32xf32>
    %387 = vector.broadcast %386 : vector<1x32xf32> to vector<13x32xf32>
    %388 = arith.addf %384, %387 : vector<13x32xf32>
    %389 = arith.addf %257, %388 : vector<13x32xf32>
    %c1_176 = arith.constant 1 : index
    %c0_177 = arith.constant 0 : index
    %c0_178 = arith.constant 0 : index
    %390 = vector.load %arg21[%c1_176, %c0_177, %c0_178] : memref<2x1x32xf32, #tpu.memory_space<vmem>>, vector<1x1x32xf32>
    %391 = vector.shape_cast %390 : vector<1x1x32xf32> to vector<1x32xf32>
    %c1_179 = arith.constant 1 : index
    %c0_180 = arith.constant 0 : index
    %c0_181 = arith.constant 0 : index
    %392 = vector.load %arg22[%c1_179, %c0_180, %c0_181] : memref<2x1x32xf32, #tpu.memory_space<vmem>>, vector<1x1x32xf32>
    %393 = vector.shape_cast %392 : vector<1x1x32xf32> to vector<1x32xf32>
    %cst_182 = arith.constant dense<0.000000e+00> : vector<13xf32>
    %394 = vector.multi_reduction <add>, %389, %cst_182 [1] : vector<13x32xf32> to vector<13xf32>
    %395 = vector.shape_cast %394 : vector<13xf32> to vector<13x1xf32>
    %cst_183 = arith.constant 3.200000e+01 : f32
    %396 = vector.broadcast %cst_183 : f32 to vector<13x1xf32>
    %397 = arith.divf %395, %396 : vector<13x1xf32>
    %398 = vector.broadcast %397 : vector<13x1xf32> to vector<13x32xf32>
    %399 = arith.subf %389, %398 : vector<13x32xf32>
    %400 = arith.mulf %399, %399 : vector<13x32xf32>
    %cst_184 = arith.constant dense<0.000000e+00> : vector<13xf32>
    %401 = vector.multi_reduction <add>, %400, %cst_184 [1] : vector<13x32xf32> to vector<13xf32>
    %402 = vector.shape_cast %401 : vector<13xf32> to vector<13x1xf32>
    %cst_185 = arith.constant 3.200000e+01 : f32
    %403 = vector.broadcast %cst_185 : f32 to vector<13x1xf32>
    %404 = arith.divf %402, %403 : vector<13x1xf32>
    %405 = vector.broadcast %397 : vector<13x1xf32> to vector<13x32xf32>
    %406 = arith.subf %389, %405 : vector<13x32xf32>
    %cst_186 = arith.constant 9.99999997E-7 : f32
    %407 = vector.broadcast %cst_186 : f32 to vector<13x1xf32>
    %408 = arith.addf %404, %407 : vector<13x1xf32>
    %409 = math.rsqrt %408 : vector<13x1xf32>
    %410 = vector.broadcast %409 : vector<13x1xf32> to vector<13x32xf32>
    %411 = arith.mulf %406, %410 : vector<13x32xf32>
    %412 = vector.broadcast %391 : vector<1x32xf32> to vector<13x32xf32>
    %413 = arith.mulf %411, %412 : vector<13x32xf32>
    %414 = vector.broadcast %393 : vector<1x32xf32> to vector<13x32xf32>
    %415 = arith.addf %413, %414 : vector<13x32xf32>
    %c1_187 = arith.constant 1 : index
    %c0_188 = arith.constant 0 : index
    %c0_189 = arith.constant 0 : index
    %416 = vector.load %arg23[%c1_187, %c0_188, %c0_189] : memref<2x32x128xf32, #tpu.memory_space<vmem>>, vector<1x32x128xf32>
    %417 = vector.shape_cast %416 : vector<1x32x128xf32> to vector<32x128xf32>
    %cst_190 = arith.constant dense<0.000000e+00> : vector<13x128xf32>
    %418 = tpu.matmul %415, %417, %cst_190 {dimension_numbers = #tpu.dot_dimension_numbers<[1], [0], [0], [1], [0, 0, 1, 1], [], []>} : vector<13x32xf32>, vector<32x128xf32>, vector<13x128xf32> -> vector<13x128xf32>
    %c1_191 = arith.constant 1 : index
    %c0_192 = arith.constant 0 : index
    %c0_193 = arith.constant 0 : index
    %419 = vector.load %arg24[%c1_191, %c0_192, %c0_193] : memref<2x1x128xf32, #tpu.memory_space<vmem>>, vector<1x1x128xf32>
    %420 = vector.shape_cast %419 : vector<1x1x128xf32> to vector<1x128xf32>
    %421 = vector.broadcast %420 : vector<1x128xf32> to vector<13x128xf32>
    %422 = arith.addf %418, %421 : vector<13x128xf32>
    %cst_194 = arith.constant 5.000000e-01 : f32
    %423 = vector.broadcast %cst_194 : f32 to vector<13x128xf32>
    %424 = arith.mulf %423, %422 : vector<13x128xf32>
    %cst_195 = arith.constant 4.471500e-02 : f32
    %425 = vector.broadcast %cst_195 : f32 to vector<13x128xf32>
    %426 = arith.mulf %425, %422 : vector<13x128xf32>
    %427 = arith.mulf %426, %422 : vector<13x128xf32>
    %428 = arith.mulf %427, %422 : vector<13x128xf32>
    %429 = arith.addf %422, %428 : vector<13x128xf32>
    %cst_196 = arith.constant 0.797884583 : f32
    %430 = vector.broadcast %cst_196 : f32 to vector<13x128xf32>
    %431 = arith.mulf %430, %429 : vector<13x128xf32>
    %432 = math.tanh %431 : vector<13x128xf32>
    %cst_197 = arith.constant 1.000000e+00 : f32
    %433 = vector.broadcast %cst_197 : f32 to vector<13x128xf32>
    %434 = arith.addf %433, %432 : vector<13x128xf32>
    %435 = arith.mulf %424, %434 : vector<13x128xf32>
    %c1_198 = arith.constant 1 : index
    %c0_199 = arith.constant 0 : index
    %c0_200 = arith.constant 0 : index
    %436 = vector.load %arg25[%c1_198, %c0_199, %c0_200] : memref<2x128x32xf32, #tpu.memory_space<vmem>>, vector<1x128x32xf32>
    %437 = vector.shape_cast %436 : vector<1x128x32xf32> to vector<128x32xf32>
    %cst_201 = arith.constant dense<0.000000e+00> : vector<13x32xf32>
    %438 = tpu.matmul %435, %437, %cst_201 {dimension_numbers = #tpu.dot_dimension_numbers<[1], [0], [0], [1], [0, 0, 1, 1], [], []>} : vector<13x128xf32>, vector<128x32xf32>, vector<13x32xf32> -> vector<13x32xf32>
    %c1_202 = arith.constant 1 : index
    %c0_203 = arith.constant 0 : index
    %c0_204 = arith.constant 0 : index
    %439 = vector.load %arg26[%c1_202, %c0_203, %c0_204] : memref<2x1x32xf32, #tpu.memory_space<vmem>>, vector<1x1x32xf32>
    %440 = vector.shape_cast %439 : vector<1x1x32xf32> to vector<1x32xf32>
    %441 = vector.broadcast %440 : vector<1x32xf32> to vector<13x32xf32>
    %442 = arith.addf %438, %441 : vector<13x32xf32>
    %443 = arith.addf %389, %442 : vector<13x32xf32>
    %c0_205 = arith.constant 0 : index
    %c0_206 = arith.constant 0 : index
    %444 = vector.load %arg27[%c0_205, %c0_206] : memref<1x32xf32, #tpu.memory_space<vmem>>, vector<1x32xf32>
    %c0_207 = arith.constant 0 : index
    %c0_208 = arith.constant 0 : index
    %445 = vector.load %arg28[%c0_207, %c0_208] : memref<1x32xf32, #tpu.memory_space<vmem>>, vector<1x32xf32>
    %cst_209 = arith.constant dense<0.000000e+00> : vector<13xf32>
    %446 = vector.multi_reduction <add>, %443, %cst_209 [1] : vector<13x32xf32> to vector<13xf32>
    %447 = vector.shape_cast %446 : vector<13xf32> to vector<13x1xf32>
    %cst_210 = arith.constant 3.200000e+01 : f32
    %448 = vector.broadcast %cst_210 : f32 to vector<13x1xf32>
    %449 = arith.divf %447, %448 : vector<13x1xf32>
    %450 = vector.broadcast %449 : vector<13x1xf32> to vector<13x32xf32>
    %451 = arith.subf %443, %450 : vector<13x32xf32>
    %452 = arith.mulf %451, %451 : vector<13x32xf32>
    %cst_211 = arith.constant dense<0.000000e+00> : vector<13xf32>
    %453 = vector.multi_reduction <add>, %452, %cst_211 [1] : vector<13x32xf32> to vector<13xf32>
    %454 = vector.shape_cast %453 : vector<13xf32> to vector<13x1xf32>
    %cst_212 = arith.constant 3.200000e+01 : f32
    %455 = vector.broadcast %cst_212 : f32 to vector<13x1xf32>
    %456 = arith.divf %454, %455 : vector<13x1xf32>
    %457 = vector.broadcast %449 : vector<13x1xf32> to vector<13x32xf32>
    %458 = arith.subf %443, %457 : vector<13x32xf32>
    %cst_213 = arith.constant 9.99999997E-7 : f32
    %459 = vector.broadcast %cst_213 : f32 to vector<13x1xf32>
    %460 = arith.addf %456, %459 : vector<13x1xf32>
    %461 = math.rsqrt %460 : vector<13x1xf32>
    %462 = vector.broadcast %461 : vector<13x1xf32> to vector<13x32xf32>
    %463 = arith.mulf %458, %462 : vector<13x32xf32>
    %464 = vector.broadcast %444 : vector<1x32xf32> to vector<13x32xf32>
    %465 = arith.mulf %463, %464 : vector<13x32xf32>
    %466 = vector.broadcast %445 : vector<1x32xf32> to vector<13x32xf32>
    %467 = arith.addf %465, %466 : vector<13x32xf32>
    %c0_214 = arith.constant 0 : index
    %c0_215 = arith.constant 0 : index
    %c0_216 = arith.constant 0 : index
    %468 = vector.load %arg37[%c0_214, %c0_215, %c0_216] : memref<1x13x32xf32, #tpu.memory_space<vmem>>, vector<1x13x32xf32>
    %469 = vector.shape_cast %468 : vector<1x13x32xf32> to vector<13x32xf32>
    %470 = vector.shape_cast %467 : vector<13x32xf32> to vector<1x13x32xf32>
    tpu.vector_store %arg37[%c0_214, %c0_215, %c0_216], %470 {strides = array<i32>} : memref<1x13x32xf32, #tpu.memory_space<vmem>>, vector<1x13x32xf32>,
    %471 = vector.extract_strided_slice %467 {offsets = [0, 0], sizes = [1, 32], strides = [1, 1]} : vector<13x32xf32> to vector<1x32xf32>
    %c0_217 = arith.constant 0 : index
    %c0_218 = arith.constant 0 : index
    %472 = vector.load %arg29[%c0_217, %c0_218] : memref<32x32xf32, #tpu.memory_space<vmem>>, vector<32x32xf32>
    %cst_219 = arith.constant dense<0.000000e+00> : vector<1x32xf32>
    %473 = tpu.matmul %471, %472, %cst_219 {dimension_numbers = #tpu.dot_dimension_numbers<[1], [0], [0], [1], [0, 0, 1, 1], [], []>} : vector<1x32xf32>, vector<32x32xf32>, vector<1x32xf32> -> vector<1x32xf32>
    %c0_220 = arith.constant 0 : index
    %c0_221 = arith.constant 0 : index
    %474 = vector.load %arg30[%c0_220, %c0_221] : memref<1x32xf32, #tpu.memory_space<vmem>>, vector<1x32xf32>
    %475 = arith.addf %473, %474 : vector<1x32xf32>
    %476 = math.tanh %475 : vector<1x32xf32>
    %c0_222 = arith.constant 0 : index
    %c0_223 = arith.constant 0 : index
    %c0_224 = arith.constant 0 : index
    %477 = vector.load %arg38[%c0_222, %c0_223, %c0_224] : memref<1x1x32xf32, #tpu.memory_space<vmem>>, vector<1x1x32xf32>
    %478 = vector.shape_cast %477 : vector<1x1x32xf32> to vector<1x32xf32>
    %479 = vector.shape_cast %476 : vector<1x32xf32> to vector<1x1x32xf32>
    tpu.vector_store %arg38[%c0_222, %c0_223, %c0_224], %479 {strides = array<i32>} : memref<1x1x32xf32, #tpu.memory_space<vmem>>, vector<1x1x32xf32>,
    %480 = vector.extract_strided_slice %467 {offsets = [0, 0], sizes = [8, 32], strides = [1, 1]} : vector<13x32xf32> to vector<8x32xf32>
    %c0_225 = arith.constant 0 : index
    %c0_226 = arith.constant 0 : index
    %481 = vector.load %arg31[%c0_225, %c0_226] : memref<32x32xf32, #tpu.memory_space<vmem>>, vector<32x32xf32>
    %cst_227 = arith.constant dense<0.000000e+00> : vector<8x32xf32>
    %482 = tpu.matmul %480, %481, %cst_227 {dimension_numbers = #tpu.dot_dimension_numbers<[1], [0], [0], [1], [0, 0, 1, 1], [], []>} : vector<8x32xf32>, vector<32x32xf32>, vector<8x32xf32> -> vector<8x32xf32>
    %c0_228 = arith.constant 0 : index
    %c0_229 = arith.constant 0 : index
    %483 = vector.load %arg32[%c0_228, %c0_229] : memref<1x32xf32, #tpu.memory_space<vmem>>, vector<1x32xf32>
    %484 = vector.broadcast %483 : vector<1x32xf32> to vector<8x32xf32>
    %485 = arith.addf %482, %484 : vector<8x32xf32>
    %cst_230 = arith.constant 5.000000e-01 : f32
    %486 = vector.broadcast %cst_230 : f32 to vector<8x32xf32>
    %487 = arith.mulf %486, %485 : vector<8x32xf32>
    %cst_231 = arith.constant 4.471500e-02 : f32
    %488 = vector.broadcast %cst_231 : f32 to vector<8x32xf32>
    %489 = arith.mulf %488, %485 : vector<8x32xf32>
    %490 = arith.mulf %489, %485 : vector<8x32xf32>
    %491 = arith.mulf %490, %485 : vector<8x32xf32>
    %492 = arith.addf %485, %491 : vector<8x32xf32>
    %cst_232 = arith.constant 0.797884583 : f32
    %493 = vector.broadcast %cst_232 : f32 to vector<8x32xf32>
    %494 = arith.mulf %493, %492 : vector<8x32xf32>
    %495 = math.tanh %494 : vector<8x32xf32>
    %cst_233 = arith.constant 1.000000e+00 : f32
    %496 = vector.broadcast %cst_233 : f32 to vector<8x32xf32>
    %497 = arith.addf %496, %495 : vector<8x32xf32>
    %498 = arith.mulf %487, %497 : vector<8x32xf32>
    %c0_234 = arith.constant 0 : index
    %c0_235 = arith.constant 0 : index
    %499 = vector.load %arg33[%c0_234, %c0_235] : memref<1x32xf32, #tpu.memory_space<vmem>>, vector<1x32xf32>
    %c0_236 = arith.constant 0 : index
    %c0_237 = arith.constant 0 : index
    %500 = vector.load %arg34[%c0_236, %c0_237] : memref<1x32xf32, #tpu.memory_space<vmem>>, vector<1x32xf32>
    %cst_238 = arith.constant dense<0.000000e+00> : vector<8xf32>
    %501 = vector.multi_reduction <add>, %498, %cst_238 [1] : vector<8x32xf32> to vector<8xf32>
    %502 = vector.shape_cast %501 : vector<8xf32> to vector<8x1xf32>
    %cst_239 = arith.constant 3.200000e+01 : f32
    %503 = vector.broadcast %cst_239 : f32 to vector<8x1xf32>
    %504 = arith.divf %502, %503 : vector<8x1xf32>
    %505 = vector.broadcast %504 : vector<8x1xf32> to vector<8x32xf32>
    %506 = arith.subf %498, %505 : vector<8x32xf32>
    %507 = arith.mulf %506, %506 : vector<8x32xf32>
    %cst_240 = arith.constant dense<0.000000e+00> : vector<8xf32>
    %508 = vector.multi_reduction <add>, %507, %cst_240 [1] : vector<8x32xf32> to vector<8xf32>
    %509 = vector.shape_cast %508 : vector<8xf32> to vector<8x1xf32>
    %cst_241 = arith.constant 3.200000e+01 : f32
    %510 = vector.broadcast %cst_241 : f32 to vector<8x1xf32>
    %511 = arith.divf %509, %510 : vector<8x1xf32>
    %512 = vector.broadcast %504 : vector<8x1xf32> to vector<8x32xf32>
    %513 = arith.subf %498, %512 : vector<8x32xf32>
    %cst_242 = arith.constant 9.99999996E-13 : f32
    %514 = vector.broadcast %cst_242 : f32 to vector<8x1xf32>
    %515 = arith.addf %511, %514 : vector<8x1xf32>
    %516 = math.rsqrt %515 : vector<8x1xf32>
    %517 = vector.broadcast %516 : vector<8x1xf32> to vector<8x32xf32>
    %518 = arith.mulf %513, %517 : vector<8x32xf32>
    %519 = vector.broadcast %499 : vector<1x32xf32> to vector<8x32xf32>
    %520 = arith.mulf %518, %519 : vector<8x32xf32>
    %521 = vector.broadcast %500 : vector<1x32xf32> to vector<8x32xf32>
    %522 = arith.addf %520, %521 : vector<8x32xf32>
    %c0_243 = arith.constant 0 : index
    %c0_244 = arith.constant 0 : index
    %523 = vector.load %arg35[%c0_243, %c0_244] : memref<32x64xf32, #tpu.memory_space<vmem>>, vector<32x64xf32>
    %cst_245 = arith.constant dense<0.000000e+00> : vector<8x64xf32>
    %524 = tpu.matmul %522, %523, %cst_245 {dimension_numbers = #tpu.dot_dimension_numbers<[1], [0], [0], [1], [0, 0, 1, 1], [], []>} : vector<8x32xf32>, vector<32x64xf32>, vector<8x64xf32> -> vector<8x64xf32>
    %c0_246 = arith.constant 0 : index
    %c0_247 = arith.constant 0 : index
    %525 = vector.load %arg36[%c0_246, %c0_247] : memref<1x64xf32, #tpu.memory_space<vmem>>, vector<1x64xf32>
    %526 = vector.broadcast %525 : vector<1x64xf32> to vector<8x64xf32>
    %527 = arith.addf %524, %526 : vector<8x64xf32>
    %c0_248 = arith.constant 0 : index
    %c0_249 = arith.constant 0 : index
    %c0_250 = arith.constant 0 : index
    %528 = vector.load %arg39[%c0_248, %c0_249, %c0_250] : memref<1x8x64xf32, #tpu.memory_space<vmem>>, vector<1x8x64xf32>
    %529 = vector.shape_cast %528 : vector<1x8x64xf32> to vector<8x64xf32>
    %530 = vector.shape_cast %527 : vector<8x64xf32> to vector<1x8x64xf32>
    tpu.vector_store %arg39[%c0_248, %c0_249, %c0_250], %530 {strides = array<i32>} : memref<1x8x64xf32, #tpu.memory_space<vmem>>, vector<1x8x64xf32>,
    %c0_251 = arith.constant 0 : index
    %c0_252 = arith.constant 0 : index
    %c0_253 = arith.constant 0 : index
    %531 = vector.load %arg3[%c0_251, %c0_252, %c0_253] : memref<1x8x1xi32, #tpu.memory_space<vmem>>, vector<1x8x1xi32>
    %532 = vector.shape_cast %531 : vector<1x8x1xi32> to vector<8x1xi32>
    %cst_254 = arith.constant dense<0xFF800000> : vector<8xf32>
    %533 = vector.multi_reduction <maximumf>, %527, %cst_254 [1] : vector<8x64xf32> to vector<8xf32>
    %534 = vector.shape_cast %533 : vector<8xf32> to vector<8x1xf32>
    %535 = vector.broadcast %534 : vector<8x1xf32> to vector<8x64xf32>
    %536 = arith.subf %527, %535 : vector<8x64xf32>
    %537 = math.exp %536 : vector<8x64xf32>
    %cst_255 = arith.constant dense<0.000000e+00> : vector<8xf32>
    %538 = vector.multi_reduction <add>, %537, %cst_255 [1] : vector<8x64xf32> to vector<8xf32>
    %539 = vector.shape_cast %538 : vector<8xf32> to vector<8x1xf32>
    %540 = math.log %539 : vector<8x1xf32>
    %541 = arith.addf %540, %534 : vector<8x1xf32>
    %542 = vector.broadcast %532 : vector<8x1xi32> to vector<8x64xi32>
    %543 = arith.cmpi eq, %0, %542 : vector<8x64xi32>
    %544 = arith.extui %543 : vector<8x64xi1> to vector<8x64xi32>
    %545 = arith.sitofp %544 : vector<8x64xi32> to vector<8x64xf32>
    %546 = arith.mulf %527, %545 : vector<8x64xf32>
    %cst_256 = arith.constant dense<0.000000e+00> : vector<8xf32>
    %547 = vector.multi_reduction <add>, %546, %cst_256 [1] : vector<8x64xf32> to vector<8xf32>
    %548 = vector.shape_cast %547 : vector<8xf32> to vector<8x1xf32>
    %c-100_i32 = arith.constant -100 : i32
    %549 = vector.broadcast %c-100_i32 : i32 to vector<8x1xi32>
    %550 = arith.cmpi ne, %532, %549 : vector<8x1xi32>
    %551 = arith.extui %550 : vector<8x1xi1> to vector<8x1xi32>
    %552 = arith.sitofp %551 : vector<8x1xi32> to vector<8x1xf32>
    %553 = arith.subf %541, %548 : vector<8x1xf32>
    %554 = arith.mulf %553, %552 : vector<8x1xf32>
    %cst_257 = arith.constant dense<0.000000e+00> : vector<1xf32>
    %555 = vector.multi_reduction <add>, %554, %cst_257 [0] : vector<8x1xf32> to vector<1xf32>
    %556 = vector.shape_cast %555 : vector<1xf32> to vector<1x1xf32>
    %cst_258 = arith.constant dense<0.000000e+00> : vector<1xf32>
    %557 = vector.multi_reduction <add>, %552, %cst_258 [0] : vector<8x1xf32> to vector<1xf32>
    %558 = vector.shape_cast %557 : vector<1xf32> to vector<1x1xf32>
    %559 = tpu.concatenate %556, %558 in 1 : vector<1x1xf32>, vector<1x1xf32> -> vector<1x2xf32>
    %c0_259 = arith.constant 0 : index
    %c0_260 = arith.constant 0 : index
    %c0_261 = arith.constant 0 : index
    %560 = vector.load %arg40[%c0_259, %c0_260, %c0_261] : memref<1x1x2xf32, #tpu.memory_space<vmem>>, vector<1x1x2xf32>
    %561 = vector.shape_cast %560 : vector<1x1x2xf32> to vector<1x2xf32>
    %562 = vector.shape_cast %559 : vector<1x2xf32> to vector<1x1x2xf32>
    tpu.vector_store %arg40[%c0_259, %c0_260, %c0_261], %562 {strides = array<i32>} : memref<1x1x2xf32, #tpu.memory_space<vmem>>, vector<1x1x2xf32>,
    return
  }
  func.func @transform_0(%arg0: i32) -> (i32, i32, i32) {
    %c0_i32 = arith.constant 0 : i32
    %c0_i32_0 = arith.constant 0 : i32
    %c0_i32_1 = arith.constant 0 : i32
    return %arg0, %c0_i32, %c0_i32_0 : i32, i32, i32
  }
  func.func @transform_1(%arg0: i32) -> (i32, i32, i32) {
    %c0_i32 = arith.constant 0 : i32
    %c0_i32_0 = arith.constant 0 : i32
    %c0_i32_1 = arith.constant 0 : i32
    return %arg0, %c0_i32, %c0_i32_0 : i32, i32, i32
  }
  func.func @transform_2(%arg0: i32) -> (i32, i32, i32) {
    %c0_i32 = arith.constant 0 : i32
    %c0_i32_0 = arith.constant 0 : i32
    %c0_i32_1 = arith.constant 0 : i32
    return %arg0, %c0_i32, %c0_i32_0 : i32, i32, i32
  }
  func.func @transform_3(%arg0: i32) -> (i32, i32) {
    %c0_i32 = arith.constant 0 : i32
    %c0_i32_0 = arith.constant 0 : i32
    %c0_i32_1 = arith.constant 0 : i32
    return %c0_i32, %c0_i32_0 : i32, i32
  }
  func.func @transform_4(%arg0: i32) -> (i32, i32) {
    %c0_i32 = arith.constant 0 : i32
    %c0_i32_0 = arith.constant 0 : i32
    %c0_i32_1 = arith.constant 0 : i32
    return %c0_i32, %c0_i32_0 : i32, i32
  }
  func.func @transform_5(%arg0: i32) -> (i32, i32) {
    %c0_i32 = arith.constant 0 : i32
    %c0_i32_0 = arith.constant 0 : i32
    %c0_i32_1 = arith.constant 0 : i32
    return %c0_i32, %c0_i32_0 : i32, i32
  }
  func.func @transform_6(%arg0: i32) -> (i32, i32) {
    %c0_i32 = arith.constant 0 : i32
    %c0_i32_0 = arith.constant 0 : i32
    %c0_i32_1 = arith.constant 0 : i32
    return %c0_i32, %c0_i32_0 : i32, i32
  }
  func.func @transform_7(%arg0: i32) -> (i32, i32) {
    %c0_i32 = arith.constant 0 : i32
    %c0_i32_0 = arith.constant 0 : i32
    %c0_i32_1 = arith.constant 0 : i32
    return %c0_i32, %c0_i32_0 : i32, i32
  }
  func.func @transform_8(%arg0: i32) -> (i32, i32) {
    %c0_i32 = arith.constant 0 : i32
    %c0_i32_0 = arith.constant 0 : i32
    %c0_i32_1 = arith.constant 0 : i32
    return %c0_i32, %c0_i32_0 : i32, i32
  }
  func.func @transform_9(%arg0: i32) -> (i32, i32) {
    %c0_i32 = arith.constant 0 : i32
    %c0_i32_0 = arith.constant 0 : i32
    %c0_i32_1 = arith.constant 0 : i32
    return %c0_i32, %c0_i32_0 : i32, i32
  }
  func.func @transform_10(%arg0: i32) -> (i32, i32, i32) {
    %c0_i32 = arith.constant 0 : i32
    %c0_i32_0 = arith.constant 0 : i32
    %c0_i32_1 = arith.constant 0 : i32
    %c0_i32_2 = arith.constant 0 : i32
    return %c0_i32, %c0_i32_0, %c0_i32_1 : i32, i32, i32
  }
  func.func @transform_11(%arg0: i32) -> (i32, i32, i32) {
    %c0_i32 = arith.constant 0 : i32
    %c0_i32_0 = arith.constant 0 : i32
    %c0_i32_1 = arith.constant 0 : i32
    %c0_i32_2 = arith.constant 0 : i32
    return %c0_i32, %c0_i32_0, %c0_i32_1 : i32, i32, i32
  }
  func.func @transform_12(%arg0: i32) -> (i32, i32, i32) {
    %c0_i32 = arith.constant 0 : i32
    %c0_i32_0 = arith.constant 0 : i32
    %c0_i32_1 = arith.constant 0 : i32
    %c0_i32_2 = arith.constant 0 : i32
    return %c0_i32, %c0_i32_0, %c0_i32_1 : i32, i32, i32
  }
  func.func @transform_13(%arg0: i32) -> (i32, i32, i32) {
    %c0_i32 = arith.constant 0 : i32
    %c0_i32_0 = arith.constant 0 : i32
    %c0_i32_1 = arith.constant 0 : i32
    %c0_i32_2 = arith.constant 0 : i32
    return %c0_i32, %c0_i32_0, %c0_i32_1 : i32, i32, i32
  }
  func.func @transform_14(%arg0: i32) -> (i32, i32, i32) {
    %c0_i32 = arith.constant 0 : i32
    %c0_i32_0 = arith.constant 0 : i32
    %c0_i32_1 = arith.constant 0 : i32
    %c0_i32_2 = arith.constant 0 : i32
    return %c0_i32, %c0_i32_0, %c0_i32_1 : i32, i32, i32
  }
  func.func @transform_15(%arg0: i32) -> (i32, i32, i32) {
    %c0_i32 = arith.constant 0 : i32
    %c0_i32_0 = arith.constant 0 : i32
    %c0_i32_1 = arith.constant 0 : i32
    %c0_i32_2 = arith.constant 0 : i32
    return %c0_i32, %c0_i32_0, %c0_i32_1 : i32, i32, i32
  }
  func.func @transform_16(%arg0: i32) -> (i32, i32, i32) {
    %c0_i32 = arith.constant 0 : i32
    %c0_i32_0 = arith.constant 0 : i32
    %c0_i32_1 = arith.constant 0 : i32
    %c0_i32_2 = arith.constant 0 : i32
    return %c0_i32, %c0_i32_0, %c0_i32_1 : i32, i32, i32
  }
  func.func @transform_17(%arg0: i32) -> (i32, i32, i32) {
    %c0_i32 = arith.constant 0 : i32
    %c0_i32_0 = arith.constant 0 : i32
    %c0_i32_1 = arith.constant 0 : i32
    %c0_i32_2 = arith.constant 0 : i32
    return %c0_i32, %c0_i32_0, %c0_i32_1 : i32, i32, i32
  }
  func.func @transform_18(%arg0: i32) -> (i32, i32, i32) {
    %c0_i32 = arith.constant 0 : i32
    %c0_i32_0 = arith.constant 0 : i32
    %c0_i32_1 = arith.constant 0 : i32
    %c0_i32_2 = arith.constant 0 : i32
    return %c0_i32, %c0_i32_0, %c0_i32_1 : i32, i32, i32
  }
  func.func @transform_19(%arg0: i32) -> (i32, i32, i32) {
    %c0_i32 = arith.constant 0 : i32
    %c0_i32_0 = arith.constant 0 : i32
    %c0_i32_1 = arith.constant 0 : i32
    %c0_i32_2 = arith.constant 0 : i32
    return %c0_i32, %c0_i32_0, %c0_i32_1 : i32, i32, i32
  }
  func.func @transform_20(%arg0: i32) -> (i32, i32, i32) {
    %c0_i32 = arith.constant 0 : i32
    %c0_i32_0 = arith.constant 0 : i32
    %c0_i32_1 = arith.constant 0 : i32
    %c0_i32_2 = arith.constant 0 : i32
    return %c0_i32, %c0_i32_0, %c0_i32_1 : i32, i32, i32
  }
  func.func @transform_21(%arg0: i32) -> (i32, i32, i32) {
    %c0_i32 = arith.constant 0 : i32
    %c0_i32_0 = arith.constant 0 : i32
    %c0_i32_1 = arith.constant 0 : i32
    %c0_i32_2 = arith.constant 0 : i32
    return %c0_i32, %c0_i32_0, %c0_i32_1 : i32, i32, i32
  }
  func.func @transform_22(%arg0: i32) -> (i32, i32, i32) {
    %c0_i32 = arith.constant 0 : i32
    %c0_i32_0 = arith.constant 0 : i32
    %c0_i32_1 = arith.constant 0 : i32
    %c0_i32_2 = arith.constant 0 : i32
    return %c0_i32, %c0_i32_0, %c0_i32_1 : i32, i32, i32
  }
  func.func @transform_23(%arg0: i32) -> (i32, i32, i32) {
    %c0_i32 = arith.constant 0 : i32
    %c0_i32_0 = arith.constant 0 : i32
    %c0_i32_1 = arith.constant 0 : i32
    %c0_i32_2 = arith.constant 0 : i32
    return %c0_i32, %c0_i32_0, %c0_i32_1 : i32, i32, i32
  }
  func.func @transform_24(%arg0: i32) -> (i32, i32, i32) {
    %c0_i32 = arith.constant 0 : i32
    %c0_i32_0 = arith.constant 0 : i32
    %c0_i32_1 = arith.constant 0 : i32
    %c0_i32_2 = arith.constant 0 : i32
    return %c0_i32, %c0_i32_0, %c0_i32_1 : i32, i32, i32
  }
  func.func @transform_25(%arg0: i32) -> (i32, i32, i32) {
    %c0_i32 = arith.constant 0 : i32
    %c0_i32_0 = arith.constant 0 : i32
    %c0_i32_1 = arith.constant 0 : i32
    %c0_i32_2 = arith.constant 0 : i32
    return %c0_i32, %c0_i32_0, %c0_i32_1 : i32, i32, i32
  }
  func.func @transform_26(%arg0: i32) -> (i32, i32) {
    %c0_i32 = arith.constant 0 : i32
    %c0_i32_0 = arith.constant 0 : i32
    %c0_i32_1 = arith.constant 0 : i32
    return %c0_i32, %c0_i32_0 : i32, i32
  }
  func.func @transform_27(%arg0: i32) -> (i32, i32) {
    %c0_i32 = arith.constant 0 : i32
    %c0_i32_0 = arith.constant 0 : i32
    %c0_i32_1 = arith.constant 0 : i32
    return %c0_i32, %c0_i32_0 : i32, i32
  }
  func.func @transform_28(%arg0: i32) -> (i32, i32) {
    %c0_i32 = arith.constant 0 : i32
    %c0_i32_0 = arith.constant 0 : i32
    %c0_i32_1 = arith.constant 0 : i32
    return %c0_i32, %c0_i32_0 : i32, i32
  }
  func.func @transform_29(%arg0: i32) -> (i32, i32) {
    %c0_i32 = arith.constant 0 : i32
    %c0_i32_0 = arith.constant 0 : i32
    %c0_i32_1 = arith.constant 0 : i32
    return %c0_i32, %c0_i32_0 : i32, i32
  }
  func.func @transform_30(%arg0: i32) -> (i32, i32) {
    %c0_i32 = arith.constant 0 : i32
    %c0_i32_0 = arith.constant 0 : i32
    %c0_i32_1 = arith.constant 0 : i32
    return %c0_i32, %c0_i32_0 : i32, i32
  }
  func.func @transform_31(%arg0: i32) -> (i32, i32) {
    %c0_i32 = arith.constant 0 : i32
    %c0_i32_0 = arith.constant 0 : i32
    %c0_i32_1 = arith.constant 0 : i32
    return %c0_i32, %c0_i32_0 : i32, i32
  }
  func.func @transform_32(%arg0: i32) -> (i32, i32) {
    %c0_i32 = arith.constant 0 : i32
    %c0_i32_0 = arith.constant 0 : i32
    %c0_i32_1 = arith.constant 0 : i32
    return %c0_i32, %c0_i32_0 : i32, i32
  }
  func.func @transform_33(%arg0: i32) -> (i32, i32) {
    %c0_i32 = arith.constant 0 : i32
    %c0_i32_0 = arith.constant 0 : i32
    %c0_i32_1 = arith.constant 0 : i32
    return %c0_i32, %c0_i32_0 : i32, i32
  }
  func.func @transform_34(%arg0: i32) -> (i32, i32) {
    %c0_i32 = arith.constant 0 : i32
    %c0_i32_0 = arith.constant 0 : i32
    %c0_i32_1 = arith.constant 0 : i32
    return %c0_i32, %c0_i32_0 : i32, i32
  }
  func.func @transform_35(%arg0: i32) -> (i32, i32) {
    %c0_i32 = arith.constant 0 : i32
    %c0_i32_0 = arith.constant 0 : i32
    %c0_i32_1 = arith.constant 0 : i32
    return %c0_i32, %c0_i32_0 : i32, i32
  }
  func.func @transform_36(%arg0: i32) -> (i32, i32, i32) {
    %c0_i32 = arith.constant 0 : i32
    %c0_i32_0 = arith.constant 0 : i32
    %c0_i32_1 = arith.constant 0 : i32
    return %arg0, %c0_i32, %c0_i32_0 : i32, i32, i32
  }
  func.func @transform_37(%arg0: i32) -> (i32, i32, i32) {
    %c0_i32 = arith.constant 0 : i32
    %c0_i32_0 = arith.constant 0 : i32
    %c0_i32_1 = arith.constant 0 : i32
    return %arg0, %c0_i32, %c0_i32_0 : i32, i32, i32
  }
  func.func @transform_38(%arg0: i32) -> (i32, i32, i32) {
    %c0_i32 = arith.constant 0 : i32
    %c0_i32_0 = arith.constant 0 : i32
    %c0_i32_1 = arith.constant 0 : i32
    return %arg0, %c0_i32, %c0_i32_0 : i32, i32, i32
  }
  func.func @transform_39(%arg0: i32) -> (i32, i32, i32) {
    %c0_i32 = arith.constant 0 : i32
    %c0_i32_0 = arith.constant 0 : i32
    %c0_i32_1 = arith.constant 0 : i32
    return %arg0, %c0_i32, %c0_i32_0 : i32, i32, i32
  }
}

</mosaic_0001>

<bundles_post_ra>
// kernel: vilt_forward.1
= control target key start
LH: loop header
LB: loop body
LE: loop exit
PB: predicated region body
PF: predicated region fallthrough
CT: control target
= control target key end

     0   :  { %s6003_s6 = smov 1   ;;  %s6004_s10 = smov 2   ;;  %s6962_s0 = inlined_call_operand.smem [shape: u32[40], index: -1, kind: input, shape index: {}] }
   0x1   :  { %s6056_s5 = sld [smem:[%s6962_s0]]   ;;  %s6005_s14 = smov 3  }
   0x2   :  { %s6061_s9 = sld [smem:[%s6962_s0 + %s6003_s6]]   ;;  %s6006_s18 = smov 4  }
   0x3   :  { %s6066_s13 = sld [smem:[%s6962_s0 + %s6004_s10]]   ;;  %s6007_s22 = smov 5  }
   0x4   :  { %s6071_s17 = sld [smem:[%s6962_s0 + %s6005_s14]]   ;;  %s6008_s26 = smov 6  }
   0x5   :  { %s6076_s21 = sld [smem:[%s6962_s0 + %s6006_s18]]   ;;  %s6009_s30 = smov 7  }
   0x6   :  { %s6081_s25 = sld [smem:[%s6962_s0 + %s6007_s22]]   ;;  %s6010_s4 = smov 8  }
   0x7   :  { %6995 = sst [smem:[#allocation8_spill]] %s6056_s5  ;;  %s6011_s10 = smov 9  }
   0x8   :  { %6996 = sst [smem:[#allocation9_spill]] %s6061_s9  ;;  %s6012_s15 = smov 10  }
   0x9   :  { %6997 = sst [smem:[#allocation10_spill]] %s6066_s13  ;;  %s6013_s20 = smov 11  }
   0xa   :  { %6998 = sst [smem:[#allocation11_spill]] %s6071_s17  ;;  %s6015_s1 = smov 13  }
   0xb   :  { %6999 = sst [smem:[#allocation12_spill]] %s6076_s21  ;;  %s6016_s7 = smov 14  }
   0xc   :  { %7000 = sst [smem:[#allocation13_spill]] %s6081_s25  ;;  %s6018_s22 = smov 16  }
   0xd   :  { %s6086_s29 = sld [smem:[%s6962_s0 + %s6008_s26]]   ;;  %s6014_s26 = smov 12  }
   0xe   :  { %s6091_s3 = sld [smem:[%s6962_s0 + %s6009_s30]]   ;;  %s6019_s28 = smov 17  }
   0xf   :  { %s6096_s8 = sld [smem:[%s6962_s0 + %s6010_s4]]  }
  0x10   :  { %s6101_s14 = sld [smem:[%s6962_s0 + %s6011_s10]]  }
  0x11   :  { %s6106_s19 = sld [smem:[%s6962_s0 + %s6012_s15]]   ;;  %s6017_s15 = smov 15  }
  0x12   :  { %s6111_s24 = sld [smem:[%s6962_s0 + %s6013_s20]]  }
  0x13   :  { %7001 = sst [smem:[#allocation14_spill]] %s6086_s29 }
  0x14   :  { %7002 = sst [smem:[#allocation15_spill]] %s6091_s3 }
  0x15   :  { %7003 = sst [smem:[#allocation16_spill]] %s6096_s8 }
  0x16   :  { %7004 = sst [smem:[#allocation17_spill]] %s6101_s14 }
  0x17   :  { %7005 = sst [smem:[#allocation18_spill]] %s6106_s19 }
  0x18   :  { %s6116_s30 = sld [smem:[%s6962_s0 + %s6014_s26]]  }
  0x19   :  { %s6121_s6 = sld [smem:[%s6962_s0 + %s6015_s1]]  }
  0x1a   :  { %s6126_s12 = sld [smem:[%s6962_s0 + %s6016_s7]]   ;;  %s6020_s7 = smov 18  }
  0x1b   :  { %s6131_s20 = sld [smem:[%s6962_s0 + %s6017_s15]]   ;;  %s6021_s15 = smov 19  }
  0x1c   :  { %s6136_s27 = sld [smem:[%s6962_s0 + %s6018_s22]]   ;;  %s6022_s22 = smov 20  }
  0x1d   :  { %s6141_s4 = sld [smem:[%s6962_s0 + %s6019_s28]]   ;;  %s6023_s28 = smov 21  }
  0x1e   :  { %s6146_s13 = sld [smem:[%s6962_s0 + %s6020_s7]]   ;;  %s6024_s7 = smov 22  }
  0x1f   :  { %7006 = sst [smem:[#allocation19_spill]] %s6121_s6 }
  0x20   :  { %7007 = sst [smem:[#allocation20_spill]] %s6126_s12 }
  0x21   :  { %7008 = sst [smem:[#allocation21_spill]] %s6131_s20 }
  0x22   :  { %s6151_s20 = sld [smem:[%s6962_s0 + %s6021_s15]]   ;;  %s6025_s15 = smov 23  }
  0x23   :  { %7009 = sst [smem:[#allocation22_spill]] %s6141_s4 }
  0x24   :  { %7010 = sst [smem:[#allocation23_spill]] %s6146_s13 }
  0x25   :  { %s6156_s6 = sld [smem:[%s6962_s0 + %s6022_s22]]   ;;  %s6026_s22 = smov 24  }
  0x26   :  { %s6161_s4 = sld [smem:[%s6962_s0 + %s6023_s28]]   ;;  %s6027_s28 = smov 25  }
  0x27   :  { %s6166_s13 = sld [smem:[%s6962_s0 + %s6024_s7]]   ;;  %s6028_s7 = smov 26  }
  0x28   :  { %7011 = sst [smem:[#allocation24_spill]] %s6151_s20 }
  0x29   :  { %s6171_s20 = sld [smem:[%s6962_s0 + %s6025_s15]]   ;;  %s6029_s15 = smov 27  }
  0x2b   :  { %7012 = sst [smem:[#allocation25_spill]] %s6156_s6 }
  0x2c   :  { %7013 = sst [smem:[#allocation26_spill]] %s6161_s4 }
  0x2d   :  { %7014 = sst [smem:[#allocation27_spill]] %s6166_s13 }
  0x2e   :  { %s6176_s6 = sld [smem:[%s6962_s0 + %s6026_s22]]   ;;  %s6030_s22 = smov 28  }
  0x2f   :  { %7015 = sst [smem:[#allocation28_spill]] %s6171_s20 }
  0x30   :  { %s6181_s4 = sld [smem:[%s6962_s0 + %s6027_s28]]   ;;  %s6031_s28 = smov 29  }
  0x31   :  { %s6186_s13 = sld [smem:[%s6962_s0 + %s6028_s7]]   ;;  %s6032_s7 = smov 30  }
  0x32   :  { %s6191_s20 = sld [smem:[%s6962_s0 + %s6029_s15]]   ;;  %s6033_s15 = smov 31  }
  0x34   :  { %7016 = sst [smem:[#allocation29_spill]] %s6176_s6 }
  0x35   :  { %s6196_s6 = sld [smem:[%s6962_s0 + %s6030_s22]]   ;;  %s6034_s22 = smov 32  }
  0x36   :  { %7017 = sst [smem:[#allocation30_spill]] %s6181_s4 }
  0x37   :  { %7018 = sst [smem:[#allocation31_spill]] %s6186_s13 }
  0x38   :  { %7019 = sst [smem:[#allocation32_spill]] %s6191_s20 }
  0x39   :  { %s6201_s4 = sld [smem:[%s6962_s0 + %s6031_s28]]   ;;  %s6035_s28 = smov 33  }
  0x3a   :  { %s6206_s13 = sld [smem:[%s6962_s0 + %s6032_s7]]   ;;  %s6036_s7 = smov 34  }
  0x3b   :  { %7020 = sst [smem:[#allocation33_spill]] %s6196_s6 }
  0x3c   :  { %s6211_s20 = sld [smem:[%s6962_s0 + %s6033_s15]]   ;;  %s6037_s15 = smov 35  }
  0x3d   :  { %s6216_s6 = sld [smem:[%s6962_s0 + %s6034_s22]]   ;;  %s6038_s22 = smov 36  }
  0x3f   :  { %7021 = sst [smem:[#allocation34_spill]] %s6201_s4 }
  0x40   :  { %7022 = sst [smem:[#allocation35_spill]] %s6206_s13 }
  0x41   :  { %s6221_s4 = sld [smem:[%s6962_s0 + %s6035_s28]]   ;;  %s6039_s28 = smov 37  }
  0x42   :  { %7023 = sst [smem:[#allocation36_spill]] %s6211_s20 }
  0x43   :  { %7024 = sst [smem:[#allocation37_spill]] %s6216_s6 }
  0x44   :  { %s6226_s13 = sld [smem:[%s6962_s0 + %s6036_s7]]   ;;  %s6040_s7 = smov 38  }
  0x45   :  { %s6231_s20 = sld [smem:[%s6962_s0 + %s6037_s15]]   ;;  %s6041_s15 = smov 39  }
  0x46   :  { %s6236_s6 = sld [smem:[%s6962_s0 + %s6038_s22]]  }
  0x47   :  { %7025 = sst [smem:[#allocation38_spill]] %s6221_s4 }
  0x48   :  { %s6241_s4 = sld [smem:[%s6962_s0 + %s6039_s28]]  }
  0x4a   :  { %7026 = sst [smem:[#allocation39_spill]] %s6226_s13 }
  0x4b   :  { %7027 = sst [smem:[#allocation40_spill]] %s6231_s20 }
  0x4c   :  { %7028 = sst [smem:[#allocation41_spill]] %s6236_s6 }
  0x4d   :  { %s6246_s13 = sld [smem:[%s6962_s0 + %s6040_s7]]  }
  0x4e   :  { %7029 = sst [smem:[#allocation42_spill]] %s6241_s4 }
  0x4f   :  { %s6251_s20 = sld [smem:[%s6962_s0 + %s6041_s15]]  }
  0x50   :  { %85 = vsyncpa [#allocation3], 0 }
  0x51   :  { %87 = vsyncpa [#allocation3 + $0x1], 0 }
  0x52   :  { %88 = vsyncpa [#allocation5], 0 }
  0x53   :  { %90 = vsyncpa [#allocation5 + $0x1], 0  ;;  %s6253_s22 = smov 0   ;;  %s6255_s23 = smov 0  }
  0x54   :  { %s6257_s26 = smov 0   ;;  %s6259_s28 = smov 0  }
  0x55 LB: > { %s7030_s4 = sld [smem:[#allocation42_spill]]  ;;  %s6274_s0 = sadd.s32 4294967295, %s6001_s28   ;;  %s5989_s22 = sphi %s6253_s22, %s7068_s22   ;;  %s6001_s28 = sphi %s6259_s28, %s7071_s28   ;;  %s5997_s26 = sphi %s6257_s26, %s7070_s26   ;;  %s5993_s23 = sphi %s6255_s23, %s7069_s23  }
  0x56   : > { %s7031_s19 = sld [smem:[#allocation18_spill]]  ;;  %s5010_s1 = sadd.s32 4294967294, %s6001_s28  }
  0x57   : > { %s7032_s12 = sld [smem:[#allocation20_spill]]  ;;  %s6278_s2 = sadd.s32 1, %s6001_s28  }
  0x58   : > { %s7033_s21 = sld [smem:[#allocation12_spill]]  ;;  %s900_s7 = sadd.s32 1, %s5997_s26 }
  0x59   : > { %s7034_s17 = sld [smem:[#allocation11_spill]]  ;;  %s897_s10 = ssub.s32 %s6001_s28, %s6278_s2 }
  0x5a   : > { %p910_p0 = scmp.ne.s32.totalorder %s5997_s26, %s5993_s23  ;;  %p898_p1 = scmp.eq.s32.totalorder %s897_s10, 0 }
  0x5b   : > { %p911_p2 = scmp.eq.s32.totalorder %s6274_s0, 1  ;;  %p916_p3 = scmp.ne.s32.totalorder %s5993_s23, %s5989_s22 }
  0x5c   : > { %p917_p4 = scmp.eq.s32.totalorder %s5010_s1, 1  ;;  %p5013_p7 = scmp.ge.s32.totalorder %s6001_s28, 1 }
  0x5d   : > { %s6289_s11 = scalar_select %p898_p1, %s5997_s26, %s900_s7  }
  0x5e   : > { %p6291_p5 = por %p911_p2, %p910_p0  ;;  %p6295_p6 = por %p917_p4, %p916_p3 }
  0x5f   : > { %p1108_p8 = scmp.lt.s32.totalorder %s6001_s28, 3 }
  0x61   : > { %p1109_p9 = pnand %p5013_p7, %p1108_p8 }
  0x62   : > { %p1224_p10 = scmp.lt.s32.totalorder (!%p1109_p9), %s6274_s0, 1  ;;  %s7037_s9 = sld [smem:[#allocation9_spill]] (!%p1109_p9) }
  0x63   : > { %1112 = sbr.rel (%p1109_p9) target bundleno = 7496 (0x1d48), region = 164  ;;  %s7038_s5 = sld [smem:[#allocation8_spill]] (!%p1109_p9) }
  0x64   : > { %s7039_s3 = sld [smem:[#allocation15_spill]] (!%p1109_p9) }
  0x65   : > { %s7040_s25 = sld [smem:[#allocation13_spill]] (!%p1109_p9) }
  0x66   : > { %s7041_s8 = sld [smem:[#allocation16_spill]] (!%p1109_p9) }
  0x67   : > { %s7042_s14 = sld [smem:[#allocation17_spill]] (!%p1109_p9) }
  0x68   : > { %v1382_v0 = vld [vmem:[%s7034_s17 + $0x38] sm:$0xff]  ;;  %v6042_v1 = vmov 0   ;;  %v6043_v2 = vmov 0.0   ;;  %v1381_v3 = vld [vmem:[%s7034_s17 + $0x30] sm:$0xff]  ;;  %s6306_s18 = scalar_select %p1224_p10, %s6274_s0, 1  ;;  %v1380_v4 = vld [vmem:[%s7034_s17 + $0x28] sm:$0xff]  ;;  %v1245_v11 = vlaneseq }
  0x69   : > { %5805 = vset.pattern.permute.xlu0 %v6042_v1  ;;  %5374 = vmatprep.subr.mxu1 %v6043_v2  ;;  %vm6044_vm0 = vmmov 0   ;;  %v1379_v5 = vld [vmem:[%s7034_s17 + $0x20] sm:$0xff]  ;;  %v1378_v7 = vld [vmem:[%s7034_s17 + $0x18] sm:$0xff]  ;;  %v1377_v8 = vld [vmem:[%s7034_s17 + $0x10] sm:$0xff]  ;;  %vm1295_vm1 = vcmask 523264   ;;  %vm1459_vm3 = vcmask 261120  }
  0x6a   : > { %5375 = vmatpush3.msra.mxu1 %v1382_v0  ;;  %1298 = vmatprep.subr.mxu0 %v6043_v2  ;;  %s6312_s1 = sshll.u32 %s6306_s18, 3  ;;  %v1376_v9 = vld [vmem:[%s7034_s17 + $0x8] sm:$0xff]  ;;  %v1375_v10 = vld [vmem:[%s7034_s17] sm:$0xff]  ;;  %v6329_v12 = vand.u32 127, %v1245_v11  ;;  %v1283_v15 = vld [vmem:[%s7033_s21 + $0x78] sm:$0xff]  ;;  %s7043_s29 = sld [smem:[#allocation14_spill]] }
  0x6b   : > { %5376 = vmatprep.subr.mxu1 %v6043_v2  ;;  %5390 = vmatprep.mubr.msk.f32.mxu1 %vm6044_vm0, %v6043_v2  ;;  %s1232_s7 = scalar_lea.vmem %s7037_s9, %s6312_s1  ;;  %v1282_v16 = vld [vmem:[%s7033_s21 + $0x70] sm:$0xff]  ;;  %v1281_v17 = vld [vmem:[%s7033_s21 + $0x68] sm:$0xff]  ;;  %v1280_v18 = vld [vmem:[%s7033_s21 + $0x60] sm:$0xff]  ;;  %s1228_s10 = scalar_lea.vmem %s7038_s5, %s6312_s1  ;;  %vm1492_vm4 = vcmask 1040384   ;;  %vm1499_vm5 = vcmask 258048   ;;  %vm2035_vm13 = vcmask 1044480  }
  0x6c   : > { %5377 = vmatpush3.msra.mxu1 %v1381_v3  ;;  %v1368_v6 = vld [vmem:[%s1232_s7] sm:$0xff]  ;;  %1299 = vmatpush1.msra.mxu0 %v1283_v15  ;;  %v1279_v19 = vld [vmem:[%s7033_s21 + $0x58] sm:$0xff]  ;;  %v1278_v20 = vld [vmem:[%s7033_s21 + $0x50] sm:$0xff]  ;;  %s7044_s7 = sld [smem:[#allocation19_spill]]  ;;  %vm1252_vm6 = vcmp.ge.s32.totalorder %v6329_v12, 8  ;;  %vm1253_vm7 = vcmp.lt.s32.totalorder %v6329_v12, 16 }
  0x6d   : > { %5378 = vmatprep.subr.mxu1 %v6043_v2  ;;  %1370 = vperm.xlu0 %5805, %v1368_v6   ;;  %v1267_v21 = vld [vmem:[%s1228_s10] sm:$0xff]  ;;  %v1277_v23 = vld [vmem:[%s7033_s21 + $0x48] sm:$0xff]  ;;  %v1275_v25 = vld [vmem:[%s7033_s21 + $0x38] sm:$0xff]  ;;  %s7045_s10 = sld [smem:[#allocation21_spill]]  ;;  %vm1248_vm8 = vcmp.lt.s32.totalorder %v6329_v12, 8  ;;  %vm1257_vm10 = vcmp.ge.s32.totalorder %v6329_v12, 16 }
  0x6e   : > { %5379 = vmatpush3.msra.mxu1 %v1380_v4  ;;  %1300 = vmatprep.subr.mxu0 %v6043_v2  ;;  %v1294_v22 = vcombine.high %v1267_v21, %v1267_v21  ;;  %v1276_v24 = vld [vmem:[%s7033_s21 + $0x40] sm:$0xff]  ;;  %v1274_v26 = vld [vmem:[%s7033_s21 + $0x30] sm:$0xff]  ;;  %v1273_v27 = vld [vmem:[%s7033_s21 + $0x28] sm:$0xff]  ;;  %vm1258_vm11 = vcmp.lt.s32.totalorder %v6329_v12, 24  ;;  %vm1898_vm14 = vcmask 102400   ;;  %vm1894_vm15 = vcmask 105472  }
  0x6f   : > { %5380 = vmatprep.subr.mxu1 %v6043_v2  ;;  %1301 = vmatpush1.msra.mxu0 %v1282_v16  ;;  %v1272_v28 = vld [vmem:[%s7033_s21 + $0x20] sm:$0xff]  ;;  %v1271_v29 = vld [vmem:[%s7033_s21 + $0x18] sm:$0xff]  ;;  %v1270_v30 = vld [vmem:[%s7033_s21 + $0x10] sm:$0xff]  ;;  %s7047_s5 = sld [smem:[#allocation23_spill]] }
  0x70   : > { %5381 = vmatpush3.msra.mxu1 %v1379_v5  ;;  %1302 = vmatprep.subr.mxu0 %v6043_v2  ;;  %v1269_v31 = vld [vmem:[%s7033_s21 + $0x8] sm:$0xff]  ;;  %v1268_v32 = vld [vmem:[%s7033_s21] sm:$0xff]  ;;  %v1291_v33 = vld [vmem:[%s7033_s21 + $0xb8] sm:$0xff]  ;;  %s7049_s9 = sld [smem:[#allocation27_spill]] }
  0x71   : > { %5382 = vmatprep.subr.mxu1 %v6043_v2  ;;  %1303 = vmatpush1.msra.mxu0 %v1281_v17  ;;  %v1290_v34 = vld [vmem:[%s7033_s21 + $0xb0] sm:$0xff]  ;;  %v1289_v35 = vld [vmem:[%s7033_s21 + $0xa8] sm:$0xff]  ;;  %v1288_v36 = vld [vmem:[%s7033_s21 + $0xa0] sm:$0xff]  ;;  %s7051_s17 = sld [smem:[#allocation26_spill]] }
  0x72   : > { %5383 = vmatpush3.msra.mxu1 %v1378_v7  ;;  %1304 = vmatprep.subr.mxu0 %v6043_v2  ;;  %v1287_v37 = vld [vmem:[%s7033_s21 + $0x98] sm:$0xff]  ;;  %v1286_v38 = vld [vmem:[%s7033_s21 + $0x90] sm:$0xff]  ;;  %v1285_v39 = vld [vmem:[%s7033_s21 + $0x88] sm:$0xff]  ;;  %s7058_s6 = sld [smem:[#allocation41_spill]] }
  0x73   : > { %5384 = vmatprep.subr.mxu1 %v6043_v2  ;;  %1305 = vmatpush1.msra.mxu0 %v1280_v18  ;;  %v1284_v40 = vld [vmem:[%s7033_s21 + $0x80] sm:$0xff]  ;;  %v1542_v17 = vld [vmem:[%s6116_s30 + $0x18] sm:$0xff]  ;;  %v1541_v18 = vld [vmem:[%s6116_s30 + $0x10] sm:$0xff]  ;;  %s7052_s21 = sld [smem:[#allocation29_spill]] }
  0x74   : > { %5385 = vmatpush3.msra.mxu1 %v1377_v8  ;;  %1306 = vmatprep.subr.mxu0 %v6043_v2  ;;  %v1383_v41 = vld [vmem:[%s7039_s3] sm:$0xff]  ;;  %vm1254_vm9 = vmand %vm1252_vm6, %vm1253_vm7  ;;  %s7046_s3 = sld [smem:[#allocation22_spill]]  ;;  %vm4515_vm7 = vcmask 253952  }
  0x75   : > { %5386 = vmatprep.subr.mxu1 %v6043_v2  ;;  %1307 = vmatpush1.msra.mxu0 %v1279_v19  ;;  %v1292_v56 = vld [vmem:[%s7040_s25] sm:$0xf]  ;;  %v1540_v19 = vld [vmem:[%s6116_s30 + $0x8] sm:$0xff]  ;;  %vm1259_vm12 = vmand %vm1257_vm10, %vm1258_vm11  ;;  %s7053_s25 = sld [smem:[#allocation28_spill]] }
  0x76   : > { %5387 = vmatpush3.msra.mxu1 %v1376_v9  ;;  %1308 = vmatprep.subr.mxu0 %v6043_v2  ;;  %v5028_v59 = vld [vmem:[%s7041_s8] ss:$0 sm:$0xff]  ;;  %s7048_s8 = sld [smem:[#allocation24_spill]] }
  0x77   : > { %5388 = vmatprep.subr.mxu1 %v6043_v2  ;;  %1309 = vmatpush1.msra.mxu0 %v1278_v20  ;;  %v5029_v62 = vld [vmem:[%s7042_s14] ss:$0 sm:$0xff]  ;;  %s7050_s14 = sld [smem:[#allocation25_spill]] }
  0x78   : > { %5389 = vmatpush3.msra.mxu1 %v1375_v10  ;;  %5025 = vmatprep.mubr.msk.f32.mxu0 %vm1295_vm1, %v1294_v22  ;;  %v1488_v0 = vld [vmem:[%s7043_s29] sm:$0x1]  ;;  %s7054_s29 = sld [smem:[#allocation30_spill]] }
  0x79   : > { %1310 = vmatprep.subr.mxu0 %v6043_v2  ;;  %5393 = vmatprep.subr.mxu1 %v1542_v17  ;;  %v1539_v20 = vld [vmem:[%s6116_s30] sm:$0xff] }
  0x7a   : > { %1311 = vmatpush1.msra.mxu0 %v1277_v23 }
  0x7b   : > { %1312 = vmatprep.subr.mxu0 %v6043_v2 }
  0x7c   : > { %1313 = vmatpush1.msra.mxu0 %v1276_v24 }
  0x7d   : > { %1314 = vmatprep.subr.mxu0 %v6043_v2 }
  0x7e   : > { %1315 = vmatpush1.msra.mxu0 %v1275_v25 }
  0x7f   : > { %1316 = vmatprep.subr.mxu0 %v6043_v2 }
  0x80   : > { %1317 = vmatpush1.msra.mxu0 %v1274_v26 }
  0x81   : > { %1318 = vmatprep.subr.mxu0 %v6043_v2 }
  0x82   : > { %1319 = vmatpush1.msra.mxu0 %v1273_v27 }
  0x83   : > { %1320 = vmatprep.subr.mxu0 %v6043_v2 }
  0x84   : > { %1321 = vmatpush1.msra.mxu0 %v1272_v28 }
  0x85   : > { %1322 = vmatprep.subr.mxu0 %v6043_v2 }
  0x86   : > { %1323 = vmatpush1.msra.mxu0 %v1271_v29  ;;  %v5030_v29 = vld [vmem:[%s7031_s19] ss:$0 sm:$0xff] }
  0x87   : > { %1324 = vmatprep.subr.mxu0 %v6043_v2 }
  0x88   : > { %1325 = vmatpush1.msra.mxu0 %v1270_v30 }
  0x89   : > { %1326 = vmatprep.subr.mxu0 %v6043_v2 }
  0x8a   : > { %1327 = vmatpush1.msra.mxu0 %v1269_v31  ;;  %v5031_v31 = vld [vmem:[%s6111_s24] ss:$0 sm:$0xff] }
  0x8b   : > { %1328 = vmatprep.subr.mxu0 %v6043_v2 }
  0x8c   : > { %1329 = vmatpush1.msra.mxu0 %v1268_v32 }
  0x8d   : > { %1346 = vmatprep.subr.mxu0 %v6043_v2 }
  0x8e   : > { %1347 = vmatpush2.msra.mxu0 %v1291_v33 }
  0x8f   : > { %1348 = vmatprep.subr.mxu0 %v6043_v2 }
  0x90   : > { %1349 = vmatpush2.msra.mxu0 %v1290_v34 }
  0x91   : > { %1350 = vmatprep.subr.mxu0 %v6043_v2 }
  0x92   : > { %1351 = vmatpush2.msra.mxu0 %v1289_v35 }
  0x93   : > { %1352 = vmatprep.subr.mxu0 %v6043_v2 }
  0x94   : > { %1353 = vmatpush2.msra.mxu0 %v1288_v36 }
  0x95   : > { %1354 = vmatprep.subr.mxu0 %v6043_v2 }
  0x96   : > { %1355 = vmatpush2.msra.mxu0 %v1287_v37 }
  0x97   : > { %1356 = vmatprep.subr.mxu0 %v6043_v2 }
  0x98   : > { %1357 = vmatpush2.msra.mxu0 %v1286_v38  ;;  %v1633_v38 = vld [vmem:[%s7032_s12 + $0x10] sm:$0xff] }
  0x99   : > { %1358 = vmatprep.subr.mxu0 %v6043_v2 }
  0x9a   : > { %1359 = vmatpush2.msra.mxu0 %v1285_v39  ;;  %v1632_v39 = vld [vmem:[%s7032_s12 + $0x8] sm:$0xff] }
  0x9b   : > { %1360 = vmatprep.subr.mxu0 %v6043_v2 }
  0x9c   : > { %1361 = vmatpush2.msra.mxu0 %v1284_v40  ;;  %v1631_v40 = vld [vmem:[%s7032_s12] sm:$0xff] }
  0x9d   : > { %1363 = vmatmul.mubr.f32.vlgmr.msra.gmra.mxu0 %v1267_v21  ;;  %v1634_v21 = vld [vmem:[%s7032_s12 + $0x18] sm:$0xff] }
  0xe8   : > { %v1371_v13 = vpop.permute.xlu0 %1370 }
  0xe9   : > { %vm1372_vm2 = vcmp.eq.s32.totalorder %v6329_v12, %v1371_v13 }
  0xea   : > { %v5026_v14 = vsel %vm1372_vm2, 1.0, %v6043_v2  ;;  %vm1262_vm2 = vcmp.ge.s32.totalorder %v6329_v12, 24 }
  0xeb   : > { %5391 = vmatmul.mubr.msk.f32.vlgmr.msra.gmra.mxu1 %vm1295_vm1, %v5026_v14 }
  0xec   : > { %5394 = vmatpush3.msra.mxu1 %v1542_v17 }
  0xed   : > { %5395 = vmatprep.subr.mxu1 %v1541_v18 }
  0xee   : > { %5396 = vmatpush3.msra.mxu1 %v1541_v18 }
  0xef   : > { %5397 = vmatprep.subr.mxu1 %v1540_v19 }
  0xf0   : > { %5398 = vmatpush3.msra.mxu1 %v1540_v19 }
  0xf1   : > { %5399 = vmatprep.subr.mxu1 %v1539_v20 }
  0xf2   : > { %5400 = vmatpush3.msra.mxu1 %v1539_v20 }
  0xf3   : > { %5404 = vmatprep.subr.mxu1 %v1634_v21 }
 0x15d   : > { %v1364_v51 = vpop.f32.mrf.mxu0 }
 0x15e   : > { %v1365_v57 = vadd.f32 %v1364_v51, %v1292_v56  ;;  %v5035_v51 = vld [vmem:[%s7045_s10] ss:$0 sm:$0xff] }
 0x15f   : > { %v1366_v52 = vpop.f32.mrf.mxu0 }
 0x160   : > { %v1490_v61 = vrot.slane %v1365_v57, 7 }
 0x162   : > { %v6393_v3 = vsel %vm1492_vm4, %v1488_v0, %v1490_v61  ;;  %v6468_v61 = vsel %vm1259_vm12, 1.0, %v6043_v2  ;;  %vm1263_vm4 = vcmp.lt.s32.totalorder %v6329_v12, 32 }
 0x163   : > { %v1500_v5 = vsel %vm1499_vm5, %v6393_v3, 0.0  ;;  %vm1264_vm6 = vmand %vm1262_vm2, %vm1263_vm4 }
 0x1ab   : > { %v1453_v42 = vpop.f32.mrf.mxu1 }
 0x1ac   : > { %v1454_v43 = vadd.f32 %v1453_v42, %v1383_v41  ;;  %v1720_v41 = vld [vmem:[%s6136_s27 + $0x18] sm:$0xff]  ;;  %v1719_v42 = vld [vmem:[%s6136_s27 + $0x10] sm:$0xff] }
 0x1ad   : > { %v5392_v44 = vpop.f32.mrf.mxu1 }
 0x1ae   : > { %v1460_v45 = vsel %vm1459_vm3, %v1454_v43, 0.0  ;;  %v1717_v44 = vld [vmem:[%s6136_s27] sm:$0xff] }
 0x1af   : > { %1461 = vadd.xlane.f32.xlu0 %v1460_v45 }
 0x238   : > { %v1462_v46 = vpop.xlane.xlu0 %1461 }
 0x239   : > { %v1464_v47 = vmul.f32 0.03125, %v1462_v46 }
 0x23b   : > { %v1465_v48 = vsub.f32 %v1454_v43, %v1464_v47  ;;  %v1718_v43 = vld [vmem:[%s6136_s27 + $0x8] sm:$0xff]  ;;  %v5032_v47 = vld [vmem:[%s7044_s7] ss:$0 sm:$0xff] }
 0x23d   : > { %v1466_v49 = vmul.f32 %v1465_v48, %v1465_v48 }
 0x23f   : > { %v1467_v50 = vsel %vm1459_vm3, %v1466_v49, 0.0  ;;  %v6430_v49 = vsel %vm1248_vm8, 1.0, %v6043_v2 }
 0x240   : > { %1468 = vadd.xlane.f32.xlu1 %v1467_v50  ;;  %v6433_v50 = vsel %vm1254_vm9, 1.0, %v6043_v2 }
 0x2c9   : > { %v1469_v53 = vpop.xlane.xlu1 %1468 }
 0x2ca   : > { %v1470_v54 = vmul.f32 0.03125, %v1469_v53 }
 0x2cc   : > { %v1471_v55 = vadd.f32 1e-12, %v1470_v54 }
 0x2ce   : > { %5807 = vrsqrt.f32 %v1471_v55 }
 0x2db   : > { %v5808_v58 = vpop.eup %5807 }
 0x2dc   : > { %v1473_v60 = vmul.f32 %v5808_v58, %v1465_v48 }
 0x2de   : > { %v1480_v63 = vmul.f32 %v5028_v59, %v1473_v60  ;;  %v5038_v59 = vld [vmem:[%s7046_s3] ss:$0 sm:$0xff] }
 0x2e0   : > { %v6391_v1 = vadd.f32 %v5029_v62, %v1480_v63 }
 0x2e2   : > { %v1496_v4 = vsel %vm1459_vm3, %v6391_v1, 0.0 }
 0x2e3   : > { %1497 = vadd.xlane.f32.xlu1 %v1496_v4 }
 0x2e7   : > { %1501 = vadd.xlane.f32.xlu1 %v1500_v5 }
 0x36c   : > { %v1498_v6 = vpop.xlane.xlu1 %1497 }
 0x36d   : > { %v1503_v7 = vmul.f32 0.03125, %v1498_v6 }
 0x36f   : > { %v1505_v8 = vsub.f32 %v6391_v1, %v1503_v7 }
 0x370   : > { %v1502_v9 = vpop.xlane.xlu1 %1501 }
 0x371   : > { %v1504_v10 = vmul.f32 0.03125, %v1502_v9  ;;  %v1507_v11 = vmul.f32 %v1505_v8, %v1505_v8 }
 0x373   : > { %v1506_v13 = vsub.f32 %v6393_v3, %v1504_v10  ;;  %v1509_v14 = vsel %vm1459_vm3, %v1507_v11, 0.0 }
 0x374   : > { %1510 = vadd.xlane.f32.xlu1 %v1509_v14 }
 0x375   : > { %v1508_v15 = vmul.f32 %v1506_v13, %v1506_v13 }
 0x377   : > { %v1512_v16 = vsel %vm1499_vm5, %v1508_v15, 0.0 }
 0x378   : > { %1513 = vadd.xlane.f32.xlu1 %v1512_v16 }
 0x3fd   : > { %v1511_v22 = vpop.xlane.xlu1 %1510 }
 0x3fe   : > { %v1515_v23 = vmul.f32 0.03125, %v1511_v22 }
 0x400   : > { %v1517_v24 = vadd.f32 1e-06, %v1515_v23 }
 0x401   : > { %v1514_v25 = vpop.xlane.xlu1 %1513 }
 0x402   : > { %5809 = vrsqrt.f32 %v1517_v24  ;;  %v1516_v26 = vmul.f32 0.03125, %v1514_v25 }
 0x404   : > { %v1518_v27 = vadd.f32 1e-06, %v1516_v26 }
 0x406   : > { %5811 = vrsqrt.f32 %v1518_v27 }
 0x40f   : > { %v5810_v28 = vpop.eup %5809 }
 0x410   : > { %v1521_v30 = vmul.f32 %v5810_v28, %v1505_v8 }
 0x412   : > { %v1529_v32 = vmul.f32 %v5030_v29, %v1521_v30 }
 0x413   : > { %v5812_v33 = vpop.eup %5811 }
 0x414   : > { %v1522_v34 = vmul.f32 %v5812_v33, %v1506_v13  ;;  %v1537_v35 = vadd.f32 %v5031_v31, %v1529_v32 }
 0x416   : > { %v1530_v36 = vmul.f32 %v5030_v29, %v1522_v34  ;;  %5401 = vmatprep.mubr.msk.f32.mxu1 %vm1459_vm3, %v1537_v35 }
 0x418   : > { %v1538_v37 = vadd.f32 %v5031_v31, %v1530_v36 }
 0x41a   : > { %5402 = vmatmul.mubr.msk.f32.vlgmr.msra.gmra.mxu1 %vm1459_vm3, %v1538_v37 }
 0x41b   : > { %5405 = vmatpush3.msra.mxu1 %v1634_v21  ;;  %5412 = vmatprep.mubr.msk.f32.mxu1 %vm1459_vm3, %v1537_v35 }
 0x41c   : > { %5406 = vmatprep.subr.mxu1 %v1633_v38 }
 0x41d   : > { %5407 = vmatpush3.msra.mxu1 %v1633_v38 }
 0x41e   : > { %5408 = vmatprep.subr.mxu1 %v1632_v39 }
 0x41f   : > { %5409 = vmatpush3.msra.mxu1 %v1632_v39 }
 0x420   : > { %5410 = vmatprep.subr.mxu1 %v1631_v40 }
 0x421   : > { %5411 = vmatpush3.msra.mxu1 %v1631_v40 }
 0x422   : > { %5413 = vmatmul.mubr.msk.f32.vlgmr.msra.gmra.mxu1 %vm1459_vm3, %v1538_v37  ;;  %5415 = vmatprep.subr.mxu1 %v1720_v41 }
 0x423   : > { %5416 = vmatpush3.msra.mxu1 %v1720_v41  ;;  %5423 = vmatprep.mubr.msk.f32.mxu1 %vm1459_vm3, %v1537_v35 }
 0x424   : > { %5417 = vmatprep.subr.mxu1 %v1719_v42 }
 0x425   : > { %5418 = vmatpush3.msra.mxu1 %v1719_v42 }
 0x426   : > { %5419 = vmatprep.subr.mxu1 %v1718_v43 }
 0x427   : > { %5420 = vmatpush3.msra.mxu1 %v1718_v43 }
 0x428   : > { %5421 = vmatprep.subr.mxu1 %v1717_v44 }
 0x429   : > { %5422 = vmatpush3.msra.mxu1 %v1717_v44 }
 0x42a   : > { %5424 = vmatmul.mubr.msk.f32.vlgmr.msra.gmra.mxu1 %vm1459_vm3, %v1538_v37 }
 0x4da   : > { %v5403_v45 = vpop.f32.mrf.mxu1 }
 0x4db   : > { %v6456_v58 = vadd.f32 %v5403_v45, %v5032_v47 }
 0x4dc   : > { %v1622_v46 = vpop.f32.mrf.mxu1 }
 0x4dd   : > { %v6427_v48 = vadd.f32 %v5032_v47, %v1622_v46  ;;  %v1804_v62 = vmul.f32 %v6430_v49, %v6456_v58  ;;  %v1921_v63 = vmul.f32 %v6433_v50, %v6456_v58  ;;  %v2199_v10 = vmul.f32 %v6468_v61, %v6456_v58 }
 0x4df   : > { %v1803_v52 = vmul.f32 %v6430_v49, %v6427_v48  ;;  %v1920_v53 = vmul.f32 %v6433_v50, %v6427_v48  ;;  %v2198_v5 = vmul.f32 %v6468_v61, %v6427_v48 }
 0x4e1   : > { %5430 = vmatprep.mubr.msk.f32.mxu1 %vm1459_vm3, %v1803_v52  ;;  %5437 = vmatprep.mubr.msk.f32.mxu0 %vm1459_vm3, %v1920_v53 }
 0x4e2   : > { %v5414_v54 = vpop.f32.mrf.mxu1 }
 0x4e3   : > { %v6442_v55 = vadd.f32 %v5414_v54, %v5035_v51 }
 0x4e4   : > { %v1708_v56 = vpop.f32.mrf.mxu1 }
 0x4e5   : > { %v6446_v57 = vadd.f32 %v5035_v51, %v1708_v56  ;;  %5426 = vmatprep.subr.msk.mxu1 %vm1459_vm3, %v6442_v55  ;;  %5433 = vmatprep.subr.msk.mxu0 %vm1459_vm3, %v6442_v55 }
 0x4e6   : > { %5427 = vmatpush3.xpose.msk.msra.mxu1 %vm1459_vm3, %v6442_v55  ;;  %5434 = vmatpush3.xpose.msk.msra.mxu0 %vm1459_vm3, %v6442_v55 }
 0x4e7   : > { %5428 = vmatprep.subr.msk.mxu1 %vm1459_vm3, %v6446_v57  ;;  %5435 = vmatprep.subr.msk.mxu0 %vm1459_vm3, %v6446_v57 }
 0x4ea   : > { %v5425_v60 = vpop.f32.mrf.mxu1  ;;  %5429 = vmatpush3.xpose.msk.msra.mxu1 %vm1459_vm3, %v6446_v57  ;;  %5436 = vmatpush3.xpose.msk.msra.mxu0 %vm1459_vm3, %v6446_v57 }
 0x4eb   : > { %v6474_v0 = vadd.f32 %v5425_v60, %v5038_v59  ;;  %5454 = vmatprep.subr.msk.mxu0 %vm1459_vm3, %v6442_v55 }
 0x4ec   : > { %v1794_v4 = vpop.f32.mrf.mxu1 }
 0x4ed   : > { %v6480_v6 = vadd.f32 %v5038_v59, %v1794_v4  ;;  %5431 = vmatmul.mubr.msk.f32.vlgmr.msra.gmra.mxu1 %vm1459_vm3, %v1804_v62  ;;  %5438 = vmatmul.mubr.msk.f32.vlgmr.msra.gmra.mxu0 %vm1459_vm3, %v1921_v63  ;;  %v2028_v7 = vmul.f32 %v6433_v50, %v6474_v0  ;;  %v6497_v9 = vmul.f32 %v6430_v49, %v6474_v0 }
 0x4ee   : > { %5455 = vmatpush3.xpose.msk.msra.mxu0 %vm1459_vm3, %v6442_v55  ;;  %5458 = vmatprep.mubr.msk.f32.mxu0 %vm1459_vm3, %v2198_v5 }
 0x4ef   : > { %5440 = vmatprep.subr.msk.mxu1 %vm2035_vm13, %v2028_v7  ;;  %5456 = vmatprep.subr.msk.mxu0 %vm1459_vm3, %v6446_v57  ;;  %v2027_v8 = vmul.f32 %v6433_v50, %v6480_v6 }
 0x4f0   : > { %5441 = vmatpush3.msk.msra.mxu1 %vm2035_vm13, %v2028_v7 }
 0x4f1   : > { %5442 = vmatprep.subr.mxu1 %v2027_v8 }
 0x4f2   : > { %5443 = vmatpush3.msra.mxu1 %v2027_v8  ;;  %5457 = vmatpush3.xpose.msk.msra.mxu0 %vm1459_vm3, %v6446_v57 }
 0x4f3   : > { %5447 = vmatprep.subr.msk.mxu1 %vm2035_vm13, %v6497_v9 }
 0x4f5   : > { %5459 = vmatmul.mubr.msk.f32.vlgmr.msra.gmra.mxu0 %vm1459_vm3, %v2199_v10 }
 0x5ad   : > { %v5432_v11 = vpop.f32.mrf.mxu1  ;;  %v5439_v13 = vpop.f32.mrf.mxu0 }
 0x5ae   : > { %v2004_v14 = vmul.f32 0.35355338, %v5439_v13  ;;  %v1893_v23 = vmul.f32 0.35355338, %v5432_v11 }
 0x5af   : > { %v1994_v15 = vpop.f32.mrf.mxu0  ;;  %v1883_v18 = vpop.f32.mrf.mxu1 }
 0x5b0   : > { %v2003_v16 = vmul.f32 0.35355338, %v1994_v15  ;;  %v2008_v17 = vsel %vm1898_vm14, %v2004_v14, -inf  ;;  %v1892_v19 = vmul.f32 0.35355338, %v1883_v18  ;;  %v1899_v28 = vsel %vm1898_vm14, %v1893_v23, -inf }
 0x5b1   : > { %2009 = vmax.xlane.f32.xlu1 %v2008_v17 }
 0x5b2   : > { %v2005_v20 = vsel %vm1894_vm15, %v2003_v16, -inf  ;;  %v1895_v25 = vsel %vm1894_vm15, %v1892_v19, -inf }
 0x5b5   : > { %v5460_v21 = vpop.f32.mrf.mxu0  ;;  %2006 = vmax.xlane.f32.xlu1 %v2005_v20 }
 0x5b6   : > { %v2282_v27 = vmul.f32 0.35355338, %v5460_v21  ;;  %v1918_v21 = vmul.f32 %v6430_v49, %v6480_v6 }
 0x5b7   : > { %v2272_v22 = vpop.f32.mrf.mxu0 }
 0x5b8   : > { %v2281_v24 = vmul.f32 0.35355338, %v2272_v22  ;;  %v2286_v29 = vsel %vm1898_vm14, %v2282_v27, -inf }
 0x5b9   : > { %1896 = vmax.xlane.f32.xlu1 %v1895_v25 }
 0x5ba   : > { %v2283_v26 = vsel %vm1894_vm15, %v2281_v24, -inf }
 0x5bb   : > { %2284 = vmax.xlane.f32.xlu0 %v2283_v26 }
 0x5bd   : > { %1900 = vmax.xlane.f32.xlu1 %v1899_v28  ;;  %v2305_v28 = vmul.f32 %v6468_v61, %v6480_v6 }
 0x5c1   : > { %2287 = vmax.xlane.f32.xlu1 %v2286_v29 }
 0x63a   : > { %v2010_v30 = vpop.xlane.xlu1 %2009 }
 0x63b   : > { %v2012_v31 = vsub.f32 %v2004_v14, %v2010_v30  ;;  %v6536_v30 = vsel %vm1264_vm6, 1.0, %v6043_v2 }
 0x63d   : > { %v2015_v32 = vmul.f32 1.442695, %v2012_v31  ;;  %v2393_v31 = vmul.f32 %v6536_v30, %v6427_v48  ;;  %v2394_v48 = vmul.f32 %v6536_v30, %v6456_v58 }
 0x63e   : > { %v2007_v33 = vpop.xlane.xlu1 %2006 }
 0x63f   : > { %5813 = vpow2.f32 %v2015_v32  ;;  %v2011_v34 = vsub.f32 %v2003_v16, %v2007_v33  ;;  %v2501_v32 = vmul.f32 %v6536_v30, %v6474_v0 }
 0x641   : > { %v2013_v35 = vmul.f32 1.442695, %v2011_v34 }
 0x642   : > { %v1897_v36 = vpop.xlane.xlu1 %1896 }
 0x643   : > { %5815 = vpow2.f32 %v2013_v35  ;;  %v1902_v37 = vsub.f32 %v1892_v19, %v1897_v36 }
 0x644   : > { %v2285_v38 = vpop.xlane.xlu0 %2284 }
 0x645   : > { %v1904_v39 = vmul.f32 1.442695, %v1902_v37  ;;  %v2289_v40 = vsub.f32 %v2281_v24, %v2285_v38 }
 0x646   : > { %v1901_v41 = vpop.xlane.xlu1 %1900 }
 0x647   : > { %5817 = vpow2.f32 %v1904_v39  ;;  %v2291_v42 = vmul.f32 1.442695, %v2289_v40  ;;  %v1903_v43 = vsub.f32 %v1893_v23, %v1901_v41  ;;  %v2306_v23 = vmul.f32 %v6468_v61, %v6474_v0 }
 0x649   : > { %5819 = vpow2.f32 %v2291_v42  ;;  %v1906_v44 = vmul.f32 1.442695, %v1903_v43 }
 0x64a   : > { %v2288_v45 = vpop.xlane.xlu1 %2287 }
 0x64b   : > { %5821 = vpow2.f32 %v1906_v44  ;;  %v2290_v46 = vsub.f32 %v2282_v27, %v2288_v45 }
 0x64c   : > { %v5814_v47 = vpop.eup %5813 }
 0x64d   : > { %v2293_v51 = vmul.f32 1.442695, %v2290_v46  ;;  %v2020_v52 = vsel %vm1898_vm14, %v5814_v47, 0.0 }
 0x64e   : > { %2021 = vadd.xlane.f32.xlu1 %v2020_v52 }
 0x64f   : > { %5823 = vpow2.f32 %v2293_v51 }
 0x650   : > { %v5816_v53 = vpop.eup %5815 }
 0x651   : > { %v2017_v54 = vsel %vm1894_vm15, %v5816_v53, 0.0 }
 0x652   : > { %2018 = vadd.xlane.f32.xlu0 %v2017_v54 }
 0x654   : > { %v5818_v56 = vpop.eup %5817 }
 0x655   : > { %v1908_v59 = vsel %vm1894_vm15, %v5818_v56, 0.0 }
 0x656   : > { %v5820_v60 = vpop.eup %5819  ;;  %1909 = vadd.xlane.f32.xlu0 %v1908_v59 }
 0x657   : > { %v2295_v63 = vsel %vm1894_vm15, %v5820_v60, 0.0 }
 0x658   : > { %v5822_v62 = vpop.eup %5821 }
 0x659   : > { %v1911_v4 = vsel %vm1898_vm14, %v5822_v62, 0.0 }
 0x65a   : > { %2296 = vadd.xlane.f32.xlu0 %v2295_v63  ;;  %1912 = vadd.xlane.f32.xlu1 %v1911_v4 }
 0x65c   : > { %v5824_v5 = vpop.eup %5823 }
 0x65d   : > { %v2298_v7 = vsel %vm1898_vm14, %v5824_v5, 0.0 }
 0x65e   : > { %2299 = vadd.xlane.f32.xlu1 %v2298_v7 }
 0x6d7   : > { %v2022_v8 = vpop.xlane.xlu1 %2021 }
 0x6d8   : > { %5825 = vrcp.f32 %v2022_v8 }
 0x6db   : > { %v2019_v10 = vpop.xlane.xlu0 %2018 }
 0x6dc   : > { %5827 = vrcp.f32 %v2019_v10 }
 0x6df   : > { %v1910_v11 = vpop.xlane.xlu0 %1909 }
 0x6e0   : > { %5829 = vrcp.f32 %v1910_v11  ;;  %v2590_v11 = vld [vmem:[%s7047_s5 + $0x10] sm:$0xff] }
 0x6e3   : > { %v2297_v13 = vpop.xlane.xlu0 %2296  ;;  %v1913_v14 = vpop.xlane.xlu1 %1912 }
 0x6e4   : > { %5831 = vrcp.f32 %v2297_v13  ;;  %v2589_v13 = vld [vmem:[%s7047_s5 + $0x8] sm:$0xff] }
 0x6e5   : > { %5833 = vrcp.f32 %v1913_v14  ;;  %v5826_v16 = vpop.eup %5825  ;;  %v2588_v14 = vld [vmem:[%s7047_s5] sm:$0xff] }
 0x6e6   : > { %v2026_v19 = vmul.f32 %v5826_v16, %v5814_v47 }
 0x6e7   : > { %v2300_v15 = vpop.xlane.xlu1 %2299 }
 0x6e8   : > { %5835 = vrcp.f32 %v2300_v15 }
 0x6e9   : > { %v5828_v17 = vpop.eup %5827 }
 0x6ea   : > { %v2025_v18 = vmul.f32 %v5828_v17, %v5816_v53 }
 0x6ec   : > { %5444 = vmatprep.mubr.msk.f32.mxu1 %vm1894_vm15, %v2025_v18 }
 0x6ed   : > { %v5830_v20 = vpop.eup %5829  ;;  %5445 = vmatmul.mubr.msk.f32.vlgmr.msra.gmra.mxu1 %vm1894_vm15, %v2026_v19  ;;  %v5069_v19 = vld [vmem:[%s7048_s8] ss:$0 sm:$0xff] }
 0x6ee   : > { %5448 = vmatpush3.msk.msra.mxu1 %vm2035_vm13, %v6497_v9  ;;  %v1916_v22 = vmul.f32 %v5830_v20, %v5818_v56 }
 0x6ef   : > { %5449 = vmatprep.subr.mxu1 %v1918_v21 }
 0x6f0   : > { %5450 = vmatpush3.msra.mxu1 %v1918_v21  ;;  %5451 = vmatprep.mubr.msk.f32.mxu1 %vm1894_vm15, %v1916_v22 }
 0x6f1   : > { %v5832_v24 = vpop.eup %5831  ;;  %5461 = vmatprep.subr.msk.mxu1 %vm2035_vm13, %v2306_v23 }
 0x6f2   : > { %v5834_v25 = vpop.eup %5833  ;;  %v2303_v26 = vmul.f32 %v5832_v24, %v5820_v60 }
 0x6f3   : > { %v1917_v27 = vmul.f32 %v5834_v25, %v5822_v62  ;;  %v2591_v62 = vld [vmem:[%s7047_s5 + $0x18] sm:$0xff] }
 0x6f4   : > { %5482 = vmatprep.subr.mxu0 %v2591_v62 }
 0x6f5   : > { %v5836_v9 = vpop.eup %5835  ;;  %5452 = vmatmul.mubr.msk.f32.vlgmr.msra.gmra.mxu1 %vm1894_vm15, %v1917_v27  ;;  %5483 = vmatpush3.msra.mxu0 %v2591_v62  ;;  %v2846_v62 = vld [vmem:[%s7052_s21 + $0x50] sm:$0xff] }
 0x6f6   : > { %5462 = vmatpush3.msk.msra.mxu1 %vm2035_vm13, %v2306_v23  ;;  %5465 = vmatprep.mubr.msk.f32.mxu1 %vm1894_vm15, %v2303_v26  ;;  %v2304_v29 = vmul.f32 %v5836_v9, %v5824_v5 }
 0x6f7   : > { %5463 = vmatprep.subr.mxu1 %v2305_v28  ;;  %5484 = vmatprep.subr.mxu0 %v2590_v11 }
 0x6f8   : > { %5464 = vmatpush3.msra.mxu1 %v2305_v28  ;;  %5485 = vmatpush3.msra.mxu0 %v2590_v11  ;;  %v2839_v11 = vld [vmem:[%s7052_s21 + $0x18] sm:$0xff] }
 0x6f9   : > { %5468 = vmatprep.subr.msk.mxu1 %vm1459_vm3, %v6442_v55  ;;  %5466 = vmatmul.mubr.msk.f32.vlgmr.msra.gmra.mxu1 %vm1894_vm15, %v2304_v29 }
 0x6fa   : > { %5469 = vmatpush3.xpose.msk.msra.mxu1 %vm1459_vm3, %v6442_v55  ;;  %5472 = vmatprep.mubr.msk.f32.mxu1 %vm1459_vm3, %v2393_v31  ;;  %v2500_v55 = vmul.f32 %v6536_v30, %v6480_v6 }
 0x6fb   : > { %5470 = vmatprep.subr.msk.mxu1 %vm1459_vm3, %v6446_v57  ;;  %5486 = vmatprep.subr.mxu0 %v2589_v13 }
 0x6fc   : > { %5487 = vmatpush3.msra.mxu0 %v2589_v13  ;;  %v2838_v13 = vld [vmem:[%s7052_s21 + $0x10] sm:$0xff] }
 0x6fd   : > { %5488 = vmatprep.subr.mxu0 %v2588_v14 }
 0x6fe   : > { %5471 = vmatpush3.xpose.msk.msra.mxu1 %vm1459_vm3, %v6446_v57  ;;  %5489 = vmatpush3.msra.mxu0 %v2588_v14  ;;  %v2837_v14 = vld [vmem:[%s7052_s21 + $0x8] sm:$0xff] }
 0x6ff   : > { %5475 = vmatprep.subr.msk.mxu1 %vm2035_vm13, %v2501_v32 }
 0x701   : > { %5473 = vmatmul.mubr.msk.f32.vlgmr.msra.gmra.mxu1 %vm1459_vm3, %v2394_v48 }
 0x702   : > { %5476 = vmatpush3.msk.msra.mxu1 %vm2035_vm13, %v2501_v32 }
 0x703   : > { %5477 = vmatprep.subr.mxu1 %v2500_v55 }
 0x704   : > { %5478 = vmatpush3.msra.mxu1 %v2500_v55 }
 0x7ad   : > { %v5446_v33 = vpop.f32.mrf.mxu1 }
 0x7af   : > { %v2105_v34 = vpop.f32.mrf.mxu1 }
 0x7b5   : > { %v5453_v0 = vpop.f32.mrf.mxu1 }
 0x7b6   : > { %v2195_v35 = vadd.f32 %v5453_v0, %v5446_v33  ;;  %v2728_v0 = vld [vmem:[%s7049_s9 + $0x10] sm:$0xff] }
 0x7b7   : > { %v2189_v36 = vpop.f32.mrf.mxu1 }
 0x7b8   : > { %v2190_v57 = vadd.f32 %v2189_v36, %v2105_v34  ;;  %v2729_v34 = vld [vmem:[%s7049_s9 + $0x18] sm:$0xff]  ;;  %v2726_v36 = vld [vmem:[%s7049_s9] sm:$0xff] }
 0x7b9   : > { %v5467_v37 = vpop.f32.mrf.mxu1  ;;  %5493 = vmatprep.subr.mxu1 %v2729_v34 }
 0x7ba   : > { %v2392_v38 = vadd.f32 %v5467_v37, %v2195_v35  ;;  %v2727_v35 = vld [vmem:[%s7049_s9 + $0x8] sm:$0xff] }
 0x7bb   : > { %v2382_v58 = vpop.f32.mrf.mxu1 }
 0x7bc   : > { %v2391_v39 = vadd.f32 %v2382_v58, %v2190_v57 }
 0x7c1   : > { %v5474_v40 = vpop.f32.mrf.mxu1 }
 0x7c2   : > { %v2477_v41 = vmul.f32 0.35355338, %v5474_v40 }
 0x7c3   : > { %v2467_v42 = vpop.f32.mrf.mxu1 }
 0x7c4   : > { %v2476_v43 = vmul.f32 0.35355338, %v2467_v42  ;;  %v2481_v6 = vsel %vm1898_vm14, %v2477_v41, -inf  ;;  %v5072_v42 = vld [vmem:[%s7050_s14] ss:$0 sm:$0xff] }
 0x7c5   : > { %2482 = vmax.xlane.f32.xlu1 %v2481_v6 }
 0x7c6   : > { %v2478_v44 = vsel %vm1894_vm15, %v2476_v43, -inf }
 0x7c7   : > { %2479 = vmax.xlane.f32.xlu0 %v2478_v44 }
 0x84e   : > { %v2483_v45 = vpop.xlane.xlu1 %2482 }
 0x84f   : > { %v2485_v46 = vsub.f32 %v2477_v41, %v2483_v45 }
 0x850   : > { %v2480_v47 = vpop.xlane.xlu0 %2479 }
 0x851   : > { %v2488_v51 = vmul.f32 1.442695, %v2485_v46  ;;  %v2484_v52 = vsub.f32 %v2476_v43, %v2480_v47  ;;  %v5073_v46 = vld [vmem:[%s7051_s17] ss:$0 sm:$0xff] }
 0x853   : > { %5837 = vpow2.f32 %v2488_v51  ;;  %v2486_v53 = vmul.f32 1.442695, %v2484_v52 }
 0x855   : > { %5839 = vpow2.f32 %v2486_v53  ;;  %v2851_v53 = vld [vmem:[%s7052_s21 + $0x78] sm:$0xff] }
 0x856   : > { %5504 = vmatprep.subr.mxu0 %v2851_v53 }
 0x860   : > { %v5838_v54 = vpop.eup %5837 }
 0x861   : > { %v2493_v56 = vsel %vm1898_vm14, %v5838_v54, 0.0 }
 0x862   : > { %v5840_v59 = vpop.eup %5839  ;;  %2494 = vadd.xlane.f32.xlu1 %v2493_v56  ;;  %v2849_v56 = vld [vmem:[%s7052_s21 + $0x68] sm:$0xff] }
 0x863   : > { %v2490_v60 = vsel %vm1894_vm15, %v5840_v59, 0.0 }
 0x864   : > { %2491 = vadd.xlane.f32.xlu0 %v2490_v60  ;;  %v2847_v60 = vld [vmem:[%s7052_s21 + $0x58] sm:$0xff] }
 0x8eb   : > { %v2495_v63 = vpop.xlane.xlu1 %2494 }
 0x8ec   : > { %5841 = vrcp.f32 %v2495_v63  ;;  %v2845_v63 = vld [vmem:[%s7052_s21 + $0x48] sm:$0xff] }
 0x8ed   : > { %v2492_v4 = vpop.xlane.xlu0 %2491 }
 0x8ee   : > { %5843 = vrcp.f32 %v2492_v4  ;;  %v2844_v4 = vld [vmem:[%s7052_s21 + $0x40] sm:$0xff] }
 0x8f9   : > { %v5842_v5 = vpop.eup %5841 }
 0x8fa   : > { %v2499_v10 = vmul.f32 %v5842_v5, %v5838_v54  ;;  %v2850_v54 = vld [vmem:[%s7052_s21 + $0x70] sm:$0xff]  ;;  %v2843_v5 = vld [vmem:[%s7052_s21 + $0x38] sm:$0xff] }
 0x8fb   : > { %v5844_v7 = vpop.eup %5843 }
 0x8fc   : > { %v2498_v8 = vmul.f32 %v5844_v7, %v5840_v59  ;;  %v2848_v59 = vld [vmem:[%s7052_s21 + $0x60] sm:$0xff]  ;;  %v2842_v7 = vld [vmem:[%s7052_s21 + $0x30] sm:$0xff] }
 0x8fe   : > { %5479 = vmatprep.mubr.msk.f32.mxu1 %vm1894_vm15, %v2498_v8  ;;  %v2841_v8 = vld [vmem:[%s7052_s21 + $0x28] sm:$0xff] }
 0x8ff   : > { %5480 = vmatmul.mubr.msk.f32.vlgmr.msra.gmra.mxu1 %vm1894_vm15, %v2499_v10  ;;  %v2840_v10 = vld [vmem:[%s7052_s21 + $0x20] sm:$0xff] }
 0x900   : > { %5494 = vmatpush3.msra.mxu1 %v2729_v34 }
 0x901   : > { %5495 = vmatprep.subr.mxu1 %v2728_v0 }
 0x902   : > { %5496 = vmatpush3.msra.mxu1 %v2728_v0 }
 0x903   : > { %5497 = vmatprep.subr.mxu1 %v2727_v35 }
 0x904   : > { %5498 = vmatpush3.msra.mxu1 %v2727_v35 }
 0x905   : > { %5499 = vmatprep.subr.mxu1 %v2726_v36 }
 0x906   : > { %5500 = vmatpush3.msra.mxu1 %v2726_v36  ;;  %v5077_v36 = vld [vmem:[%s7054_s29] ss:$0 sm:$0xff] }
 0x9bf   : > { %v5481_v15 = vpop.f32.mrf.mxu1 }
 0x9c0   : > { %v2587_v18 = vadd.f32 %v5481_v15, %v2392_v38  ;;  %v2836_v15 = vld [vmem:[%s7052_s21] sm:$0xff] }
 0x9c1   : > { %v2577_v16 = vpop.f32.mrf.mxu1 }
 0x9c2   : > { %v2586_v17 = vadd.f32 %v2577_v16, %v2391_v39  ;;  %v5074_v16 = vld [vmem:[%s7053_s25] ss:$0 sm:$0xff] }
 0x9c4   : > { %5490 = vmatprep.mubr.msk.f32.mxu0 %vm1459_vm3, %v2586_v17 }
 0x9c5   : > { %5491 = vmatmul.mubr.msk.f32.vlgmr.msra.gmra.mxu0 %vm1459_vm3, %v2587_v18 }
 0x9c6   : > { %5505 = vmatpush3.msra.mxu0 %v2851_v53  ;;  %v5085_v53 = vld [vmem:[%s6116_s30 + $0x38] sm:$0xff] }
 0x9c7   : > { %5506 = vmatprep.subr.mxu0 %v2850_v54  ;;  %5539 = vmatprep.subr.mxu1 %v5085_v53 }
 0x9c8   : > { %5507 = vmatpush3.msra.mxu0 %v2850_v54  ;;  %v5084_v54 = vld [vmem:[%s6116_s30 + $0x30] sm:$0xff] }
 0x9c9   : > { %5508 = vmatprep.subr.mxu0 %v2849_v56 }
 0x9ca   : > { %5509 = vmatpush3.msra.mxu0 %v2849_v56  ;;  %v5083_v56 = vld [vmem:[%s6116_s30 + $0x28] sm:$0xff] }
 0x9cb   : > { %5510 = vmatprep.subr.mxu0 %v2848_v59 }
 0x9cc   : > { %5511 = vmatpush3.msra.mxu0 %v2848_v59  ;;  %v5082_v59 = vld [vmem:[%s6116_s30 + $0x20] sm:$0xff] }
 0x9cd   : > { %5512 = vmatprep.subr.mxu0 %v2847_v60 }
 0x9ce   : > { %5513 = vmatpush3.msra.mxu0 %v2847_v60  ;;  %v5093_v60 = vld [vmem:[%s7032_s12 + $0x38] sm:$0xff] }
 0x9cf   : > { %5514 = vmatprep.subr.mxu0 %v2846_v62 }
 0x9d0   : > { %5515 = vmatpush3.msra.mxu0 %v2846_v62 }
 0x9d1   : > { %5516 = vmatprep.subr.mxu0 %v2845_v63 }
 0x9d2   : > { %5517 = vmatpush3.msra.mxu0 %v2845_v63 }
 0x9d3   : > { %5518 = vmatprep.subr.mxu0 %v2844_v4 }
 0x9d4   : > { %5519 = vmatpush3.msra.mxu0 %v2844_v4 }
 0x9d5   : > { %5520 = vmatprep.subr.mxu0 %v2843_v5 }
 0x9d6   : > { %5521 = vmatpush3.msra.mxu0 %v2843_v5 }
 0x9d7   : > { %5522 = vmatprep.subr.mxu0 %v2842_v7 }
 0x9d8   : > { %5523 = vmatpush3.msra.mxu0 %v2842_v7 }
 0x9d9   : > { %5524 = vmatprep.subr.mxu0 %v2841_v8 }
 0x9da   : > { %5525 = vmatpush3.msra.mxu0 %v2841_v8 }
 0x9db   : > { %5526 = vmatprep.subr.mxu0 %v2840_v10 }
 0x9dc   : > { %5527 = vmatpush3.msra.mxu0 %v2840_v10 }
 0x9dd   : > { %5528 = vmatprep.subr.mxu0 %v2839_v11 }
 0x9de   : > { %5529 = vmatpush3.msra.mxu0 %v2839_v11  ;;  %v5080_v11 = vld [vmem:[%s7031_s19 + $0x1] ss:$0 sm:$0xff] }
 0x9df   : > { %5530 = vmatprep.subr.mxu0 %v2838_v13 }
 0x9e0   : > { %5531 = vmatpush3.msra.mxu0 %v2838_v13 }
 0x9e1   : > { %5532 = vmatprep.subr.mxu0 %v2837_v14 }
 0x9e2   : > { %5533 = vmatpush3.msra.mxu0 %v2837_v14 }
 0x9e3   : > { %5534 = vmatprep.subr.mxu0 %v2836_v15 }
 0x9e4   : > { %5535 = vmatpush3.msra.mxu0 %v2836_v15 }
 0xa85   : > { %v5492_v20 = vpop.f32.mrf.mxu0 }
 0xa86   : > { %v2677_v21 = vadd.f32 %v5492_v20, %v5069_v19 }
 0xa87   : > { %v2671_v22 = vpop.f32.mrf.mxu0 }
 0xa88   : > { %v6573_v23 = vadd.f32 %v2677_v21, %v6393_v3  ;;  %v2672_v24 = vadd.f32 %v5069_v19, %v2671_v22 }
 0xa8a   : > { %v6576_v25 = vadd.f32 %v2672_v24, %v6391_v1  ;;  %v2687_v26 = vsel %vm1499_vm5, %v6573_v23, 0.0 }
 0xa8b   : > { %2688 = vadd.xlane.f32.xlu1 %v2687_v26 }
 0xa8c   : > { %v2684_v27 = vsel %vm1459_vm3, %v6576_v25, 0.0 }
 0xa8d   : > { %2685 = vadd.xlane.f32.xlu0 %v2684_v27 }
 0xb14   : > { %v2689_v9 = vpop.xlane.xlu1 %2688 }
 0xb15   : > { %v2691_v28 = vmul.f32 0.03125, %v2689_v9 }
 0xb16   : > { %v2686_v29 = vpop.xlane.xlu0 %2685 }
 0xb17   : > { %v2693_v3 = vsub.f32 %v6573_v23, %v2691_v28  ;;  %v2690_v31 = vmul.f32 0.03125, %v2686_v29 }
 0xb19   : > { %v2692_v1 = vsub.f32 %v6576_v25, %v2690_v31  ;;  %v2695_v32 = vmul.f32 %v2693_v3, %v2693_v3 }
 0xb1b   : > { %v2699_v48 = vsel %vm1499_vm5, %v2695_v32, 0.0  ;;  %v2694_v55 = vmul.f32 %v2692_v1, %v2692_v1 }
 0xb1c   : > { %2700 = vadd.xlane.f32.xlu1 %v2699_v48 }
 0xb1d   : > { %v2696_v33 = vsel %vm1459_vm3, %v2694_v55, 0.0 }
 0xb1e   : > { %2697 = vadd.xlane.f32.xlu0 %v2696_v33 }
 0xba5   : > { %v2701_v57 = vpop.xlane.xlu1 %2700 }
 0xba6   : > { %v2703_v37 = vmul.f32 0.03125, %v2701_v57 }
 0xba7   : > { %v2698_v38 = vpop.xlane.xlu0 %2697 }
 0xba8   : > { %v2705_v58 = vadd.f32 1e-06, %v2703_v37  ;;  %v2702_v39 = vmul.f32 0.03125, %v2698_v38 }
 0xbaa   : > { %5845 = vrsqrt.f32 %v2705_v58  ;;  %v2704_v40 = vadd.f32 1e-06, %v2702_v39 }
 0xbac   : > { %5847 = vrsqrt.f32 %v2704_v40 }
 0xbb7   : > { %v5846_v41 = vpop.eup %5845 }
 0xbb8   : > { %v2709_v43 = vmul.f32 %v5846_v41, %v2693_v3 }
 0xbb9   : > { %v5848_v6 = vpop.eup %5847 }
 0xbba   : > { %v2708_v44 = vmul.f32 %v5848_v6, %v2692_v1  ;;  %v2717_v45 = vmul.f32 %v5072_v42, %v2709_v43 }
 0xbbc   : > { %v2716_v47 = vmul.f32 %v5072_v42, %v2708_v44  ;;  %v2725_v52 = vadd.f32 %v5073_v46, %v2717_v45 }
 0xbbe   : > { %v2724_v51 = vadd.f32 %v5073_v46, %v2716_v47 }
 0xbc0   : > { %5501 = vmatprep.mubr.msk.f32.mxu1 %vm1459_vm3, %v2724_v51 }
 0xbc1   : > { %5502 = vmatmul.mubr.msk.f32.vlgmr.msra.gmra.mxu1 %vm1459_vm3, %v2725_v52 }
 0xbc2   : > { %5540 = vmatpush3.msra.mxu1 %v5085_v53 }
 0xbc3   : > { %5541 = vmatprep.subr.mxu1 %v5084_v54 }
 0xbc4   : > { %5542 = vmatpush3.msra.mxu1 %v5084_v54 }
 0xbc5   : > { %5543 = vmatprep.subr.mxu1 %v5083_v56 }
 0xbc6   : > { %5544 = vmatpush3.msra.mxu1 %v5083_v56 }
 0xbc7   : > { %5545 = vmatprep.subr.mxu1 %v5082_v59 }
 0xbc8   : > { %5546 = vmatpush3.msra.mxu1 %v5082_v59 }
 0xbc9   : > { %5550 = vmatprep.subr.mxu1 %v5093_v60 }
 0xc81   : > { %v5503_v17 = vpop.f32.mrf.mxu1 }
 0xc82   : > { %v2815_v18 = vadd.f32 %v5503_v17, %v5074_v16  ;;  %v5081_v17 = vld [vmem:[%s6111_s24 + $0x1] ss:$0 sm:$0xff] }
 0xc83   : > { %v2809_v19 = vpop.f32.mrf.mxu1 }
 0xc84   : > { %v2821_v20 = vmul.f32 0.044715, %v2815_v18  ;;  %v2810_v21 = vadd.f32 %v5074_v16, %v2809_v19  ;;  %v2819_v34 = vmul.f32 0.5, %v2815_v18 }
 0xc86   : > { %v2823_v22 = vmul.f32 %v2821_v20, %v2815_v18  ;;  %v2820_v24 = vmul.f32 0.044715, %v2810_v21  ;;  %v2818_v55 = vmul.f32 0.5, %v2810_v21 }
 0xc88   : > { %v2825_v26 = vmul.f32 %v2823_v22, %v2815_v18  ;;  %v2822_v27 = vmul.f32 %v2820_v24, %v2810_v21  ;;  %v5091_v22 = vld [vmem:[%s7032_s12 + $0x28] sm:$0xff]  ;;  %v5090_v24 = vld [vmem:[%s7032_s12 + $0x20] sm:$0xff] }
 0xc8a   : > { %v2827_v9 = vadd.f32 %v2825_v26, %v2815_v18  ;;  %v2824_v28 = vmul.f32 %v2822_v27, %v2810_v21  ;;  %v5101_v26 = vld [vmem:[%s6136_s27 + $0x38] sm:$0xff]  ;;  %v5100_v27 = vld [vmem:[%s6136_s27 + $0x30] sm:$0xff] }
 0xc8c   : > { %v2826_v29 = vadd.f32 %v2824_v28, %v2810_v21  ;;  %v2829_v3 = vmul.f32 0.7978846, %v2827_v9  ;;  %v5092_v21 = vld [vmem:[%s7032_s12 + $0x30] sm:$0xff]  ;;  %v5099_v9 = vld [vmem:[%s6136_s27 + $0x28] sm:$0xff]  ;;  %v5098_v28 = vld [vmem:[%s6136_s27 + $0x20] sm:$0xff] }
 0xc8e   : > { %v2828_v31 = vmul.f32 0.7978846, %v2826_v29  ;;  %5849 = vtanh.f32 %v2829_v3 }
 0xc90   : > { %5851 = vtanh.f32 %v2828_v31  ;;  %v5087_v31 = vld [vmem:[%s7044_s7 + $0x1] ss:$0 sm:$0xff]  ;;  %s7057_s7 = sld [smem:[#allocation32_spill]] }
 0xc9b   : > { %v5850_v1 = vpop.eup %5849 }
 0xc9c   : > { %v2833_v48 = vadd.f32 1.0, %v5850_v1 }
 0xc9d   : > { %v5852_v32 = vpop.eup %5851 }
 0xc9e   : > { %v2832_v33 = vadd.f32 1.0, %v5852_v32  ;;  %v2835_v35 = vmul.f32 %v2833_v48, %v2819_v34  ;;  %v5095_v32 = vld [vmem:[%s7045_s10 + $0x1] ss:$0 sm:$0xff]  ;;  %s7060_s10 = sld [smem:[#allocation34_spill]] }
 0xca0   : > { %v2834_v0 = vmul.f32 %v2832_v33, %v2818_v55 }
 0xca2   : > { %5536 = vmatprep.mubr.f32.mxu0 %v2834_v0 }
 0xca3   : > { %5537 = vmatmul.mubr.f32.vlgmr.msra.gmra.mxu0 %v2835_v35 }
 0xd63   : > { %v5538_v57 = vpop.f32.mrf.mxu0 }
 0xd64   : > { %v2931_v37 = vadd.f32 %v5538_v57, %v5077_v36  ;;  %v5103_v57 = vld [vmem:[%s7046_s3 + $0x1] ss:$0 sm:$0xff]  ;;  %s7055_s3 = sld [smem:[#allocation33_spill]] }
 0xd65   : > { %v2925_v38 = vpop.f32.mrf.mxu0 }
 0xd66   : > { %v6613_v58 = vadd.f32 %v2931_v37, %v6573_v23  ;;  %v2926_v39 = vadd.f32 %v5077_v36, %v2925_v38 }
 0xd68   : > { %v6616_v40 = vadd.f32 %v2926_v39, %v6576_v25  ;;  %v2943_v41 = vsel %vm1499_vm5, %v6613_v58, 0.0 }
 0xd69   : > { %2944 = vadd.xlane.f32.xlu1 %v2943_v41 }
 0xd6a   : > { %v2940_v42 = vsel %vm1459_vm3, %v6616_v40, 0.0 }
 0xd6b   : > { %2941 = vadd.xlane.f32.xlu0 %v2940_v42 }
 0xdf2   : > { %v2945_v43 = vpop.xlane.xlu1 %2944 }
 0xdf3   : > { %v2947_v6 = vmul.f32 0.03125, %v2945_v43 }
 0xdf4   : > { %v2942_v44 = vpop.xlane.xlu0 %2941 }
 0xdf5   : > { %v2949_v23 = vsub.f32 %v6613_v58, %v2947_v6  ;;  %v2946_v45 = vmul.f32 0.03125, %v2942_v44 }
 0xdf7   : > { %v2948_v25 = vsub.f32 %v6616_v40, %v2946_v45  ;;  %v2951_v46 = vmul.f32 %v2949_v23, %v2949_v23 }
 0xdf9   : > { %v2955_v47 = vsel %vm1499_vm5, %v2951_v46, 0.0  ;;  %v2950_v51 = vmul.f32 %v2948_v25, %v2948_v25 }
 0xdfa   : > { %2956 = vadd.xlane.f32.xlu1 %v2955_v47 }
 0xdfb   : > { %v2952_v52 = vsel %vm1459_vm3, %v2950_v51, 0.0 }
 0xdfc   : > { %2953 = vadd.xlane.f32.xlu0 %v2952_v52 }
 0xe83   : > { %v2957_v62 = vpop.xlane.xlu1 %2956 }
 0xe84   : > { %v2959_v63 = vmul.f32 0.03125, %v2957_v62 }
 0xe85   : > { %v2954_v4 = vpop.xlane.xlu0 %2953 }
 0xe86   : > { %v2961_v5 = vadd.f32 1e-06, %v2959_v63  ;;  %v2958_v7 = vmul.f32 0.03125, %v2954_v4 }
 0xe88   : > { %5853 = vrsqrt.f32 %v2961_v5  ;;  %v2960_v8 = vadd.f32 1e-06, %v2958_v7 }
 0xe8a   : > { %5855 = vrsqrt.f32 %v2960_v8 }
 0xe95   : > { %v5854_v10 = vpop.eup %5853 }
 0xe96   : > { %v2965_v13 = vmul.f32 %v5854_v10, %v2949_v23 }
 0xe97   : > { %v5856_v14 = vpop.eup %5855 }
 0xe98   : > { %v2964_v15 = vmul.f32 %v5856_v14, %v2948_v25  ;;  %v2973_v16 = vmul.f32 %v5080_v11, %v2965_v13 }
 0xe9a   : > { %v2972_v18 = vmul.f32 %v5080_v11, %v2964_v15  ;;  %v2981_v20 = vadd.f32 %v5081_v17, %v2973_v16 }
 0xe9c   : > { %v2980_v19 = vadd.f32 %v5081_v17, %v2972_v18 }
 0xe9e   : > { %5547 = vmatprep.mubr.msk.f32.mxu1 %vm1459_vm3, %v2980_v19 }
 0xe9f   : > { %5548 = vmatmul.mubr.msk.f32.vlgmr.msra.gmra.mxu1 %vm1459_vm3, %v2981_v20 }
 0xea0   : > { %5551 = vmatpush3.msra.mxu1 %v5093_v60  ;;  %5558 = vmatprep.mubr.msk.f32.mxu1 %vm1459_vm3, %v2980_v19 }
 0xea1   : > { %5552 = vmatprep.subr.mxu1 %v5092_v21 }
 0xea2   : > { %5553 = vmatpush3.msra.mxu1 %v5092_v21 }
 0xea3   : > { %5554 = vmatprep.subr.mxu1 %v5091_v22 }
 0xea4   : > { %5555 = vmatpush3.msra.mxu1 %v5091_v22 }
 0xea5   : > { %5556 = vmatprep.subr.mxu1 %v5090_v24 }
 0xea6   : > { %5557 = vmatpush3.msra.mxu1 %v5090_v24 }
 0xea7   : > { %5559 = vmatmul.mubr.msk.f32.vlgmr.msra.gmra.mxu1 %vm1459_vm3, %v2981_v20  ;;  %5561 = vmatprep.subr.mxu1 %v5101_v26 }
 0xea8   : > { %5562 = vmatpush3.msra.mxu1 %v5101_v26  ;;  %5569 = vmatprep.mubr.msk.f32.mxu1 %vm1459_vm3, %v2980_v19 }
 0xea9   : > { %5563 = vmatprep.subr.mxu1 %v5100_v27 }
 0xeaa   : > { %5564 = vmatpush3.msra.mxu1 %v5100_v27 }
 0xeab   : > { %5565 = vmatprep.subr.mxu1 %v5099_v9 }
 0xeac   : > { %5566 = vmatpush3.msra.mxu1 %v5099_v9 }
 0xead   : > { %5567 = vmatprep.subr.mxu1 %v5098_v28 }
 0xeae   : > { %5568 = vmatpush3.msra.mxu1 %v5098_v28 }
 0xeaf   : > { %5570 = vmatmul.mubr.msk.f32.vlgmr.msra.gmra.mxu1 %vm1459_vm3, %v2981_v20 }
 0xf5f   : > { %v5549_v29 = vpop.f32.mrf.mxu1 }
 0xf60   : > { %v6668_v36 = vadd.f32 %v5549_v29, %v5087_v31 }
 0xf61   : > { %v3067_v3 = vpop.f32.mrf.mxu1 }
 0xf62   : > { %v6647_v1 = vadd.f32 %v5087_v31, %v3067_v3  ;;  %v3253_v38 = vmul.f32 %v6430_v49, %v6668_v36  ;;  %v3368_v39 = vmul.f32 %v6433_v50, %v6668_v36  ;;  %v3645_v46 = vmul.f32 %v6468_v61, %v6668_v36 }
 0xf64   : > { %v3252_v48 = vmul.f32 %v6430_v49, %v6647_v1  ;;  %v3367_v55 = vmul.f32 %v6433_v50, %v6647_v1  ;;  %v3644_v43 = vmul.f32 %v6468_v61, %v6647_v1 }
 0xf66   : > { %5576 = vmatprep.mubr.msk.f32.mxu1 %vm1459_vm3, %v3252_v48  ;;  %5583 = vmatprep.mubr.msk.f32.mxu0 %vm1459_vm3, %v3367_v55 }
 0xf67   : > { %v5560_v33 = vpop.f32.mrf.mxu1 }
 0xf68   : > { %v6656_v34 = vadd.f32 %v5560_v33, %v5095_v32 }
 0xf69   : > { %v3155_v0 = vpop.f32.mrf.mxu1 }
 0xf6a   : > { %v6658_v35 = vadd.f32 %v5095_v32, %v3155_v0  ;;  %5572 = vmatprep.subr.msk.mxu1 %vm1459_vm3, %v6656_v34  ;;  %5579 = vmatprep.subr.msk.mxu0 %vm1459_vm3, %v6656_v34 }
 0xf6b   : > { %5573 = vmatpush3.xpose.msk.msra.mxu1 %vm1459_vm3, %v6656_v34  ;;  %5580 = vmatpush3.xpose.msk.msra.mxu0 %vm1459_vm3, %v6656_v34 }
 0xf6c   : > { %5574 = vmatprep.subr.msk.mxu1 %vm1459_vm3, %v6658_v35  ;;  %5581 = vmatprep.subr.msk.mxu0 %vm1459_vm3, %v6658_v35 }
 0xf6f   : > { %v5571_v37 = vpop.f32.mrf.mxu1  ;;  %5575 = vmatpush3.xpose.msk.msra.mxu1 %vm1459_vm3, %v6658_v35  ;;  %5582 = vmatpush3.xpose.msk.msra.mxu0 %vm1459_vm3, %v6658_v35 }
 0xf70   : > { %v6683_v41 = vadd.f32 %v5571_v37, %v5103_v57  ;;  %5600 = vmatprep.subr.msk.mxu0 %vm1459_vm3, %v6656_v34 }
 0xf71   : > { %v3243_v42 = vpop.f32.mrf.mxu1 }
 0xf72   : > { %v6689_v6 = vadd.f32 %v5103_v57, %v3243_v42  ;;  %5577 = vmatmul.mubr.msk.f32.vlgmr.msra.gmra.mxu1 %vm1459_vm3, %v3253_v38  ;;  %5584 = vmatmul.mubr.msk.f32.vlgmr.msra.gmra.mxu0 %vm1459_vm3, %v3368_v39  ;;  %v3475_v44 = vmul.f32 %v6433_v50, %v6683_v41  ;;  %v6706_v45 = vmul.f32 %v6430_v49, %v6683_v41 }
 0xf73   : > { %5601 = vmatpush3.xpose.msk.msra.mxu0 %vm1459_vm3, %v6656_v34  ;;  %5604 = vmatprep.mubr.msk.f32.mxu0 %vm1459_vm3, %v3644_v43  ;;  %v3947_v25 = vmul.f32 %v6536_v30, %v6683_v41 }
 0xf74   : > { %5586 = vmatprep.subr.msk.mxu1 %vm2035_vm13, %v3475_v44  ;;  %5602 = vmatprep.subr.msk.mxu0 %vm1459_vm3, %v6658_v35  ;;  %v3474_v23 = vmul.f32 %v6433_v50, %v6689_v6  ;;  %v3946_v50 = vmul.f32 %v6536_v30, %v6689_v6 }
 0xf75   : > { %5587 = vmatpush3.msk.msra.mxu1 %vm2035_vm13, %v3475_v44 }
 0xf76   : > { %5588 = vmatprep.subr.mxu1 %v3474_v23 }
 0xf77   : > { %5589 = vmatpush3.msra.mxu1 %v3474_v23  ;;  %5603 = vmatpush3.xpose.msk.msra.mxu0 %vm1459_vm3, %v6658_v35 }
 0xf78   : > { %5593 = vmatprep.subr.msk.mxu1 %vm2035_vm13, %v6706_v45  ;;  %5621 = vmatprep.subr.msk.mxu0 %vm2035_vm13, %v3947_v25 }
 0xf7a   : > { %5605 = vmatmul.mubr.msk.f32.vlgmr.msra.gmra.mxu0 %vm1459_vm3, %v3645_v46 }
 0xf7b   : > { %5622 = vmatpush3.msk.msra.mxu0 %vm2035_vm13, %v3947_v25 }
 0xf7c   : > { %5623 = vmatprep.subr.mxu0 %v3946_v50 }
 0xf7d   : > { %5624 = vmatpush3.msra.mxu0 %v3946_v50 }
0x1032   : > { %v5578_v47 = vpop.f32.mrf.mxu1  ;;  %v5585_v51 = vpop.f32.mrf.mxu0 }
0x1033   : > { %v3451_v52 = vmul.f32 0.35355338, %v5585_v51  ;;  %v3342_v56 = vmul.f32 0.35355338, %v5578_v47 }
0x1034   : > { %v3332_v53 = vpop.f32.mrf.mxu1  ;;  %v3441_v54 = vpop.f32.mrf.mxu0 }
0x1035   : > { %v3450_v59 = vmul.f32 0.35355338, %v3441_v54  ;;  %v3455_v60 = vsel %vm1898_vm14, %v3451_v52, -inf  ;;  %v3341_v62 = vmul.f32 0.35355338, %v3332_v53  ;;  %v3346_v4 = vsel %vm1898_vm14, %v3342_v56, -inf }
0x1036   : > { %3456 = vmax.xlane.f32.xlu1 %v3455_v60 }
0x1037   : > { %v3452_v63 = vsel %vm1894_vm15, %v3450_v59, -inf  ;;  %v3343_v8 = vsel %vm1894_vm15, %v3341_v62, -inf }
0x1038   : > { %3453 = vmax.xlane.f32.xlu0 %v3452_v63 }
0x103a   : > { %v5606_v5 = vpop.f32.mrf.mxu0  ;;  %3347 = vmax.xlane.f32.xlu1 %v3346_v4  ;;  %v3365_v4 = vmul.f32 %v6430_v49, %v6689_v6  ;;  %v3751_v49 = vmul.f32 %v6468_v61, %v6689_v6 }
0x103b   : > { %v3728_v7 = vmul.f32 0.35355338, %v5606_v5 }
0x103c   : > { %v3718_v10 = vpop.f32.mrf.mxu0  ;;  %3344 = vmax.xlane.f32.xlu0 %v3343_v8 }
0x103d   : > { %v3727_v11 = vmul.f32 0.35355338, %v3718_v10  ;;  %v3732_v13 = vsel %vm1898_vm14, %v3728_v7, -inf }
0x103e   : > { %3733 = vmax.xlane.f32.xlu1 %v3732_v13 }
0x103f   : > { %v3729_v14 = vsel %vm1894_vm15, %v3727_v11, -inf }
0x1040   : > { %3730 = vmax.xlane.f32.xlu0 %v3729_v14 }
0x10bf   : > { %v3457_v15 = vpop.xlane.xlu1 %3456 }
0x10c0   : > { %v3459_v16 = vsub.f32 %v3451_v52, %v3457_v15 }
0x10c1   : > { %v3454_v17 = vpop.xlane.xlu0 %3453 }
0x10c2   : > { %v3462_v18 = vmul.f32 1.442695, %v3459_v16  ;;  %v3458_v19 = vsub.f32 %v3450_v59, %v3454_v17 }
0x10c3   : > { %v3348_v20 = vpop.xlane.xlu1 %3347 }
0x10c4   : > { %5857 = vpow2.f32 %v3462_v18  ;;  %v3460_v21 = vmul.f32 1.442695, %v3458_v19  ;;  %v3350_v22 = vsub.f32 %v3342_v56, %v3348_v20 }
0x10c5   : > { %v3345_v24 = vpop.xlane.xlu0 %3344 }
0x10c6   : > { %5859 = vpow2.f32 %v3460_v21  ;;  %v3353_v26 = vmul.f32 1.442695, %v3350_v22  ;;  %v3349_v27 = vsub.f32 %v3341_v62, %v3345_v24 }
0x10c7   : > { %v3734_v9 = vpop.xlane.xlu1 %3733 }
0x10c8   : > { %5861 = vpow2.f32 %v3353_v26  ;;  %v3351_v28 = vmul.f32 1.442695, %v3349_v27  ;;  %v3736_v29 = vsub.f32 %v3728_v7, %v3734_v9  ;;  %v3752_v7 = vmul.f32 %v6468_v61, %v6683_v41 }
0x10c9   : > { %v3731_v3 = vpop.xlane.xlu0 %3730  ;;  %v3839_v41 = vmul.f32 %v6536_v30, %v6647_v1  ;;  %v3840_v61 = vmul.f32 %v6536_v30, %v6668_v36 }
0x10ca   : > { %5863 = vpow2.f32 %v3351_v28  ;;  %v3739_v31 = vmul.f32 1.442695, %v3736_v29  ;;  %v3735_v32 = vsub.f32 %v3727_v11, %v3731_v3 }
0x10cc   : > { %5865 = vpow2.f32 %v3739_v31  ;;  %v3737_v48 = vmul.f32 1.442695, %v3735_v32 }
0x10ce   : > { %5867 = vpow2.f32 %v3737_v48 }
0x10d1   : > { %v5858_v55 = vpop.eup %5857 }
0x10d2   : > { %v3467_v33 = vsel %vm1898_vm14, %v5858_v55, 0.0 }
0x10d3   : > { %v5860_v0 = vpop.eup %5859  ;;  %3468 = vadd.xlane.f32.xlu1 %v3467_v33  ;;  %v5137_v33 = vld [vmem:[%s7047_s5 + $0x38] sm:$0xff] }
0x10d4   : > { %v3464_v57 = vsel %vm1894_vm15, %v5860_v0, 0.0  ;;  %5628 = vmatprep.subr.mxu0 %v5137_v33 }
0x10d5   : > { %v5862_v37 = vpop.eup %5861  ;;  %3465 = vadd.xlane.f32.xlu0 %v3464_v57 }
0x10d6   : > { %v3358_v38 = vsel %vm1898_vm14, %v5862_v37, 0.0 }
0x10d7   : > { %v5864_v39 = vpop.eup %5863  ;;  %3359 = vadd.xlane.f32.xlu1 %v3358_v38 }
0x10d8   : > { %v3355_v42 = vsel %vm1894_vm15, %v5864_v39, 0.0 }
0x10d9   : > { %v5866_v43 = vpop.eup %5865  ;;  %3356 = vadd.xlane.f32.xlu0 %v3355_v42 }
0x10da   : > { %v3744_v44 = vsel %vm1898_vm14, %v5866_v43, 0.0 }
0x10db   : > { %v5868_v23 = vpop.eup %5867  ;;  %3745 = vadd.xlane.f32.xlu1 %v3744_v44  ;;  %v5135_v44 = vld [vmem:[%s7047_s5 + $0x28] sm:$0xff] }
0x10dc   : > { %v3741_v25 = vsel %vm1894_vm15, %v5868_v23, 0.0 }
0x10dd   : > { %3742 = vadd.xlane.f32.xlu0 %v3741_v25 }
0x115c   : > { %v3469_v46 = vpop.xlane.xlu1 %3468 }
0x115d   : > { %5869 = vrcp.f32 %v3469_v46 }
0x115e   : > { %v3466_v50 = vpop.xlane.xlu0 %3465 }
0x115f   : > { %5871 = vrcp.f32 %v3466_v50 }
0x1160   : > { %v3360_v47 = vpop.xlane.xlu1 %3359 }
0x1161   : > { %5873 = vrcp.f32 %v3360_v47 }
0x1162   : > { %v3357_v51 = vpop.xlane.xlu0 %3356 }
0x1163   : > { %5875 = vrcp.f32 %v3357_v51  ;;  %v5139_v51 = vld [vmem:[%s7048_s8 + $0x1] ss:$0 sm:$0xff]  ;;  %s7059_s8 = sld [smem:[#allocation35_spill]] }
0x1164   : > { %v3746_v52 = vpop.xlane.xlu1 %3745 }
0x1165   : > { %5877 = vrcp.f32 %v3746_v52 }
0x1166   : > { %v3743_v53 = vpop.xlane.xlu0 %3742 }
0x1167   : > { %5879 = vrcp.f32 %v3743_v53 }
0x116a   : > { %v5870_v54 = vpop.eup %5869 }
0x116b   : > { %v3473_v60 = vmul.f32 %v5870_v54, %v5858_v55 }
0x116c   : > { %v5872_v56 = vpop.eup %5871 }
0x116d   : > { %v3472_v59 = vmul.f32 %v5872_v56, %v5860_v0 }
0x116e   : > { %v5874_v62 = vpop.eup %5873 }
0x116f   : > { %5590 = vmatprep.mubr.msk.f32.mxu1 %vm1894_vm15, %v3472_v59  ;;  %v3364_v8 = vmul.f32 %v5874_v62, %v5862_v37 }
0x1170   : > { %v5876_v63 = vpop.eup %5875  ;;  %5591 = vmatmul.mubr.msk.f32.vlgmr.msra.gmra.mxu1 %vm1894_vm15, %v3473_v60 }
0x1171   : > { %5594 = vmatpush3.msk.msra.mxu1 %vm2035_vm13, %v6706_v45  ;;  %v3363_v5 = vmul.f32 %v5876_v63, %v5864_v39 }
0x1172   : > { %5595 = vmatprep.subr.mxu1 %v3365_v4  ;;  %v5878_v10 = vpop.eup %5877 }
0x1173   : > { %5596 = vmatpush3.msra.mxu1 %v3365_v4  ;;  %5597 = vmatprep.mubr.msk.f32.mxu1 %vm1894_vm15, %v3363_v5  ;;  %v3750_v13 = vmul.f32 %v5878_v10, %v5866_v43  ;;  %v5136_v43 = vld [vmem:[%s7047_s5 + $0x30] sm:$0xff] }
0x1174   : > { %v5880_v11 = vpop.eup %5879  ;;  %5607 = vmatprep.subr.msk.mxu1 %vm2035_vm13, %v3752_v7  ;;  %5598 = vmatmul.mubr.msk.f32.vlgmr.msra.gmra.mxu1 %vm1894_vm15, %v3364_v8 }
0x1175   : > { %5608 = vmatpush3.msk.msra.mxu1 %vm2035_vm13, %v3752_v7  ;;  %v3749_v45 = vmul.f32 %v5880_v11, %v5868_v23  ;;  %v5134_v23 = vld [vmem:[%s7047_s5 + $0x20] sm:$0xff]  ;;  %s7056_s5 = sld [smem:[#allocation31_spill]] }
0x1176   : > { %5609 = vmatprep.subr.mxu1 %v3751_v49 }
0x1177   : > { %5610 = vmatpush3.msra.mxu1 %v3751_v49  ;;  %5611 = vmatprep.mubr.msk.f32.mxu1 %vm1894_vm15, %v3749_v45 }
0x1178   : > { %5614 = vmatprep.subr.msk.mxu1 %vm1459_vm3, %v6656_v34  ;;  %5612 = vmatmul.mubr.msk.f32.vlgmr.msra.gmra.mxu1 %vm1894_vm15, %v3750_v13  ;;  %v5149_v13 = vld [vmem:[%s7049_s9 + $0x38] sm:$0xff] }
0x1179   : > { %5615 = vmatpush3.xpose.msk.msra.mxu1 %vm1459_vm3, %v6656_v34  ;;  %5618 = vmatprep.mubr.msk.f32.mxu1 %vm1459_vm3, %v3839_v41  ;;  %v5148_v41 = vld [vmem:[%s7049_s9 + $0x30] sm:$0xff] }
0x117a   : > { %5616 = vmatprep.subr.msk.mxu1 %vm1459_vm3, %v6658_v35 }
0x117d   : > { %5617 = vmatpush3.xpose.msk.msra.mxu1 %vm1459_vm3, %v6658_v35 }
0x117e   : > { %5639 = vmatprep.subr.mxu1 %v5149_v13 }
0x1180   : > { %5619 = vmatmul.mubr.msk.f32.vlgmr.msra.gmra.mxu1 %vm1459_vm3, %v3840_v61  ;;  %v5147_v61 = vld [vmem:[%s7049_s9 + $0x28] sm:$0xff] }
0x1181   : > { %5640 = vmatpush3.msra.mxu1 %v5149_v13 }
0x1182   : > { %5641 = vmatprep.subr.mxu1 %v5148_v41 }
0x1183   : > { %5642 = vmatpush3.msra.mxu1 %v5148_v41 }
0x1184   : > { %5643 = vmatprep.subr.mxu1 %v5147_v61 }
0x1185   : > { %5644 = vmatpush3.msra.mxu1 %v5147_v61 }
0x1230   : > { %v5592_v1 = vpop.f32.mrf.mxu1 }
0x1232   : > { %v3551_v6 = vpop.f32.mrf.mxu1 }
0x1234   : > { %v5599_v14 = vpop.f32.mrf.mxu1 }
0x1235   : > { %v3641_v15 = vadd.f32 %v5599_v14, %v5592_v1  ;;  %v5146_v1 = vld [vmem:[%s7049_s9 + $0x20] sm:$0xff]  ;;  %s5189_s9 = sshll.u32 %s6306_s18, 4 }
0x1236   : > { %v3635_v16 = vpop.f32.mrf.mxu1  ;;  %5645 = vmatprep.subr.mxu1 %v5146_v1 }
0x1237   : > { %v3636_v17 = vadd.f32 %v3635_v16, %v3551_v6  ;;  %5646 = vmatpush3.msra.mxu1 %v5146_v1 }
0x1238   : > { %v5613_v34 = vpop.f32.mrf.mxu1  ;;  %5685 = vmatprep.subr.mxu1 %v6043_v2 }
0x1239   : > { %v3838_v18 = vadd.f32 %v5613_v34, %v3641_v15 }
0x123a   : > { %v3828_v19 = vpop.f32.mrf.mxu1 }
0x123b   : > { %v3837_v20 = vadd.f32 %v3828_v19, %v3636_v17  ;;  %v5144_v19 = vld [vmem:[%s7050_s14 + $0x1] ss:$0 sm:$0xff] }
0x1240   : > { %v5620_v21 = vpop.f32.mrf.mxu1 }
0x1241   : > { %v3923_v22 = vmul.f32 0.35355338, %v5620_v21 }
0x1242   : > { %v3913_v24 = vpop.f32.mrf.mxu1 }
0x1243   : > { %v3922_v26 = vmul.f32 0.35355338, %v3913_v24  ;;  %v3927_v35 = vsel %vm1898_vm14, %v3923_v22, -inf }
0x1244   : > { %3928 = vmax.xlane.f32.xlu1 %v3927_v35 }
0x1245   : > { %v3924_v30 = vsel %vm1894_vm15, %v3922_v26, -inf }
0x1246   : > { %3925 = vmax.xlane.f32.xlu0 %v3924_v30 }
0x12cd   : > { %v3929_v36 = vpop.xlane.xlu1 %3928 }
0x12ce   : > { %v3931_v27 = vsub.f32 %v3923_v22, %v3929_v36 }
0x12cf   : > { %v3926_v9 = vpop.xlane.xlu0 %3925 }
0x12d0   : > { %v3934_v28 = vmul.f32 1.442695, %v3931_v27  ;;  %v3930_v29 = vsub.f32 %v3922_v26, %v3926_v9  ;;  %v5145_v26 = vld [vmem:[%s7051_s17 + $0x1] ss:$0 sm:$0xff]  ;;  %v5169_v27 = vld [vmem:[%s7052_s21 + $0xf8] sm:$0xff]  ;;  %v5168_v9 = vld [vmem:[%s7052_s21 + $0xf0] sm:$0xff] }
0x12d1   : > { %s6046_s17 = smov [#allocation2]  }
0x12d2   : > { %5881 = vpow2.f32 %v3934_v28  ;;  %v3932_v3 = vmul.f32 1.442695, %v3930_v29  ;;  %v5167_v28 = vld [vmem:[%s7052_s21 + $0xe8] sm:$0xff]  ;;  %v5166_v29 = vld [vmem:[%s7052_s21 + $0xe0] sm:$0xff]  ;;  %s5915_s19 = sshll.u32 %s6046_s17, 4  ;;  %s5916_s19 = int_to_ptr.vmem [resolvable:$false] %s5915_s19 }
0x12d4   : > { %5883 = vpow2.f32 %v3932_v3  ;;  %v5165_v3 = vld [vmem:[%s7052_s21 + $0xd8] sm:$0xff] }
0x12df   : > { %v5882_v31 = vpop.eup %5881 }
0x12e0   : > { %v3939_v32 = vsel %vm1898_vm14, %v5882_v31, 0.0 }
0x12e1   : > { %v5884_v48 = vpop.eup %5883  ;;  %3940 = vadd.xlane.f32.xlu1 %v3939_v32  ;;  %v5163_v32 = vld [vmem:[%s7052_s21 + $0xc8] sm:$0xff] }
0x12e2   : > { %v3936_v55 = vsel %vm1894_vm15, %v5884_v48, 0.0 }
0x12e3   : > { %3937 = vadd.xlane.f32.xlu0 %v3936_v55  ;;  %v5161_v55 = vld [vmem:[%s7052_s21 + $0xb8] sm:$0xff] }
0x136a   : > { %v3941_v0 = vpop.xlane.xlu1 %3940 }
0x136b   : > { %5885 = vrcp.f32 %v3941_v0  ;;  %v5159_v0 = vld [vmem:[%s7052_s21 + $0xa8] sm:$0xff] }
0x136c   : > { %v3938_v57 = vpop.xlane.xlu0 %3937 }
0x136d   : > { %5887 = vrcp.f32 %v3938_v57  ;;  %v5158_v57 = vld [vmem:[%s7052_s21 + $0xa0] sm:$0xff] }
0x1378   : > { %v5886_v37 = vpop.eup %5885 }
0x1379   : > { %v3945_v42 = vmul.f32 %v5886_v37, %v5882_v31  ;;  %v5164_v31 = vld [vmem:[%s7052_s21 + $0xd0] sm:$0xff]  ;;  %v5157_v37 = vld [vmem:[%s7052_s21 + $0x98] sm:$0xff] }
0x137a   : > { %v5888_v38 = vpop.eup %5887 }
0x137b   : > { %v3944_v39 = vmul.f32 %v5888_v38, %v5884_v48  ;;  %v5162_v48 = vld [vmem:[%s7052_s21 + $0xc0] sm:$0xff]  ;;  %v5156_v38 = vld [vmem:[%s7052_s21 + $0x90] sm:$0xff] }
0x137d   : > { %5625 = vmatprep.mubr.msk.f32.mxu0 %vm1894_vm15, %v3944_v39  ;;  %v5155_v39 = vld [vmem:[%s7052_s21 + $0x88] sm:$0xff] }
0x137e   : > { %5626 = vmatmul.mubr.msk.f32.vlgmr.msra.gmra.mxu0 %vm1894_vm15, %v3945_v42  ;;  %v5154_v42 = vld [vmem:[%s7052_s21 + $0x80] sm:$0xff] }
0x137f   : > { %5629 = vmatpush3.msra.mxu0 %v5137_v33  ;;  %v5160_v33 = vld [vmem:[%s7052_s21 + $0xb0] sm:$0xff]  ;;  %s5917_s21 = scalar_lea.vmem %s5916_s19, 32 }
0x1380   : > { %5630 = vmatprep.subr.mxu0 %v5136_v43 }
0x1381   : > { %5631 = vmatpush3.msra.mxu0 %v5136_v43  ;;  %v5151_v43 = vld [vmem:[%s7053_s25 + $0x1] ss:$0 sm:$0xff] }
0x1382   : > { %5632 = vmatprep.subr.mxu0 %v5135_v44 }
0x1383   : > { %5633 = vmatpush3.msra.mxu0 %v5135_v44 }
0x1384   : > { %5634 = vmatprep.subr.mxu0 %v5134_v23 }
0x1385   : > { %5635 = vmatpush3.msra.mxu0 %v5134_v23 }
0x1386   : > { %5650 = vmatprep.subr.mxu0 %v5169_v27 }
0x143e   : > { %v5627_v25 = vpop.f32.mrf.mxu0 }
0x143f   : > { %v4033_v47 = vadd.f32 %v5627_v25, %v3838_v18 }
0x1440   : > { %v4023_v46 = vpop.f32.mrf.mxu0 }
0x1441   : > { %v4032_v50 = vadd.f32 %v4023_v46, %v3837_v20 }
0x1443   : > { %5636 = vmatprep.mubr.msk.f32.mxu0 %vm1459_vm3, %v4032_v50 }
0x1444   : > { %5637 = vmatmul.mubr.msk.f32.vlgmr.msra.gmra.mxu0 %vm1459_vm3, %v4033_v47 }
0x1445   : > { %5651 = vmatpush3.msra.mxu0 %v5169_v27  ;;  %v6837_v27 = vld [vmem:[%s7057_s7] ss:$0 sm:$0xff] }
0x1446   : > { %5652 = vmatprep.subr.mxu0 %v5168_v9 }
0x1447   : > { %5653 = vmatpush3.msra.mxu0 %v5168_v9 }
0x1448   : > { %5654 = vmatprep.subr.mxu0 %v5167_v28 }
0x1449   : > { %5655 = vmatpush3.msra.mxu0 %v5167_v28 }
0x144a   : > { %5656 = vmatprep.subr.mxu0 %v5166_v29 }
0x144b   : > { %5657 = vmatpush3.msra.mxu0 %v5166_v29  ;;  %v4520_v29 = vld [vmem:[%s7059_s8 + $0x18] sm:$0xff] }
0x144c   : > { %5658 = vmatprep.subr.mxu0 %v5165_v3 }
0x144d   : > { %5659 = vmatpush3.msra.mxu0 %v5165_v3  ;;  %v4519_v3 = vld [vmem:[%s7059_s8 + $0x10] sm:$0xff] }
0x144e   : > { %5660 = vmatprep.subr.mxu0 %v5164_v31 }
0x144f   : > { %5661 = vmatpush3.msra.mxu0 %v5164_v31  ;;  %v4518_v31 = vld [vmem:[%s7059_s8 + $0x8] sm:$0xff] }
0x1450   : > { %5662 = vmatprep.subr.mxu0 %v5163_v32 }
0x1451   : > { %5663 = vmatpush3.msra.mxu0 %v5163_v32  ;;  %v4517_v32 = vld [vmem:[%s7059_s8] sm:$0xff]  ;;  %s7066_s8 = sld [smem:[#allocation10_spill]] }
0x1452   : > { %5664 = vmatprep.subr.mxu0 %v5162_v48 }
0x1453   : > { %5665 = vmatpush3.msra.mxu0 %v5162_v48  ;;  %v4440_v48 = vld [vmem:[%s7060_s10] sm:$0x1]  ;;  %s7062_s10 = sld [smem:[#allocation39_spill]] }
0x1454   : > { %5666 = vmatprep.subr.mxu0 %v5161_v55 }
0x1455   : > { %5667 = vmatpush3.msra.mxu0 %v5161_v55 }
0x1456   : > { %5668 = vmatprep.subr.mxu0 %v5160_v33 }
0x1457   : > { %5669 = vmatpush3.msra.mxu0 %v5160_v33 }
0x1458   : > { %5670 = vmatprep.subr.mxu0 %v5159_v0 }
0x1459   : > { %5671 = vmatpush3.msra.mxu0 %v5159_v0 }
0x145a   : > { %5672 = vmatprep.subr.mxu0 %v5158_v57 }
0x145b   : > { %5673 = vmatpush3.msra.mxu0 %v5158_v57 }
0x145c   : > { %5674 = vmatprep.subr.mxu0 %v5157_v37 }
0x145d   : > { %5675 = vmatpush3.msra.mxu0 %v5157_v37 }
0x145e   : > { %5676 = vmatprep.subr.mxu0 %v5156_v38 }
0x145f   : > { %5677 = vmatpush3.msra.mxu0 %v5156_v38 }
0x1460   : > { %5678 = vmatprep.subr.mxu0 %v5155_v39 }
0x1461   : > { %5679 = vmatpush3.msra.mxu0 %v5155_v39 }
0x1462   : > { %5680 = vmatprep.subr.mxu0 %v5154_v42 }
0x1463   : > { %5681 = vmatpush3.msra.mxu0 %v5154_v42 }
0x1504   : > { %v5638_v52 = vpop.f32.mrf.mxu0 }
0x1505   : > { %v4125_v53 = vadd.f32 %v5638_v52, %v5139_v51 }
0x1506   : > { %v4119_v54 = vpop.f32.mrf.mxu0 }
0x1507   : > { %v6777_v56 = vadd.f32 %v4125_v53, %v6613_v58  ;;  %v4120_v59 = vadd.f32 %v5139_v51, %v4119_v54 }
0x1509   : > { %v6780_v60 = vadd.f32 %v4120_v59, %v6616_v40  ;;  %v4137_v62 = vsel %vm1499_vm5, %v6777_v56, 0.0 }
0x150a   : > { %4138 = vadd.xlane.f32.xlu1 %v4137_v62 }
0x150b   : > { %v4134_v63 = vsel %vm1459_vm3, %v6780_v60, 0.0 }
0x150c   : > { %4135 = vadd.xlane.f32.xlu0 %v4134_v63 }
0x1593   : > { %v4139_v4 = vpop.xlane.xlu1 %4138 }
0x1594   : > { %v4141_v5 = vmul.f32 0.03125, %v4139_v4 }
0x1595   : > { %v4136_v7 = vpop.xlane.xlu0 %4135 }
0x1596   : > { %v4143_v58 = vsub.f32 %v6777_v56, %v4141_v5  ;;  %v4140_v8 = vmul.f32 0.03125, %v4136_v7 }
0x1598   : > { %v4142_v40 = vsub.f32 %v6780_v60, %v4140_v8  ;;  %v4145_v10 = vmul.f32 %v4143_v58, %v4143_v58 }
0x159a   : > { %v4149_v11 = vsel %vm1499_vm5, %v4145_v10, 0.0  ;;  %v4144_v49 = vmul.f32 %v4142_v40, %v4142_v40 }
0x159b   : > { %4150 = vadd.xlane.f32.xlu1 %v4149_v11 }
0x159c   : > { %v4146_v45 = vsel %vm1459_vm3, %v4144_v49, 0.0 }
0x159d   : > { %4147 = vadd.xlane.f32.xlu0 %v4146_v45  ;;  %v5171_v45 = vld [vmem:[%s7054_s29 + $0x1] ss:$0 sm:$0xff] }
0x1624   : > { %v4151_v6 = vpop.xlane.xlu1 %4150 }
0x1625   : > { %v4153_v14 = vmul.f32 0.03125, %v4151_v6 }
0x1626   : > { %v4148_v15 = vpop.xlane.xlu0 %4147 }
0x1627   : > { %v4155_v16 = vadd.f32 1e-06, %v4153_v14  ;;  %v4152_v17 = vmul.f32 0.03125, %v4148_v15 }
0x1629   : > { %5889 = vrsqrt.f32 %v4155_v16  ;;  %v4154_v34 = vadd.f32 1e-06, %v4152_v17 }
0x162b   : > { %5891 = vrsqrt.f32 %v4154_v34 }
0x1636   : > { %v5890_v18 = vpop.eup %5889 }
0x1637   : > { %v4159_v20 = vmul.f32 %v5890_v18, %v4143_v58 }
0x1638   : > { %v5892_v21 = vpop.eup %5891 }
0x1639   : > { %v4158_v22 = vmul.f32 %v5892_v21, %v4142_v40  ;;  %v4167_v24 = vmul.f32 %v5144_v19, %v4159_v20  ;;  %v4438_v20 = vld [vmem:[%s7055_s3 + $0x10] sm:$0xff]  ;;  %v4436_v21 = vld [vmem:[%s7055_s3] sm:$0xff] }
0x163b   : > { %v4166_v35 = vmul.f32 %v5144_v19, %v4158_v22  ;;  %v4175_v36 = vadd.f32 %v5145_v26, %v4167_v24  ;;  %v4439_v19 = vld [vmem:[%s7055_s3 + $0x18] sm:$0xff] }
0x163d   : > { %v4174_v30 = vadd.f32 %v5145_v26, %v4166_v35 }
0x163f   : > { %5647 = vmatprep.mubr.msk.f32.mxu1 %vm1459_vm3, %v4174_v30  ;;  %v6833_v30 = vld [vmem:[%s7056_s5] ss:$0 sm:$0xff]  ;;  %s7061_s5 = sld [smem:[#allocation36_spill]] }
0x1640   : > { %5648 = vmatmul.mubr.msk.f32.vlgmr.msra.gmra.mxu1 %vm1459_vm3, %v4175_v36 }
0x1641   : > { %5693 = vmatprep.mubr.msk.f32.mxu1 %vm6044_vm0, %v6043_v2  ;;  %5686 = vmatpush3.msra.mxu1 %v4439_v19 }
0x1642   : > { %5687 = vmatprep.subr.mxu1 %v6043_v2 }
0x1643   : > { %5688 = vmatpush3.msra.mxu1 %v4438_v20 }
0x1644   : > { %5689 = vmatprep.subr.mxu1 %v6043_v2 }
0x1645   : > { %v5175_v57 = vld [vmem:[%s7061_s5] ss:$0 sm:$0xff]  ;;  %s7063_s5 = sld [smem:[#allocation37_spill]] }
0x1700   : > { %v5649_v44 = vpop.f32.mrf.mxu1 }
0x1701   : > { %v4267_v23 = vadd.f32 %v5649_v44, %v5151_v43 }
0x1702   : > { %v4261_v25 = vpop.f32.mrf.mxu1 }
0x1703   : > { %v4273_v46 = vmul.f32 0.044715, %v4267_v23  ;;  %v4262_v50 = vadd.f32 %v5151_v43, %v4261_v25  ;;  %v4271_v10 = vmul.f32 0.5, %v4267_v23 }
0x1705   : > { %v4275_v47 = vmul.f32 %v4273_v46, %v4267_v23  ;;  %v4272_v51 = vmul.f32 0.044715, %v4262_v50  ;;  %v4270_v8 = vmul.f32 0.5, %v4262_v50 }
0x1707   : > { %v4277_v52 = vmul.f32 %v4275_v47, %v4267_v23  ;;  %v4274_v53 = vmul.f32 %v4272_v51, %v4262_v50 }
0x1709   : > { %v4279_v54 = vadd.f32 %v4277_v52, %v4267_v23  ;;  %v4276_v59 = vmul.f32 %v4274_v53, %v4262_v50 }
0x170b   : > { %v4278_v62 = vadd.f32 %v4276_v59, %v4262_v50  ;;  %v4281_v63 = vmul.f32 0.7978846, %v4279_v54 }
0x170d   : > { %v4280_v4 = vmul.f32 0.7978846, %v4278_v62  ;;  %5893 = vtanh.f32 %v4281_v63 }
0x170f   : > { %5895 = vtanh.f32 %v4280_v4 }
0x171a   : > { %v5894_v5 = vpop.eup %5893 }
0x171b   : > { %v4285_v58 = vadd.f32 1.0, %v5894_v5 }
0x171c   : > { %v5896_v7 = vpop.eup %5895 }
0x171d   : > { %v4284_v40 = vadd.f32 1.0, %v5896_v7  ;;  %v4287_v49 = vmul.f32 %v4285_v58, %v4271_v10  ;;  %v4639_v58 = vld [vmem:[%s7062_s10 + $0x18] sm:$0xff]  ;;  %v4636_v10 = vld [vmem:[%s7062_s10] sm:$0xff] }
0x171f   : > { %v4286_v11 = vmul.f32 %v4284_v40, %v4270_v8  ;;  %v4638_v8 = vld [vmem:[%s7062_s10 + $0x10] sm:$0xff]  ;;  %v4637_v40 = vld [vmem:[%s7062_s10 + $0x8] sm:$0xff] }
0x1721   : > { %5682 = vmatprep.mubr.f32.mxu0 %v4286_v11 }
0x1722   : > { %5683 = vmatmul.mubr.f32.vlgmr.msra.gmra.mxu0 %v4287_v49 }
0x17e2   : > { %v5684_v13 = vpop.f32.mrf.mxu0 }
0x17e3   : > { %v6819_v41 = vadd.f32 %v5684_v13, %v5171_v45  ;;  %v5177_v13 = vld [vmem:[%s7063_s5] ss:$0 sm:$0xff]  ;;  %s1236_s5 = scalar_lea.vmem %s7066_s8, %s6312_s1  ;;  %s6045_s8 = smov 1  }
0x17e4   : > { %v4379_v61 = vpop.f32.mrf.mxu0 }
0x17e5   : > { %v4380_v1 = vadd.f32 %v5171_v45, %v4379_v61  ;;  %v4389_v5 = vadd.f32 %v6819_v41, %v6777_v56 }
0x17e7   : > { %v4388_v6 = vadd.f32 %v4380_v1, %v6780_v60  ;;  %v4437_v60 = vld [vmem:[%s7055_s3 + $0x8] sm:$0xff]  ;;  %s6841_s3 = scalar_lea.vmem %s7058_s6, %s5189_s9  ;;  %s6863_s9 = sand.u32 1, %s5993_s23   ;;  %v4395_v7 = vsel %vm1499_vm5, %v4389_v5, 0.0 }
0x17e8   : > { %5690 = vmatpush3.msra.mxu1 %v4437_v60  ;;  %s6986_s7 = scalar_lea.vmem [#allocation2], %s6863_s9  ;;  %s7065_s6 = sld [smem:[#allocation40_spill]] }
0x17e9   : > { %v4392_v14 = vsel %vm1459_vm3, %v4388_v6, 0.0  ;;  %5691 = vmatprep.subr.mxu1 %v6043_v2  ;;  %s5014_s10 = sshll.u32 %s6863_s9, 3  ;;  %s7067_s1 = scalar_lea.vmem [#allocation2], %s6863_s9 }
0x17ea   : > { %4393 = vadd.xlane.f32.xlu0 %v4392_v14  ;;  %5692 = vmatpush3.msra.mxu1 %v4436_v21  ;;  %s6886_s12 = scalar_lea.vmem [#allocation4], %s5014_s10 }
0x17eb   : > { %5696 = vmatprep.subr.mxu1 %v6043_v2 }
0x17ee   : > { %v5179_v14 = vld [vmem:[%s7065_s6] ss:$0 sm:$0xff]  ;;  %s5184_s6 = sshll.u32 %s6274_s0, 4 }
0x17ef   : > { %s4798_s10 = scalar_lea.hbm %s7030_s4, %s5184_s6 }
0x1873   : > { %v4394_v15 = vpop.xlane.xlu0 %4393 }
0x1874   : > { %v4398_v16 = vmul.f32 0.03125, %v4394_v15 }
0x1876   : > { %v4400_v17 = vsub.f32 %v4388_v6, %v4398_v16 }
0x1878   : > { %v4402_v34 = vmul.f32 %v4400_v17, %v4400_v17 }
0x187a   : > { %v4404_v18 = vsel %vm1459_vm3, %v4402_v34, 0.0 }
0x187b   : > { %4405 = vadd.xlane.f32.xlu1 %v4404_v18  ;;  %v4721_v18 = vld [vmem:[%s1236_s5] sm:$0xff]  ;;  %s4777_s5 = scalar_lea.sflag [#allocation3], %s6863_s9 }
0x1904   : > { %v4406_v22 = vpop.xlane.xlu1 %4405 }
0x1905   : > { %v4410_v24 = vmul.f32 0.03125, %v4406_v22 }
0x1907   : > { %v4412_v26 = vadd.f32 1e-06, %v4410_v24 }
0x1909   : > { %5897 = vrsqrt.f32 %v4412_v26 }
0x1916   : > { %v5898_v35 = vpop.eup %5897 }
0x1917   : > { %v4416_v36 = vmul.f32 %v5898_v35, %v4400_v17 }
0x1919   : > { %v4424_v9 = vmul.f32 %v6833_v30, %v4416_v36 }
0x191b   : > { %v4432_v28 = vadd.f32 %v6837_v27, %v4424_v9 }
0x191d   : > { %4434 = vst.msk [vmem:[%s6841_s3] sm:$0xff] %vm1459_vm3, %v4432_v28  ;;  %5694 = vmatmul.mubr.msk.f32.vlgmr.msra.gmra.mxu1 %vm1459_vm3, %v4432_v28 }
0x191e   : > { %5697 = vmatpush3.msra.mxu1 %v4520_v29  ;;  %5704 = vmatprep.mubr.msk.f32.mxu1 %vm6044_vm0, %v6043_v2 }
0x191f   : > { %5698 = vmatprep.subr.mxu1 %v6043_v2 }
0x1920   : > { %5699 = vmatpush3.msra.mxu1 %v4519_v3 }
0x1921   : > { %5700 = vmatprep.subr.mxu1 %v6043_v2 }
0x1922   : > { %5701 = vmatpush3.msra.mxu1 %v4518_v31 }
0x1923   : > { %5702 = vmatprep.subr.mxu1 %v6043_v2 }
0x1924   : > { %5703 = vmatpush3.msra.mxu1 %v4517_v32 }
0x1925   : > { %5705 = vmatmul.mubr.msk.f32.vlgmr.msra.gmra.mxu1 %vm1459_vm3, %v4432_v28  ;;  %5707 = vmatprep.subr.mxu1 %v6043_v2 }
0x1926   : > { %5715 = vmatprep.mubr.msk.f32.mxu1 %vm6044_vm0, %v6043_v2  ;;  %5708 = vmatpush3.msra.mxu1 %v4639_v58  ;;  %vm4744_vm0 = vcmp.ne.s32.totalorder %v4721_v18, 4294967196 }
0x1927   : > { %5709 = vmatprep.subr.mxu1 %v6043_v2  ;;  %v6898_v35 = vsel %vm4744_vm0, 1.0, %v6043_v2 }
0x1928   : > { %5710 = vmatpush3.msra.mxu1 %v4638_v8 }
0x1929   : > { %5711 = vmatprep.subr.mxu1 %v6043_v2 }
0x192a   : > { %5712 = vmatpush3.msra.mxu1 %v4637_v40 }
0x192b   : > { %5713 = vmatprep.subr.mxu1 %v6043_v2 }
0x192c   : > { %5714 = vmatpush3.msra.mxu1 %v4636_v10 }
0x19dd   : > { %v4510_v55 = vpop.f32.mrf.mxu1 }
0x19de   : > { %v4511_v33 = vadd.f32 %v4510_v55, %v4440_v48 }
0x19df   : > { %v5695_v0 = vpop.f32.mrf.mxu1 }
0x19e0   : > { %5899 = vtanh.f32 %v4511_v33 }
0x19e5   : > { %v4594_v37 = vpop.f32.mrf.mxu1 }
0x19e6   : > { %v4595_v38 = vadd.f32 %v5175_v57, %v4594_v37 }
0x19e7   : > { %v5706_v39 = vpop.f32.mrf.mxu1 }
0x19e8   : > { %v4599_v42 = vmul.f32 0.044715, %v4595_v38  ;;  %v4598_v47 = vmul.f32 0.5, %v4595_v38 }
0x19ea   : > { %v4600_v43 = vmul.f32 %v4599_v42, %v4595_v38 }
0x19ec   : > { %v4601_v44 = vmul.f32 %v4600_v43, %v4595_v38 }
0x19ed   : > { %v5900_v23 = vpop.eup %5899 }
0x19ee   : > { %v4602_v25 = vadd.f32 %v4601_v44, %v4595_v38  ;;  %4516 = vst.msk [vmem:[%s6986_s7] sm:$0x1] %vm4515_vm7, %v5900_v23  ;;  %s7064_s7 = sld [smem:[#allocation38_spill]] }
0x19f0   : > { %v4603_v46 = vmul.f32 0.7978846, %v4602_v25 }
0x19f2   : > { %5901 = vtanh.f32 %v4603_v46 }
0x19f4   : > { %v5178_v61 = vld [vmem:[%s7064_s7] ss:$0 sm:$0xff]  ;;  %s4800_s7 = sshll.u32 %s7067_s1, 4  ;;  %s4801_s7 = int_to_ptr.vmem [resolvable:$true] %s4800_s7 }
0x19f5   : > { %s5911_s14 = scalar_lea.vmem %s4801_s7, 16  ;;  %p5918_p0 = scmp.lt.s32.totalorder %s4801_s7, %s5916_s19 }
0x19f6   : > { %p5912_p11 = scmp.ne.s32.totalorder %s4801_s7, %s5911_s14  ;;  %p5919_p1 = scmp.lt.s32.totalorder %s5917_s21, %s5911_s14 }
0x19f8   : > { %p5913_p12 = pnand %p5912_p11, %p6291_p5  ;;  %p5920_p2 = por %p5919_p1, %p5918_p0 }
0x19fa   : > { %p5914_p13 = pneg %p5913_p12 }
0x19fc   : > { %p5921_p3 = pnand %p5920_p2, %p5914_p13 }
0x19ff   : > { %v5902_v50 = vpop.eup %5901 }
0x1a00   : > { %v4605_v51 = vadd.f32 1.0, %v5902_v50 }
0x1a02   : > { %v4606_v52 = vmul.f32 %v4605_v51, %v4598_v47 }
0x1a04   : > { %v4609_v53 = vsel %vm1459_vm3, %v4606_v52, 0.0 }
0x1a05   : > { %4610 = vadd.xlane.f32.xlu0 %v4609_v53 }
0x1a8e   : > { %v4611_v54 = vpop.xlane.xlu0 %4610 }
0x1a8f   : > { %v4612_v59 = vmul.f32 0.03125, %v4611_v54 }
0x1a91   : > { %v4613_v62 = vsub.f32 %v4606_v52, %v4612_v59 }
0x1a93   : > { %v4614_v63 = vmul.f32 %v4613_v62, %v4613_v62 }
0x1a95   : > { %v4615_v4 = vsel %vm1459_vm3, %v4614_v63, 0.0 }
0x1a96   : > { %4616 = vadd.xlane.f32.xlu1 %v4615_v4 }
0x1a9a   : > { %4396 = vadd.xlane.f32.xlu1 %v4395_v7 }
0x1b1f   : > { %v4617_v56 = vpop.xlane.xlu1 %4616 }
0x1b20   : > { %v4618_v11 = vmul.f32 0.03125, %v4617_v56 }
0x1b22   : > { %v4619_v49 = vadd.f32 1e-12, %v4618_v11 }
0x1b23   : > { %v4397_v21 = vpop.xlane.xlu1 %4396 }
0x1b24   : > { %5903 = vrsqrt.f32 %v4619_v49  ;;  %v4399_v22 = vmul.f32 0.03125, %v4397_v21 }
0x1b26   : > { %v6895_v26 = vsub.f32 %v4389_v5, %v4399_v22 }
0x1b28   : > { %v4403_v29 = vmul.f32 %v6895_v26, %v6895_v26 }
0x1b2a   : > { %v4407_v32 = vsel %vm1499_vm5, %v4403_v29, 0.0 }
0x1b31   : > { %v5904_v45 = vpop.eup %5903 }
0x1b32   : > { %v4621_v41 = vmul.f32 %v5904_v45, %v4613_v62 }
0x1b34   : > { %v4628_v1 = vmul.f32 %v5177_v13, %v4621_v41 }
0x1b36   : > { %v4635_v6 = vadd.f32 %v5178_v61, %v4628_v1 }
0x1b38   : > { %5716 = vmatmul.mubr.msk.f32.vlgmr.msra.gmra.mxu1 %vm1459_vm3, %v4635_v6  ;;  %vm4749_vm3 = vcmask 7168  }
0x1b39   : > { %v4757_v9 = vsel %vm4749_vm3, %v6898_v35, 0.0 }
0x1b3a   : > { %v4758_v31 = vrot.slane %v4757_v9, 4 }
0x1b3c   : > { %v4759_v48 = vadd.f32 %v4758_v31, %v4757_v9 }
0x1b3e   : > { %v4760_v33 = vrot.slane %v4759_v48, 2 }
0x1b40   : > { %v4761_v0 = vadd.f32 %v4760_v33, %v4759_v48 }
0x1b42   : > { %v4762_v57 = vrot.slane %v4761_v0, 1 }
0x1b44   : > { %v4763_v37 = vadd.f32 %v4762_v57, %v4761_v0 }
0x1bf8   : > { %v4716_v15 = vpop.f32.mrf.mxu1 }
0x1bf9   : > { %v4717_v16 = vadd.f32 %v5179_v14, %v4716_v15 }
0x1bfa   : > { %v5717_v17 = vpop.f32.mrf.mxu1 }
0x1bfb   : > { %v4722_v34 = vsel %vm1295_vm1, %v4717_v16, -inf  ;;  %4720 = vst.msk [vmem:[%s6886_s12] sm:$0xff] %vm1295_vm1, %v4717_v16 }
0x1bfc   : > { %4723 = vmax.xlane.f32.xlu0 %v4722_v34 }
0x1c12   : > { %4735 = vperm.xlu0 %5805, %v4721_v18  }
0x1c85   : > { %v6892_v19 = vpop.xlane.xlu0 %4723 }
0x1c86   : > { %v4725_v20 = vsub.f32 %v4717_v16, %v6892_v19 }
0x1c88   : > { %v4726_v60 = vmul.f32 1.442695, %v4725_v20 }
0x1c8a   : > { %5905 = vpow2.f32 %v4726_v60 }
0x1c8d   : > { %v4736_v24 = vpop.permute.xlu0 %4735 }
0x1c8e   : > { %vm4737_vm8 = vcmp.eq.s32.totalorder %v6329_v12, %v4736_v24 }
0x1c8f   : > { %v5181_v3 = vsel %vm4737_vm8, 1.0, %v6043_v2 }
0x1c90   : > { %v4740_v12 = vmul.f32 %v5181_v3, %v4717_v16 }
0x1c92   : > { %v4741_v55 = vsel %vm1295_vm1, %v4740_v12, 0.0 }
0x1c97   : > { %v5906_v36 = vpop.eup %5905 }
0x1c98   : > { %v4728_v28 = vsel %vm1295_vm1, %v5906_v36, 0.0 }
0x1c99   : > { %4729 = vadd.xlane.f32.xlu1 %v4728_v28 }
0x1c9d   : > { %4408 = vadd.xlane.f32.xlu1 %v4407_v32 }
0x1ca1   : > { %4742 = vadd.xlane.f32.xlu1 %v4741_v55 }
0x1cb2   : > { %4765 = vrot.lane.b32.xlu1 %v4763_v37, %s6045_s8 }
0x1cb3   : > { %5924 = shalt.err (!%p5921_p3)
}
0x1cb4   : > { %s5925_s8 = scalar_lea.hbm %s4798_s10, 16  ;;  %s5929_s6 = scalar_lea.hbm %s7030_s4, 32 }
0x1cb5   : > { %p5926_p4 = scmp.ne.s32.totalorder %s4798_s10, %s5925_s8  ;;  %p5930_p9 = scmp.lt.s32.totalorder %s4798_s10, %s7030_s4 }
0x1cb6   : > { %p5931_p10 = scmp.lt.s32.totalorder %s5929_s6, %s5925_s8 }
0x1cb7   : > { %p5927_p7 = pnand %p5926_p4, %p6291_p5 }
0x1cb8   : > { %p5932_p11 = por %p5931_p10, %p5930_p9 }
0x1cb9   : > { %p5928_p8 = pneg %p5927_p7 }
0x1cbb   : > { %p5933_p12 = pnand %p5932_p11, %p5928_p8 }
0x1cbd   : > { %5936 = shalt.err (!%p5933_p12)
}
0x1cbe   : > { %5718 = dma.vmem_to_hbm [thread:$0]  (%p6291_p5), %s4801_s7, 16, %s4798_s10, %s4777_s5  }
0x1cbf   : > { %s5185_s17 = sshll.u32 %s6274_s0, 7  ;;  %s4813_s21 = sshll.u32 %s6886_s12, 4  ;;  %s4814_s21 = int_to_ptr.vmem [resolvable:$true] %s4813_s21 }
0x1cc0   : > { %s4811_s14 = scalar_lea.hbm %s6246_s13, %s5185_s17  ;;  %s4781_s19 = scalar_lea.sflag [#allocation5], %s6863_s9 }
0x1cc1   : > { %s5937_s1 = scalar_lea.vmem %s4814_s21, 128  ;;  %s6047_s8 = smov [#allocation4]  }
0x1cc2   : > { %p5938_p13 = scmp.ne.s32.totalorder %s4814_s21, %s5937_s1  ;;  %s5941_s6 = sshll.u32 %s6047_s8, 4  ;;  %s5942_s6 = int_to_ptr.vmem [resolvable:$false] %s5941_s6 }
0x1cc3   : > { %s5943_s4 = scalar_lea.vmem %s5942_s6, 256  ;;  %p5944_p2 = scmp.lt.s32.totalorder %s4814_s21, %s5942_s6 }
0x1cc4   : > { %p5939_p0 = pnand %p5938_p13, %p6291_p5  ;;  %p5945_p3 = scmp.lt.s32.totalorder %s5943_s4, %s5937_s1 }
0x1cc6   : > { %p5940_p1 = pneg %p5939_p0  ;;  %p5946_p4 = por %p5945_p3, %p5944_p2 }
0x1cc8   : > { %p5947_p7 = pnand %p5946_p4, %p5940_p1 }
0x1cca   : > { %5950 = shalt.err (!%p5947_p7)
}
0x1ccb   : > { %s5951_s7 = scalar_lea.hbm %s4811_s14, 128  ;;  %s5955_s12 = scalar_lea.hbm %s6246_s13, 256 }
0x1ccc   : > { %p5952_p8 = scmp.ne.s32.totalorder %s4811_s14, %s5951_s7  ;;  %p5956_p11 = scmp.lt.s32.totalorder %s4811_s14, %s6246_s13 }
0x1ccd   : > { %p5957_p12 = scmp.lt.s32.totalorder %s5955_s12, %s5951_s7 }
0x1cce   : > { %p5953_p9 = pnand %p5952_p8, %p6291_p5 }
0x1ccf   : > { %p5958_p13 = por %p5957_p12, %p5956_p11 }
0x1cd0   : > { %p5954_p10 = pneg %p5953_p9 }
0x1cd2   : > { %p5959_p0 = pnand %p5958_p13, %p5954_p10 }
0x1cd4   : > { %5962 = shalt.err (!%p5959_p0)
}
0x1cd5   : > { %5719 = dma.vmem_to_hbm [thread:$0]  (%p6291_p5), %s4814_s21, 128, %s4811_s14, %s4781_s19   ;;  %vm4769_vm1 = vcmask 8192  }
0x1cd6   : > { %s1244_s4 = scalar_lea.vmem %s6251_s20, %s6306_s18 }
0x1d22   : > { %v4730_v2 = vpop.xlane.xlu1 %4729 }
0x1d23   : > { %5907 = vlog2.f32 %v4730_v2 }
0x1d26   : > { %v4409_v38 = vpop.xlane.xlu1 %4408 }
0x1d27   : > { %v4411_v39 = vmul.f32 0.03125, %v4409_v38 }
0x1d29   : > { %v4413_v42 = vadd.f32 1e-06, %v4411_v39 }
0x1d2a   : > { %v4743_v25 = vpop.xlane.xlu1 %4742 }
0x1d2b   : > { %5909 = vrsqrt.f32 %v4413_v42 }
0x1d2e   : > { %v4766_v7 = vpop.permute.xlu1 %4765 }
0x1d30   : > { %v5908_v43 = vpop.eup %5907 }
0x1d31   : > { %v4732_v44 = vmul.f32 0.6931472, %v5908_v43 }
0x1d33   : > { %v4733_v23 = vadd.f32 %v4732_v44, %v6892_v19 }
0x1d35   : > { %v4747_v46 = vsub.f32 %v4733_v23, %v4743_v25 }
0x1d37   : > { %v4748_v50 = vmul.f32 %v6898_v35, %v4747_v46 }
0x1d38   : > { %v5910_v47 = vpop.eup %5909 }
0x1d39   : > { %v4417_v51 = vmul.f32 %v5910_v47, %v6895_v26  ;;  %v4750_v52 = vsel %vm4749_vm3, %v4748_v50, 0.0 }
0x1d3a   : > { %v4751_v53 = vrot.slane %v4750_v52, 4 }
0x1d3b   : > { %v4425_v54 = vmul.f32 %v6833_v30, %v4417_v51 }
0x1d3c   : > { %v4752_v59 = vadd.f32 %v4751_v53, %v4750_v52 }
0x1d3d   : > { %v4433_v62 = vadd.f32 %v6837_v27, %v4425_v54 }
0x1d3e   : > { %v4753_v63 = vrot.slane %v4752_v59, 2 }
0x1d3f   : > { %4435 = vst.msk [vmem:[%s6841_s3 + $0x8] sm:$0x1f] %vm1499_vm5, %v4433_v62 }
0x1d40   : > { %v4754_v4 = vadd.f32 %v4753_v63, %v4752_v59 }
0x1d42   : > { %v4755_v5 = vrot.slane %v4754_v4, 1 }
0x1d44   : > { %v4756_v58 = vadd.f32 %v4755_v5, %v4754_v4 }
0x1d46   : > { %v4768_v8 = vsel %vm4749_vm3, %v4756_v58, %v4766_v7 }
0x1d47   : > { %4770 = vst.msk [vmem:[%s1244_s4] sm:$0x1] %vm4769_vm1, %v4768_v8 }
0x1d48 PF: > { %p5729_p5 = scmp.ge.s32.totalorder %s6001_s28, 2  ;;  %s4836_s0 = sand.u32 1, %s5989_s22  }
0x1d49   : > { %s4837_s15 = scalar_lea.sflag [#allocation3], %s4836_s0 }
0x1d4a   : > { %p5723_p1 = pnand %p5729_p5, %p6295_p6 }
0x1d4c   : > { %p5724_p2 = pneg %p5723_p1 }
0x1d4e   : > { %5980 = dma.done.wait (%p5724_p2), %s4837_s15, 16  }
0x1d4f   : > { %5982 = vsyncadd (%p5724_p2), %s4837_s15, 4294967280  ;;  %s4845_s3 = scalar_lea.sflag [#allocation5], %s4836_s0 }
0x1d50   : > { %5984 = dma.done.wait (%p5724_p2), %s4845_s3, 128  }
0x1d51   : > { %5986 = vsyncadd (%p5724_p2), %s4845_s3, 4294967168  ;;  %p93_p3 = scmp.ge.s32.totalorder %s6278_s2, 4   ;;  %s7068_s22 = smov %s5993_s23 }
0x1d52   : > { %s7069_s23 = smov %s5997_s26  ;;  %s7070_s26 = smov %s6289_s11 }
0x1d53   : > { %s7071_s28 = smov %s6278_s2  ;;  %95 = sbr.rel (!%p93_p3) target bundleno = 85 (0x55), region = 301 }
0x1d58   :  { %4856 = vsyncpa [#allocation3], 1 }
0x1d59   :  { %4858 = vsyncpa [#allocation3 + $0x1], 1 }
0x1d5a   :  { %4859 = vsyncpa [#allocation5], 1 }
0x1d5b   :  { %4861 = vsyncpa [#allocation5 + $0x1], 1 }

</bundles_post_ra>
